<compile_context>
chip_gen: v7x
topology: tpu7x:2x2x1
jax: 0.10.0
libtpu: 0.0.40
codegen_flags: <defaults>
</compile_context>

<pallas_src>
import functools
import math

import jax
import jax.numpy as jnp
import numpy as np
from jax.experimental import pallas as pl
from jax.experimental.pallas import tpu as pltpu

EPS = 1e-5
NEG_INF = -1_000_000.0


# ---------------------------------------------------------------------------
# Fused kernel: embedding gather + all encoder layers, one invocation (no grid)
# ---------------------------------------------------------------------------
def _bert_fused_kernel(tok_ref, valid_ref, segf_ref, seg_emb_ref, pos_ref,
                       tok_emb_hbm, *rest, num_heads, num_layers, batch, seq):
    """Args:
      tok_ref:   (B*S,)  int32  SMEM   token ids
      valid_ref: (B,)    int32  SMEM   valid lengths
      segf_ref:  (B*S,1) f32    VMEM   segment ids as float {0,1}
      seg_emb_ref: (2,H) f32    VMEM
      pos_ref:   (S,H)   f32    VMEM
      tok_emb_hbm: (V,H) f32    HBM (pl.ANY) -- gathered via per-row DMA
      rest: 12*num_layers weight refs (VMEM), then out_ref (B*S,H) f32,
            then scratch: token-row gather buffer (B*S,H) f32, DMA sems (B*S,)
    """
    n_w = 12 * num_layers
    w = rest[:n_w]
    o_ref = rest[n_w]
    tok_rows = rest[n_w + 1]
    sems = rest[n_w + 2]

    BS, H = o_ref.shape
    B, S = batch, seq
    dh = H // num_heads
    bf16 = jnp.bfloat16

    # ---- token-embedding row gather: HBM -> VMEM, one small DMA per row ----
    # TODO(synk): for large B*S, batch rows per DMA / overlap with the first matmul.
    copies = []
    for r in range(BS):
        cp = pltpu.make_async_copy(tok_emb_hbm.at[tok_ref[r]], tok_rows.at[r],
                                   sems.at[r])
        cp.start()
        copies.append(cp)
    for cp in copies:
        cp.wait()

    tok_e = tok_rows[...]                                            # (BS, H) f32
    seg = segf_ref[...]                                              # (BS, 1) in {0,1}
    seg_e = seg_emb_ref[0:1, :] * (1.0 - seg) + seg_emb_ref[1:2, :] * seg
    pos_b = jnp.concatenate([pos_ref[...]] * B, axis=0)              # (BS, H)
    x = tok_e + seg_e + pos_b                                        # f32

    scale = 1.0 / math.sqrt(dh)
    key_pos = jax.lax.broadcasted_iota(jnp.int32, (S, S), 1)

    def layernorm(z, g, beta):
        mu = jnp.mean(z, axis=-1, keepdims=True)
        var = jnp.mean((z - mu) ** 2, axis=-1, keepdims=True)
        return (z - mu) * jax.lax.rsqrt(var + EPS) * g + beta

    for l in range(num_layers):
        (wqkv, bqkv, wo, bo, g1, be1, w1, b1, w2, b2, g2, be2) = w[12 * l:12 * (l + 1)]

        # Fused QKV projection over the whole (B*S, H) slab: bf16 in, f32 accum.
        qkv = jnp.dot(x.astype(bf16), wqkv[...],
                      preferred_element_type=jnp.float32) + bqkv[...]

        # Masked attention: loop per batch element (mask differs) and per head;
        # accumulate the W_o contraction per head (no lane-axis head concat).
        out_rows = []
        for b in range(B):
            rows = slice(b * S, (b + 1) * S)
            mask = key_pos < valid_ref[b]
            acc_b = jnp.zeros((S, H), jnp.float32)
            for h in range(num_heads):
                qh = qkv[rows, h * dh:(h + 1) * dh].astype(bf16)
                kh = qkv[rows, H + h * dh:H + (h + 1) * dh].astype(bf16)
                vh = qkv[rows, 2 * H + h * dh:2 * H + (h + 1) * dh].astype(bf16)
                s = jax.lax.dot_general(qh, kh, (((1,), (1,)), ((), ())),
                                        preferred_element_type=jnp.float32) * scale
                s = jnp.where(mask, s, NEG_INF)
                s = s - jnp.max(s, axis=-1, keepdims=True)
                p = jnp.exp(s)
                p = p * pl.reciprocal(jnp.sum(p, axis=-1, keepdims=True), approx=True)
                ctx_h = jnp.dot(p.astype(bf16), vh,
                                preferred_element_type=jnp.float32)          # (S, dh)
                acc_b = acc_b + jnp.dot(ctx_h.astype(bf16),
                                        wo[h * dh:(h + 1) * dh, :],
                                        preferred_element_type=jnp.float32)  # (S, H)
            out_rows.append(acc_b)
        attn_out = jnp.concatenate(out_rows, axis=0) + bo[...]

        # AddNorm1 (f32)
        y = layernorm(attn_out + x, g1[...], be1[...])

        # Position-wise FFN (bf16 matmul operands, f32 accumulation / elementwise)
        h1 = jnp.maximum(
            jnp.dot(y.astype(bf16), w1[...],
                    preferred_element_type=jnp.float32) + b1[...], 0.0)
        h2 = jnp.dot(h1.astype(bf16), w2[...],
                     preferred_element_type=jnp.float32) + b2[...]

        # AddNorm2
        x = layernorm(h2 + y, g2[...], be2[...])

    o_ref[...] = x


def bert_encoder_forward(tokens, segments, valid_lens, params, num_heads):
    B, S = tokens.shape
    H = params["tok_emb"].shape[1]
    F = params["layers"][0]["w1"].shape[1]
    L = len(params["layers"])
    BS = B * S
    dh = H // num_heads

    flat_w = []
    for p in params["layers"]:
        flat_w += [p["wqkv"], p["bqkv"], p["wo"], p["bo"], p["g1"], p["be1"],
                   p["w1"], p["b1"], p["w2"], p["b2"], p["g2"], p["be2"]]

    kernel = functools.partial(_bert_fused_kernel, num_heads=num_heads,
                               num_layers=L, batch=B, seq=S)

    smem = pl.BlockSpec(memory_space=pltpu.MemorySpace.SMEM)
    vmem = pl.BlockSpec(memory_space=pltpu.MemorySpace.VMEM)
    hbm = pl.BlockSpec(memory_space=pl.ANY)

    # Rough roofline hint for the XLA scheduler.
    flops = L * (2 * BS * H * 3 * H + 2 * BS * H * H + 4 * BS * H * F
                 + B * num_heads * 4 * S * S * dh)
    transcendentals = L * (B * num_heads * S * S + B * num_heads * S)
    weight_bytes = sum(int(np.prod(w.shape)) * w.dtype.itemsize for w in flat_w)
    bytes_accessed = weight_bytes + 2 * BS * H * 4 + S * H * 4 + 2 * H * 4 + BS * 8

    out = pl.pallas_call(
        kernel,
        out_shape=jax.ShapeDtypeStruct((BS, H), jnp.float32),
        in_specs=[smem, smem, vmem, vmem, vmem, hbm] + [vmem] * (12 * L),
        out_specs=vmem,
        scratch_shapes=[pltpu.VMEM((BS, H), jnp.float32),
                        pltpu.SemaphoreType.DMA((BS,))],
        compiler_params=pltpu.CompilerParams(vmem_limit_bytes=32 * 1024 * 1024),
        cost_estimate=pl.CostEstimate(flops=flops, transcendentals=transcendentals,
                                      bytes_accessed=bytes_accessed),
    )(tokens.reshape(BS).astype(jnp.int32),
      valid_lens.astype(jnp.int32),
      segments.reshape(BS, 1).astype(jnp.float32),
      params["seg_emb"], params["pos"][:S],
      params["tok_emb"], *flat_w)
    return out.reshape(B, S, H)


# ---------------------------------------------------------------------------
# Plain-JAX reference (PyTorch forward with dropout = identity, mirroring the
# kernel's mixed-precision policy: bf16 matmul operands, f32 accumulation).
# ---------------------------------------------------------------------------
def _layernorm_ref(z, g, b):
    mu = jnp.mean(z, axis=-1, keepdims=True)
    var = jnp.mean((z - mu) ** 2, axis=-1, keepdims=True)
    return (z - mu) / jnp.sqrt(var + EPS) * g + b


def bert_encoder_reference(tokens, segments, valid_lens, params, num_heads):
    bf16 = jnp.bfloat16

    def mm(a, b):
        return jnp.dot(a.astype(bf16), b.astype(bf16),
                       preferred_element_type=jnp.float32)

    B, S = tokens.shape
    H = params["tok_emb"].shape[1]
    dh = H // num_heads
    x = (params["tok_emb"][tokens] + params["seg_emb"][segments]
         + params["pos"][:S][None, :, :])
    for p in params["layers"]:
        qkv = mm(x.reshape(B * S, H), p["wqkv"]).reshape(B, S, 3 * H) + p["bqkv"]
        q, k, v = jnp.split(qkv, 3, axis=-1)

        def split_heads(t):
            return t.reshape(B, S, num_heads, dh).transpose(0, 2, 1, 3)

        qh, kh, vh = split_heads(q), split_heads(k), split_heads(v)
        scores = jnp.einsum("bhqd,bhkd->bhqk", qh.astype(bf16), kh.astype(bf16),
                            preferred_element_type=jnp.float32) / math.sqrt(dh)
        mask = jnp.arange(S)[None, None, None, :] < valid_lens[:, None, None, None]
        scores = jnp.where(mask, scores, NEG_INF)
        attn = jax.nn.softmax(scores, axis=-1)
        ctx = jnp.einsum("bhqk,bhkd->bhqd", attn.astype(bf16), vh.astype(bf16),
                         preferred_element_type=jnp.float32)
        ctx = ctx.transpose(0, 2, 1, 3).reshape(B, S, H)
        attn_out = mm(ctx.reshape(B * S, H), p["wo"]).reshape(B, S, H) + p["bo"]
        y = _layernorm_ref(attn_out + x, p["g1"], p["be1"])
        f1 = jax.nn.relu(mm(y.reshape(B * S, H), p["w1"]).reshape(B, S, -1) + p["b1"])
        f2 = mm(f1.reshape(B * S, -1), p["w2"]).reshape(B, S, H) + p["b2"]
        x = _layernorm_ref(f2 + y, p["g2"], p["be2"])
    return x


# ---------------------------------------------------------------------------
# Parameter init (matmul weights stored bf16; biases / LN params / tables f32)
# ---------------------------------------------------------------------------
def init_params(key, vocab, H, F, num_layers, max_len):
    keys = jax.random.split(key, 3 + num_layers)
    s = 0.1
    bf = jnp.bfloat16

    def layer_params(k):
        ks = jax.random.split(k, 12)
        return {
            "wqkv": (s * jax.random.normal(ks[0], (H, 3 * H), jnp.float32)).astype(bf),
            "bqkv": s * jax.random.normal(ks[1], (1, 3 * H), jnp.float32),
            "wo":   (s * jax.random.normal(ks[2], (H, H), jnp.float32)).astype(bf),
            "bo":   s * jax.random.normal(ks[3], (1, H), jnp.float32),
            "w1":   (s * jax.random.normal(ks[4], (H, F), jnp.float32)).astype(bf),
            "b1":   s * jax.random.normal(ks[5], (1, F), jnp.float32),
            "w2":   (s * jax.random.normal(ks[6], (F, H), jnp.float32)).astype(bf),
            "b2":   s * jax.random.normal(ks[7], (1, H), jnp.float32),
            "g1":   1.0 + s * jax.random.normal(ks[8], (1, H), jnp.float32),
            "be1":  s * jax.random.normal(ks[9], (1, H), jnp.float32),
            "g2":   1.0 + s * jax.random.normal(ks[10], (1, H), jnp.float32),
            "be2":  s * jax.random.normal(ks[11], (1, H), jnp.float32),
        }

    return {
        "tok_emb": s * jax.random.normal(keys[0], (vocab, H), jnp.float32),
        "seg_emb": s * jax.random.normal(keys[1], (2, H), jnp.float32),
        "pos":     s * jax.random.normal(keys[2], (max_len, H), jnp.float32),
        "layers":  [layer_params(keys[3 + i]) for i in range(num_layers)],
    }


if __name__ == "__main__":
    VOCAB, H, FFN, HEADS, LAYERS, MAX_LEN = 128, 128, 256, 4, 2, 64
    B, S = 2, 8

    key = jax.random.PRNGKey(0)
    k_tok, k_p = jax.random.split(key)
    tokens = jax.random.randint(k_tok, (B, S), 0, VOCAB, dtype=jnp.int32)
    segments = jnp.concatenate(
        [jnp.zeros((B, S // 2), jnp.int32), jnp.ones((B, S // 2), jnp.int32)], axis=1)
    valid_lens = jnp.array([S, 5], dtype=jnp.int32)
    params = init_params(k_p, VOCAB, H, FFN, LAYERS, MAX_LEN)

    out = jax.block_until_ready(
        bert_encoder_forward(tokens, segments, valid_lens, params, HEADS))
    ref = jax.block_until_ready(
        bert_encoder_reference(tokens, segments, valid_lens, params, HEADS))

    assert out.shape == (B, S, H)
    np.testing.assert_allclose(np.asarray(out), np.asarray(ref), rtol=2e-2, atol=2e-2)
    print("KERNEL_OK")
</pallas_src>

<mosaic_0001>
module attributes {stable_mosaic.version = 11 : i64} {
  func.func @_bert_fused_kernel(%arg0: memref<16xi32, #tpu.memory_space<smem>>, %arg1: memref<2xi32, #tpu.memory_space<smem>>, %arg2: memref<16x1xf32, #tpu.memory_space<vmem>>, %arg3: memref<2x128xf32, #tpu.memory_space<vmem>>, %arg4: memref<8x128xf32, #tpu.memory_space<vmem>>, %arg5: memref<128x128xf32, #tpu.memory_space<any>>, %arg6: memref<128x384xbf16, #tpu.memory_space<vmem>>, %arg7: memref<1x384xf32, #tpu.memory_space<vmem>>, %arg8: memref<128x128xbf16, #tpu.memory_space<vmem>>, %arg9: memref<1x128xf32, #tpu.memory_space<vmem>>, %arg10: memref<1x128xf32, #tpu.memory_space<vmem>>, %arg11: memref<1x128xf32, #tpu.memory_space<vmem>>, %arg12: memref<128x256xbf16, #tpu.memory_space<vmem>>, %arg13: memref<1x256xf32, #tpu.memory_space<vmem>>, %arg14: memref<256x128xbf16, #tpu.memory_space<vmem>>, %arg15: memref<1x128xf32, #tpu.memory_space<vmem>>, %arg16: memref<1x128xf32, #tpu.memory_space<vmem>>, %arg17: memref<1x128xf32, #tpu.memory_space<vmem>>, %arg18: memref<128x384xbf16, #tpu.memory_space<vmem>>, %arg19: memref<1x384xf32, #tpu.memory_space<vmem>>, %arg20: memref<128x128xbf16, #tpu.memory_space<vmem>>, %arg21: memref<1x128xf32, #tpu.memory_space<vmem>>, %arg22: memref<1x128xf32, #tpu.memory_space<vmem>>, %arg23: memref<1x128xf32, #tpu.memory_space<vmem>>, %arg24: memref<128x256xbf16, #tpu.memory_space<vmem>>, %arg25: memref<1x256xf32, #tpu.memory_space<vmem>>, %arg26: memref<256x128xbf16, #tpu.memory_space<vmem>>, %arg27: memref<1x128xf32, #tpu.memory_space<vmem>>, %arg28: memref<1x128xf32, #tpu.memory_space<vmem>>, %arg29: memref<1x128xf32, #tpu.memory_space<vmem>>, %arg30: memref<16x128xf32, #tpu.memory_space<vmem>>, %arg31: memref<16x128xf32, #tpu.memory_space<vmem>>, %arg32: memref<16x!tpu.dma_semaphore, #tpu.memory_space<semaphore_mem>>) attributes {dimension_semantics = [], scalar_prefetch = 0 : i64, scratch_operands = 2 : i64, tpu.core_type = #tpu.core_type<tc>} {
    %c0 = arith.constant 0 : index
    %0 = memref.load %arg0[%c0] : memref<16xi32, #tpu.memory_space<smem>>
    %c0_i32 = arith.constant 0 : i32
    %c0_i32_0 = arith.constant 0 : i32
    %c0_i32_1 = arith.constant 0 : i32
    %1 = tpu.memref_slice %arg5[%0, %c0_i32_1] : memref<128x128xf32, #tpu.memory_space<any>> -> memref<1x128xf32, #tpu.memory_space<any>>
    %2 = tpu.memref_squeeze %1 : memref<1x128xf32, #tpu.memory_space<any>> -> memref<128xf32, #tpu.memory_space<any>>
    %c0_i32_2 = arith.constant 0 : i32
    %3 = tpu.memref_slice %arg31[%c0_i32, %c0_i32_2] : memref<16x128xf32, #tpu.memory_space<vmem>> -> memref<1x128xf32, #tpu.memory_space<vmem>>
    %4 = tpu.memref_squeeze %3 : memref<1x128xf32, #tpu.memory_space<vmem>> -> memref<128xf32, #tpu.memory_space<vmem>>
    %5 = tpu.memref_slice %arg32[%c0_i32_0] : memref<16x!tpu.dma_semaphore, #tpu.memory_space<semaphore_mem>> -> memref<1x!tpu.dma_semaphore, #tpu.memory_space<semaphore_mem>>
    %6 = tpu.memref_squeeze %5 : memref<1x!tpu.dma_semaphore, #tpu.memory_space<semaphore_mem>> -> memref<!tpu.dma_semaphore, #tpu.memory_space<semaphore_mem>>
    tpu.enqueue_dma source(%2 : memref<128xf32, #tpu.memory_space<any>>) target(%4 : memref<128xf32, #tpu.memory_space<vmem>>) target_semaphore(%6 : memref<!tpu.dma_semaphore, #tpu.memory_space<semaphore_mem>>)
    %c1 = arith.constant 1 : index
    %7 = memref.load %arg0[%c1] : memref<16xi32, #tpu.memory_space<smem>>
    %c1_i32 = arith.constant 1 : i32
    %c1_i32_3 = arith.constant 1 : i32
    %c0_i32_4 = arith.constant 0 : i32
    %8 = tpu.memref_slice %arg5[%7, %c0_i32_4] : memref<128x128xf32, #tpu.memory_space<any>> -> memref<1x128xf32, #tpu.memory_space<any>>
    %9 = tpu.memref_squeeze %8 : memref<1x128xf32, #tpu.memory_space<any>> -> memref<128xf32, #tpu.memory_space<any>>
    %c0_i32_5 = arith.constant 0 : i32
    %10 = tpu.memref_slice %arg31[%c1_i32, %c0_i32_5] : memref<16x128xf32, #tpu.memory_space<vmem>> -> memref<1x128xf32, #tpu.memory_space<vmem>>
    %11 = tpu.memref_squeeze %10 : memref<1x128xf32, #tpu.memory_space<vmem>> -> memref<128xf32, #tpu.memory_space<vmem>>
    %12 = tpu.memref_slice %arg32[%c1_i32_3] : memref<16x!tpu.dma_semaphore, #tpu.memory_space<semaphore_mem>> -> memref<1x!tpu.dma_semaphore, #tpu.memory_space<semaphore_mem>>
    %13 = tpu.memref_squeeze %12 : memref<1x!tpu.dma_semaphore, #tpu.memory_space<semaphore_mem>> -> memref<!tpu.dma_semaphore, #tpu.memory_space<semaphore_mem>>
    tpu.enqueue_dma source(%9 : memref<128xf32, #tpu.memory_space<any>>) target(%11 : memref<128xf32, #tpu.memory_space<vmem>>) target_semaphore(%13 : memref<!tpu.dma_semaphore, #tpu.memory_space<semaphore_mem>>)
    %c2 = arith.constant 2 : index
    %14 = memref.load %arg0[%c2] : memref<16xi32, #tpu.memory_space<smem>>
    %c2_i32 = arith.constant 2 : i32
    %c2_i32_6 = arith.constant 2 : i32
    %c0_i32_7 = arith.constant 0 : i32
    %15 = tpu.memref_slice %arg5[%14, %c0_i32_7] : memref<128x128xf32, #tpu.memory_space<any>> -> memref<1x128xf32, #tpu.memory_space<any>>
    %16 = tpu.memref_squeeze %15 : memref<1x128xf32, #tpu.memory_space<any>> -> memref<128xf32, #tpu.memory_space<any>>
    %c0_i32_8 = arith.constant 0 : i32
    %17 = tpu.memref_slice %arg31[%c2_i32, %c0_i32_8] : memref<16x128xf32, #tpu.memory_space<vmem>> -> memref<1x128xf32, #tpu.memory_space<vmem>>
    %18 = tpu.memref_squeeze %17 : memref<1x128xf32, #tpu.memory_space<vmem>> -> memref<128xf32, #tpu.memory_space<vmem>>
    %19 = tpu.memref_slice %arg32[%c2_i32_6] : memref<16x!tpu.dma_semaphore, #tpu.memory_space<semaphore_mem>> -> memref<1x!tpu.dma_semaphore, #tpu.memory_space<semaphore_mem>>
    %20 = tpu.memref_squeeze %19 : memref<1x!tpu.dma_semaphore, #tpu.memory_space<semaphore_mem>> -> memref<!tpu.dma_semaphore, #tpu.memory_space<semaphore_mem>>
    tpu.enqueue_dma source(%16 : memref<128xf32, #tpu.memory_space<any>>) target(%18 : memref<128xf32, #tpu.memory_space<vmem>>) target_semaphore(%20 : memref<!tpu.dma_semaphore, #tpu.memory_space<semaphore_mem>>)
    %c3 = arith.constant 3 : index
    %21 = memref.load %arg0[%c3] : memref<16xi32, #tpu.memory_space<smem>>
    %c3_i32 = arith.constant 3 : i32
    %c3_i32_9 = arith.constant 3 : i32
    %c0_i32_10 = arith.constant 0 : i32
    %22 = tpu.memref_slice %arg5[%21, %c0_i32_10] : memref<128x128xf32, #tpu.memory_space<any>> -> memref<1x128xf32, #tpu.memory_space<any>>
    %23 = tpu.memref_squeeze %22 : memref<1x128xf32, #tpu.memory_space<any>> -> memref<128xf32, #tpu.memory_space<any>>
    %c0_i32_11 = arith.constant 0 : i32
    %24 = tpu.memref_slice %arg31[%c3_i32, %c0_i32_11] : memref<16x128xf32, #tpu.memory_space<vmem>> -> memref<1x128xf32, #tpu.memory_space<vmem>>
    %25 = tpu.memref_squeeze %24 : memref<1x128xf32, #tpu.memory_space<vmem>> -> memref<128xf32, #tpu.memory_space<vmem>>
    %26 = tpu.memref_slice %arg32[%c3_i32_9] : memref<16x!tpu.dma_semaphore, #tpu.memory_space<semaphore_mem>> -> memref<1x!tpu.dma_semaphore, #tpu.memory_space<semaphore_mem>>
    %27 = tpu.memref_squeeze %26 : memref<1x!tpu.dma_semaphore, #tpu.memory_space<semaphore_mem>> -> memref<!tpu.dma_semaphore, #tpu.memory_space<semaphore_mem>>
    tpu.enqueue_dma source(%23 : memref<128xf32, #tpu.memory_space<any>>) target(%25 : memref<128xf32, #tpu.memory_space<vmem>>) target_semaphore(%27 : memref<!tpu.dma_semaphore, #tpu.memory_space<semaphore_mem>>)
    %c4 = arith.constant 4 : index
    %28 = memref.load %arg0[%c4] : memref<16xi32, #tpu.memory_space<smem>>
    %c4_i32 = arith.constant 4 : i32
    %c4_i32_12 = arith.constant 4 : i32
    %c0_i32_13 = arith.constant 0 : i32
    %29 = tpu.memref_slice %arg5[%28, %c0_i32_13] : memref<128x128xf32, #tpu.memory_space<any>> -> memref<1x128xf32, #tpu.memory_space<any>>
    %30 = tpu.memref_squeeze %29 : memref<1x128xf32, #tpu.memory_space<any>> -> memref<128xf32, #tpu.memory_space<any>>
    %c0_i32_14 = arith.constant 0 : i32
    %31 = tpu.memref_slice %arg31[%c4_i32, %c0_i32_14] : memref<16x128xf32, #tpu.memory_space<vmem>> -> memref<1x128xf32, #tpu.memory_space<vmem>>
    %32 = tpu.memref_squeeze %31 : memref<1x128xf32, #tpu.memory_space<vmem>> -> memref<128xf32, #tpu.memory_space<vmem>>
    %33 = tpu.memref_slice %arg32[%c4_i32_12] : memref<16x!tpu.dma_semaphore, #tpu.memory_space<semaphore_mem>> -> memref<1x!tpu.dma_semaphore, #tpu.memory_space<semaphore_mem>>
    %34 = tpu.memref_squeeze %33 : memref<1x!tpu.dma_semaphore, #tpu.memory_space<semaphore_mem>> -> memref<!tpu.dma_semaphore, #tpu.memory_space<semaphore_mem>>
    tpu.enqueue_dma source(%30 : memref<128xf32, #tpu.memory_space<any>>) target(%32 : memref<128xf32, #tpu.memory_space<vmem>>) target_semaphore(%34 : memref<!tpu.dma_semaphore, #tpu.memory_space<semaphore_mem>>)
    %c5 = arith.constant 5 : index
    %35 = memref.load %arg0[%c5] : memref<16xi32, #tpu.memory_space<smem>>
    %c5_i32 = arith.constant 5 : i32
    %c5_i32_15 = arith.constant 5 : i32
    %c0_i32_16 = arith.constant 0 : i32
    %36 = tpu.memref_slice %arg5[%35, %c0_i32_16] : memref<128x128xf32, #tpu.memory_space<any>> -> memref<1x128xf32, #tpu.memory_space<any>>
    %37 = tpu.memref_squeeze %36 : memref<1x128xf32, #tpu.memory_space<any>> -> memref<128xf32, #tpu.memory_space<any>>
    %c0_i32_17 = arith.constant 0 : i32
    %38 = tpu.memref_slice %arg31[%c5_i32, %c0_i32_17] : memref<16x128xf32, #tpu.memory_space<vmem>> -> memref<1x128xf32, #tpu.memory_space<vmem>>
    %39 = tpu.memref_squeeze %38 : memref<1x128xf32, #tpu.memory_space<vmem>> -> memref<128xf32, #tpu.memory_space<vmem>>
    %40 = tpu.memref_slice %arg32[%c5_i32_15] : memref<16x!tpu.dma_semaphore, #tpu.memory_space<semaphore_mem>> -> memref<1x!tpu.dma_semaphore, #tpu.memory_space<semaphore_mem>>
    %41 = tpu.memref_squeeze %40 : memref<1x!tpu.dma_semaphore, #tpu.memory_space<semaphore_mem>> -> memref<!tpu.dma_semaphore, #tpu.memory_space<semaphore_mem>>
    tpu.enqueue_dma source(%37 : memref<128xf32, #tpu.memory_space<any>>) target(%39 : memref<128xf32, #tpu.memory_space<vmem>>) target_semaphore(%41 : memref<!tpu.dma_semaphore, #tpu.memory_space<semaphore_mem>>)
    %c6 = arith.constant 6 : index
    %42 = memref.load %arg0[%c6] : memref<16xi32, #tpu.memory_space<smem>>
    %c6_i32 = arith.constant 6 : i32
    %c6_i32_18 = arith.constant 6 : i32
    %c0_i32_19 = arith.constant 0 : i32
    %43 = tpu.memref_slice %arg5[%42, %c0_i32_19] : memref<128x128xf32, #tpu.memory_space<any>> -> memref<1x128xf32, #tpu.memory_space<any>>
    %44 = tpu.memref_squeeze %43 : memref<1x128xf32, #tpu.memory_space<any>> -> memref<128xf32, #tpu.memory_space<any>>
    %c0_i32_20 = arith.constant 0 : i32
    %45 = tpu.memref_slice %arg31[%c6_i32, %c0_i32_20] : memref<16x128xf32, #tpu.memory_space<vmem>> -> memref<1x128xf32, #tpu.memory_space<vmem>>
    %46 = tpu.memref_squeeze %45 : memref<1x128xf32, #tpu.memory_space<vmem>> -> memref<128xf32, #tpu.memory_space<vmem>>
    %47 = tpu.memref_slice %arg32[%c6_i32_18] : memref<16x!tpu.dma_semaphore, #tpu.memory_space<semaphore_mem>> -> memref<1x!tpu.dma_semaphore, #tpu.memory_space<semaphore_mem>>
    %48 = tpu.memref_squeeze %47 : memref<1x!tpu.dma_semaphore, #tpu.memory_space<semaphore_mem>> -> memref<!tpu.dma_semaphore, #tpu.memory_space<semaphore_mem>>
    tpu.enqueue_dma source(%44 : memref<128xf32, #tpu.memory_space<any>>) target(%46 : memref<128xf32, #tpu.memory_space<vmem>>) target_semaphore(%48 : memref<!tpu.dma_semaphore, #tpu.memory_space<semaphore_mem>>)
    %c7 = arith.constant 7 : index
    %49 = memref.load %arg0[%c7] : memref<16xi32, #tpu.memory_space<smem>>
    %c7_i32 = arith.constant 7 : i32
    %c7_i32_21 = arith.constant 7 : i32
    %c0_i32_22 = arith.constant 0 : i32
    %50 = tpu.memref_slice %arg5[%49, %c0_i32_22] : memref<128x128xf32, #tpu.memory_space<any>> -> memref<1x128xf32, #tpu.memory_space<any>>
    %51 = tpu.memref_squeeze %50 : memref<1x128xf32, #tpu.memory_space<any>> -> memref<128xf32, #tpu.memory_space<any>>
    %c0_i32_23 = arith.constant 0 : i32
    %52 = tpu.memref_slice %arg31[%c7_i32, %c0_i32_23] : memref<16x128xf32, #tpu.memory_space<vmem>> -> memref<1x128xf32, #tpu.memory_space<vmem>>
    %53 = tpu.memref_squeeze %52 : memref<1x128xf32, #tpu.memory_space<vmem>> -> memref<128xf32, #tpu.memory_space<vmem>>
    %54 = tpu.memref_slice %arg32[%c7_i32_21] : memref<16x!tpu.dma_semaphore, #tpu.memory_space<semaphore_mem>> -> memref<1x!tpu.dma_semaphore, #tpu.memory_space<semaphore_mem>>
    %55 = tpu.memref_squeeze %54 : memref<1x!tpu.dma_semaphore, #tpu.memory_space<semaphore_mem>> -> memref<!tpu.dma_semaphore, #tpu.memory_space<semaphore_mem>>
    tpu.enqueue_dma source(%51 : memref<128xf32, #tpu.memory_space<any>>) target(%53 : memref<128xf32, #tpu.memory_space<vmem>>) target_semaphore(%55 : memref<!tpu.dma_semaphore, #tpu.memory_space<semaphore_mem>>)
    %c8 = arith.constant 8 : index
    %56 = memref.load %arg0[%c8] : memref<16xi32, #tpu.memory_space<smem>>
    %c8_i32 = arith.constant 8 : i32
    %c8_i32_24 = arith.constant 8 : i32
    %c0_i32_25 = arith.constant 0 : i32
    %57 = tpu.memref_slice %arg5[%56, %c0_i32_25] : memref<128x128xf32, #tpu.memory_space<any>> -> memref<1x128xf32, #tpu.memory_space<any>>
    %58 = tpu.memref_squeeze %57 : memref<1x128xf32, #tpu.memory_space<any>> -> memref<128xf32, #tpu.memory_space<any>>
    %c0_i32_26 = arith.constant 0 : i32
    %59 = tpu.memref_slice %arg31[%c8_i32, %c0_i32_26] : memref<16x128xf32, #tpu.memory_space<vmem>> -> memref<1x128xf32, #tpu.memory_space<vmem>>
    %60 = tpu.memref_squeeze %59 : memref<1x128xf32, #tpu.memory_space<vmem>> -> memref<128xf32, #tpu.memory_space<vmem>>
    %61 = tpu.memref_slice %arg32[%c8_i32_24] : memref<16x!tpu.dma_semaphore, #tpu.memory_space<semaphore_mem>> -> memref<1x!tpu.dma_semaphore, #tpu.memory_space<semaphore_mem>>
    %62 = tpu.memref_squeeze %61 : memref<1x!tpu.dma_semaphore, #tpu.memory_space<semaphore_mem>> -> memref<!tpu.dma_semaphore, #tpu.memory_space<semaphore_mem>>
    tpu.enqueue_dma source(%58 : memref<128xf32, #tpu.memory_space<any>>) target(%60 : memref<128xf32, #tpu.memory_space<vmem>>) target_semaphore(%62 : memref<!tpu.dma_semaphore, #tpu.memory_space<semaphore_mem>>)
    %c9 = arith.constant 9 : index
    %63 = memref.load %arg0[%c9] : memref<16xi32, #tpu.memory_space<smem>>
    %c9_i32 = arith.constant 9 : i32
    %c9_i32_27 = arith.constant 9 : i32
    %c0_i32_28 = arith.constant 0 : i32
    %64 = tpu.memref_slice %arg5[%63, %c0_i32_28] : memref<128x128xf32, #tpu.memory_space<any>> -> memref<1x128xf32, #tpu.memory_space<any>>
    %65 = tpu.memref_squeeze %64 : memref<1x128xf32, #tpu.memory_space<any>> -> memref<128xf32, #tpu.memory_space<any>>
    %c0_i32_29 = arith.constant 0 : i32
    %66 = tpu.memref_slice %arg31[%c9_i32, %c0_i32_29] : memref<16x128xf32, #tpu.memory_space<vmem>> -> memref<1x128xf32, #tpu.memory_space<vmem>>
    %67 = tpu.memref_squeeze %66 : memref<1x128xf32, #tpu.memory_space<vmem>> -> memref<128xf32, #tpu.memory_space<vmem>>
    %68 = tpu.memref_slice %arg32[%c9_i32_27] : memref<16x!tpu.dma_semaphore, #tpu.memory_space<semaphore_mem>> -> memref<1x!tpu.dma_semaphore, #tpu.memory_space<semaphore_mem>>
    %69 = tpu.memref_squeeze %68 : memref<1x!tpu.dma_semaphore, #tpu.memory_space<semaphore_mem>> -> memref<!tpu.dma_semaphore, #tpu.memory_space<semaphore_mem>>
    tpu.enqueue_dma source(%65 : memref<128xf32, #tpu.memory_space<any>>) target(%67 : memref<128xf32, #tpu.memory_space<vmem>>) target_semaphore(%69 : memref<!tpu.dma_semaphore, #tpu.memory_space<semaphore_mem>>)
    %c10 = arith.constant 10 : index
    %70 = memref.load %arg0[%c10] : memref<16xi32, #tpu.memory_space<smem>>
    %c10_i32 = arith.constant 10 : i32
    %c10_i32_30 = arith.constant 10 : i32
    %c0_i32_31 = arith.constant 0 : i32
    %71 = tpu.memref_slice %arg5[%70, %c0_i32_31] : memref<128x128xf32, #tpu.memory_space<any>> -> memref<1x128xf32, #tpu.memory_space<any>>
    %72 = tpu.memref_squeeze %71 : memref<1x128xf32, #tpu.memory_space<any>> -> memref<128xf32, #tpu.memory_space<any>>
    %c0_i32_32 = arith.constant 0 : i32
    %73 = tpu.memref_slice %arg31[%c10_i32, %c0_i32_32] : memref<16x128xf32, #tpu.memory_space<vmem>> -> memref<1x128xf32, #tpu.memory_space<vmem>>
    %74 = tpu.memref_squeeze %73 : memref<1x128xf32, #tpu.memory_space<vmem>> -> memref<128xf32, #tpu.memory_space<vmem>>
    %75 = tpu.memref_slice %arg32[%c10_i32_30] : memref<16x!tpu.dma_semaphore, #tpu.memory_space<semaphore_mem>> -> memref<1x!tpu.dma_semaphore, #tpu.memory_space<semaphore_mem>>
    %76 = tpu.memref_squeeze %75 : memref<1x!tpu.dma_semaphore, #tpu.memory_space<semaphore_mem>> -> memref<!tpu.dma_semaphore, #tpu.memory_space<semaphore_mem>>
    tpu.enqueue_dma source(%72 : memref<128xf32, #tpu.memory_space<any>>) target(%74 : memref<128xf32, #tpu.memory_space<vmem>>) target_semaphore(%76 : memref<!tpu.dma_semaphore, #tpu.memory_space<semaphore_mem>>)
    %c11 = arith.constant 11 : index
    %77 = memref.load %arg0[%c11] : memref<16xi32, #tpu.memory_space<smem>>
    %c11_i32 = arith.constant 11 : i32
    %c11_i32_33 = arith.constant 11 : i32
    %c0_i32_34 = arith.constant 0 : i32
    %78 = tpu.memref_slice %arg5[%77, %c0_i32_34] : memref<128x128xf32, #tpu.memory_space<any>> -> memref<1x128xf32, #tpu.memory_space<any>>
    %79 = tpu.memref_squeeze %78 : memref<1x128xf32, #tpu.memory_space<any>> -> memref<128xf32, #tpu.memory_space<any>>
    %c0_i32_35 = arith.constant 0 : i32
    %80 = tpu.memref_slice %arg31[%c11_i32, %c0_i32_35] : memref<16x128xf32, #tpu.memory_space<vmem>> -> memref<1x128xf32, #tpu.memory_space<vmem>>
    %81 = tpu.memref_squeeze %80 : memref<1x128xf32, #tpu.memory_space<vmem>> -> memref<128xf32, #tpu.memory_space<vmem>>
    %82 = tpu.memref_slice %arg32[%c11_i32_33] : memref<16x!tpu.dma_semaphore, #tpu.memory_space<semaphore_mem>> -> memref<1x!tpu.dma_semaphore, #tpu.memory_space<semaphore_mem>>
    %83 = tpu.memref_squeeze %82 : memref<1x!tpu.dma_semaphore, #tpu.memory_space<semaphore_mem>> -> memref<!tpu.dma_semaphore, #tpu.memory_space<semaphore_mem>>
    tpu.enqueue_dma source(%79 : memref<128xf32, #tpu.memory_space<any>>) target(%81 : memref<128xf32, #tpu.memory_space<vmem>>) target_semaphore(%83 : memref<!tpu.dma_semaphore, #tpu.memory_space<semaphore_mem>>)
    %c12 = arith.constant 12 : index
    %84 = memref.load %arg0[%c12] : memref<16xi32, #tpu.memory_space<smem>>
    %c12_i32 = arith.constant 12 : i32
    %c12_i32_36 = arith.constant 12 : i32
    %c0_i32_37 = arith.constant 0 : i32
    %85 = tpu.memref_slice %arg5[%84, %c0_i32_37] : memref<128x128xf32, #tpu.memory_space<any>> -> memref<1x128xf32, #tpu.memory_space<any>>
    %86 = tpu.memref_squeeze %85 : memref<1x128xf32, #tpu.memory_space<any>> -> memref<128xf32, #tpu.memory_space<any>>
    %c0_i32_38 = arith.constant 0 : i32
    %87 = tpu.memref_slice %arg31[%c12_i32, %c0_i32_38] : memref<16x128xf32, #tpu.memory_space<vmem>> -> memref<1x128xf32, #tpu.memory_space<vmem>>
    %88 = tpu.memref_squeeze %87 : memref<1x128xf32, #tpu.memory_space<vmem>> -> memref<128xf32, #tpu.memory_space<vmem>>
    %89 = tpu.memref_slice %arg32[%c12_i32_36] : memref<16x!tpu.dma_semaphore, #tpu.memory_space<semaphore_mem>> -> memref<1x!tpu.dma_semaphore, #tpu.memory_space<semaphore_mem>>
    %90 = tpu.memref_squeeze %89 : memref<1x!tpu.dma_semaphore, #tpu.memory_space<semaphore_mem>> -> memref<!tpu.dma_semaphore, #tpu.memory_space<semaphore_mem>>
    tpu.enqueue_dma source(%86 : memref<128xf32, #tpu.memory_space<any>>) target(%88 : memref<128xf32, #tpu.memory_space<vmem>>) target_semaphore(%90 : memref<!tpu.dma_semaphore, #tpu.memory_space<semaphore_mem>>)
    %c13 = arith.constant 13 : index
    %91 = memref.load %arg0[%c13] : memref<16xi32, #tpu.memory_space<smem>>
    %c13_i32 = arith.constant 13 : i32
    %c13_i32_39 = arith.constant 13 : i32
    %c0_i32_40 = arith.constant 0 : i32
    %92 = tpu.memref_slice %arg5[%91, %c0_i32_40] : memref<128x128xf32, #tpu.memory_space<any>> -> memref<1x128xf32, #tpu.memory_space<any>>
    %93 = tpu.memref_squeeze %92 : memref<1x128xf32, #tpu.memory_space<any>> -> memref<128xf32, #tpu.memory_space<any>>
    %c0_i32_41 = arith.constant 0 : i32
    %94 = tpu.memref_slice %arg31[%c13_i32, %c0_i32_41] : memref<16x128xf32, #tpu.memory_space<vmem>> -> memref<1x128xf32, #tpu.memory_space<vmem>>
    %95 = tpu.memref_squeeze %94 : memref<1x128xf32, #tpu.memory_space<vmem>> -> memref<128xf32, #tpu.memory_space<vmem>>
    %96 = tpu.memref_slice %arg32[%c13_i32_39] : memref<16x!tpu.dma_semaphore, #tpu.memory_space<semaphore_mem>> -> memref<1x!tpu.dma_semaphore, #tpu.memory_space<semaphore_mem>>
    %97 = tpu.memref_squeeze %96 : memref<1x!tpu.dma_semaphore, #tpu.memory_space<semaphore_mem>> -> memref<!tpu.dma_semaphore, #tpu.memory_space<semaphore_mem>>
    tpu.enqueue_dma source(%93 : memref<128xf32, #tpu.memory_space<any>>) target(%95 : memref<128xf32, #tpu.memory_space<vmem>>) target_semaphore(%97 : memref<!tpu.dma_semaphore, #tpu.memory_space<semaphore_mem>>)
    %c14 = arith.constant 14 : index
    %98 = memref.load %arg0[%c14] : memref<16xi32, #tpu.memory_space<smem>>
    %c14_i32 = arith.constant 14 : i32
    %c14_i32_42 = arith.constant 14 : i32
    %c0_i32_43 = arith.constant 0 : i32
    %99 = tpu.memref_slice %arg5[%98, %c0_i32_43] : memref<128x128xf32, #tpu.memory_space<any>> -> memref<1x128xf32, #tpu.memory_space<any>>
    %100 = tpu.memref_squeeze %99 : memref<1x128xf32, #tpu.memory_space<any>> -> memref<128xf32, #tpu.memory_space<any>>
    %c0_i32_44 = arith.constant 0 : i32
    %101 = tpu.memref_slice %arg31[%c14_i32, %c0_i32_44] : memref<16x128xf32, #tpu.memory_space<vmem>> -> memref<1x128xf32, #tpu.memory_space<vmem>>
    %102 = tpu.memref_squeeze %101 : memref<1x128xf32, #tpu.memory_space<vmem>> -> memref<128xf32, #tpu.memory_space<vmem>>
    %103 = tpu.memref_slice %arg32[%c14_i32_42] : memref<16x!tpu.dma_semaphore, #tpu.memory_space<semaphore_mem>> -> memref<1x!tpu.dma_semaphore, #tpu.memory_space<semaphore_mem>>
    %104 = tpu.memref_squeeze %103 : memref<1x!tpu.dma_semaphore, #tpu.memory_space<semaphore_mem>> -> memref<!tpu.dma_semaphore, #tpu.memory_space<semaphore_mem>>
    tpu.enqueue_dma source(%100 : memref<128xf32, #tpu.memory_space<any>>) target(%102 : memref<128xf32, #tpu.memory_space<vmem>>) target_semaphore(%104 : memref<!tpu.dma_semaphore, #tpu.memory_space<semaphore_mem>>)
    %c15 = arith.constant 15 : index
    %105 = memref.load %arg0[%c15] : memref<16xi32, #tpu.memory_space<smem>>
    %c15_i32 = arith.constant 15 : i32
    %c15_i32_45 = arith.constant 15 : i32
    %c0_i32_46 = arith.constant 0 : i32
    %106 = tpu.memref_slice %arg5[%105, %c0_i32_46] : memref<128x128xf32, #tpu.memory_space<any>> -> memref<1x128xf32, #tpu.memory_space<any>>
    %107 = tpu.memref_squeeze %106 : memref<1x128xf32, #tpu.memory_space<any>> -> memref<128xf32, #tpu.memory_space<any>>
    %c0_i32_47 = arith.constant 0 : i32
    %108 = tpu.memref_slice %arg31[%c15_i32, %c0_i32_47] : memref<16x128xf32, #tpu.memory_space<vmem>> -> memref<1x128xf32, #tpu.memory_space<vmem>>
    %109 = tpu.memref_squeeze %108 : memref<1x128xf32, #tpu.memory_space<vmem>> -> memref<128xf32, #tpu.memory_space<vmem>>
    %110 = tpu.memref_slice %arg32[%c15_i32_45] : memref<16x!tpu.dma_semaphore, #tpu.memory_space<semaphore_mem>> -> memref<1x!tpu.dma_semaphore, #tpu.memory_space<semaphore_mem>>
    %111 = tpu.memref_squeeze %110 : memref<1x!tpu.dma_semaphore, #tpu.memory_space<semaphore_mem>> -> memref<!tpu.dma_semaphore, #tpu.memory_space<semaphore_mem>>
    tpu.enqueue_dma source(%107 : memref<128xf32, #tpu.memory_space<any>>) target(%109 : memref<128xf32, #tpu.memory_space<vmem>>) target_semaphore(%111 : memref<!tpu.dma_semaphore, #tpu.memory_space<semaphore_mem>>)
    %c0_i32_48 = arith.constant 0 : i32
    %c0_i32_49 = arith.constant 0 : i32
    %c0_i32_50 = arith.constant 0 : i32
    %112 = tpu.memref_slice %arg5[%0, %c0_i32_50] : memref<128x128xf32, #tpu.memory_space<any>> -> memref<1x128xf32, #tpu.memory_space<any>>
    %113 = tpu.memref_squeeze %112 : memref<1x128xf32, #tpu.memory_space<any>> -> memref<128xf32, #tpu.memory_space<any>>
    %c0_i32_51 = arith.constant 0 : i32
    %114 = tpu.memref_slice %arg31[%c0_i32_48, %c0_i32_51] : memref<16x128xf32, #tpu.memory_space<vmem>> -> memref<1x128xf32, #tpu.memory_space<vmem>>
    %115 = tpu.memref_squeeze %114 : memref<1x128xf32, #tpu.memory_space<vmem>> -> memref<128xf32, #tpu.memory_space<vmem>>
    %116 = tpu.memref_slice %arg32[%c0_i32_49] : memref<16x!tpu.dma_semaphore, #tpu.memory_space<semaphore_mem>> -> memref<1x!tpu.dma_semaphore, #tpu.memory_space<semaphore_mem>>
    %117 = tpu.memref_squeeze %116 : memref<1x!tpu.dma_semaphore, #tpu.memory_space<semaphore_mem>> -> memref<!tpu.dma_semaphore, #tpu.memory_space<semaphore_mem>>
    tpu.wait_dma2 semaphore(%117 : memref<!tpu.dma_semaphore, #tpu.memory_space<semaphore_mem>>) src(%113 : memref<128xf32, #tpu.memory_space<any>>) dst(%115 : memref<128xf32, #tpu.memory_space<vmem>>)
    %c1_i32_52 = arith.constant 1 : i32
    %c1_i32_53 = arith.constant 1 : i32
    %c0_i32_54 = arith.constant 0 : i32
    %118 = tpu.memref_slice %arg5[%7, %c0_i32_54] : memref<128x128xf32, #tpu.memory_space<any>> -> memref<1x128xf32, #tpu.memory_space<any>>
    %119 = tpu.memref_squeeze %118 : memref<1x128xf32, #tpu.memory_space<any>> -> memref<128xf32, #tpu.memory_space<any>>
    %c0_i32_55 = arith.constant 0 : i32
    %120 = tpu.memref_slice %arg31[%c1_i32_52, %c0_i32_55] : memref<16x128xf32, #tpu.memory_space<vmem>> -> memref<1x128xf32, #tpu.memory_space<vmem>>
    %121 = tpu.memref_squeeze %120 : memref<1x128xf32, #tpu.memory_space<vmem>> -> memref<128xf32, #tpu.memory_space<vmem>>
    %122 = tpu.memref_slice %arg32[%c1_i32_53] : memref<16x!tpu.dma_semaphore, #tpu.memory_space<semaphore_mem>> -> memref<1x!tpu.dma_semaphore, #tpu.memory_space<semaphore_mem>>
    %123 = tpu.memref_squeeze %122 : memref<1x!tpu.dma_semaphore, #tpu.memory_space<semaphore_mem>> -> memref<!tpu.dma_semaphore, #tpu.memory_space<semaphore_mem>>
    tpu.wait_dma2 semaphore(%123 : memref<!tpu.dma_semaphore, #tpu.memory_space<semaphore_mem>>) src(%119 : memref<128xf32, #tpu.memory_space<any>>) dst(%121 : memref<128xf32, #tpu.memory_space<vmem>>)
    %c2_i32_56 = arith.constant 2 : i32
    %c2_i32_57 = arith.constant 2 : i32
    %c0_i32_58 = arith.constant 0 : i32
    %124 = tpu.memref_slice %arg5[%14, %c0_i32_58] : memref<128x128xf32, #tpu.memory_space<any>> -> memref<1x128xf32, #tpu.memory_space<any>>
    %125 = tpu.memref_squeeze %124 : memref<1x128xf32, #tpu.memory_space<any>> -> memref<128xf32, #tpu.memory_space<any>>
    %c0_i32_59 = arith.constant 0 : i32
    %126 = tpu.memref_slice %arg31[%c2_i32_56, %c0_i32_59] : memref<16x128xf32, #tpu.memory_space<vmem>> -> memref<1x128xf32, #tpu.memory_space<vmem>>
    %127 = tpu.memref_squeeze %126 : memref<1x128xf32, #tpu.memory_space<vmem>> -> memref<128xf32, #tpu.memory_space<vmem>>
    %128 = tpu.memref_slice %arg32[%c2_i32_57] : memref<16x!tpu.dma_semaphore, #tpu.memory_space<semaphore_mem>> -> memref<1x!tpu.dma_semaphore, #tpu.memory_space<semaphore_mem>>
    %129 = tpu.memref_squeeze %128 : memref<1x!tpu.dma_semaphore, #tpu.memory_space<semaphore_mem>> -> memref<!tpu.dma_semaphore, #tpu.memory_space<semaphore_mem>>
    tpu.wait_dma2 semaphore(%129 : memref<!tpu.dma_semaphore, #tpu.memory_space<semaphore_mem>>) src(%125 : memref<128xf32, #tpu.memory_space<any>>) dst(%127 : memref<128xf32, #tpu.memory_space<vmem>>)
    %c3_i32_60 = arith.constant 3 : i32
    %c3_i32_61 = arith.constant 3 : i32
    %c0_i32_62 = arith.constant 0 : i32
    %130 = tpu.memref_slice %arg5[%21, %c0_i32_62] : memref<128x128xf32, #tpu.memory_space<any>> -> memref<1x128xf32, #tpu.memory_space<any>>
    %131 = tpu.memref_squeeze %130 : memref<1x128xf32, #tpu.memory_space<any>> -> memref<128xf32, #tpu.memory_space<any>>
    %c0_i32_63 = arith.constant 0 : i32
    %132 = tpu.memref_slice %arg31[%c3_i32_60, %c0_i32_63] : memref<16x128xf32, #tpu.memory_space<vmem>> -> memref<1x128xf32, #tpu.memory_space<vmem>>
    %133 = tpu.memref_squeeze %132 : memref<1x128xf32, #tpu.memory_space<vmem>> -> memref<128xf32, #tpu.memory_space<vmem>>
    %134 = tpu.memref_slice %arg32[%c3_i32_61] : memref<16x!tpu.dma_semaphore, #tpu.memory_space<semaphore_mem>> -> memref<1x!tpu.dma_semaphore, #tpu.memory_space<semaphore_mem>>
    %135 = tpu.memref_squeeze %134 : memref<1x!tpu.dma_semaphore, #tpu.memory_space<semaphore_mem>> -> memref<!tpu.dma_semaphore, #tpu.memory_space<semaphore_mem>>
    tpu.wait_dma2 semaphore(%135 : memref<!tpu.dma_semaphore, #tpu.memory_space<semaphore_mem>>) src(%131 : memref<128xf32, #tpu.memory_space<any>>) dst(%133 : memref<128xf32, #tpu.memory_space<vmem>>)
    %c4_i32_64 = arith.constant 4 : i32
    %c4_i32_65 = arith.constant 4 : i32
    %c0_i32_66 = arith.constant 0 : i32
    %136 = tpu.memref_slice %arg5[%28, %c0_i32_66] : memref<128x128xf32, #tpu.memory_space<any>> -> memref<1x128xf32, #tpu.memory_space<any>>
    %137 = tpu.memref_squeeze %136 : memref<1x128xf32, #tpu.memory_space<any>> -> memref<128xf32, #tpu.memory_space<any>>
    %c0_i32_67 = arith.constant 0 : i32
    %138 = tpu.memref_slice %arg31[%c4_i32_64, %c0_i32_67] : memref<16x128xf32, #tpu.memory_space<vmem>> -> memref<1x128xf32, #tpu.memory_space<vmem>>
    %139 = tpu.memref_squeeze %138 : memref<1x128xf32, #tpu.memory_space<vmem>> -> memref<128xf32, #tpu.memory_space<vmem>>
    %140 = tpu.memref_slice %arg32[%c4_i32_65] : memref<16x!tpu.dma_semaphore, #tpu.memory_space<semaphore_mem>> -> memref<1x!tpu.dma_semaphore, #tpu.memory_space<semaphore_mem>>
    %141 = tpu.memref_squeeze %140 : memref<1x!tpu.dma_semaphore, #tpu.memory_space<semaphore_mem>> -> memref<!tpu.dma_semaphore, #tpu.memory_space<semaphore_mem>>
    tpu.wait_dma2 semaphore(%141 : memref<!tpu.dma_semaphore, #tpu.memory_space<semaphore_mem>>) src(%137 : memref<128xf32, #tpu.memory_space<any>>) dst(%139 : memref<128xf32, #tpu.memory_space<vmem>>)
    %c5_i32_68 = arith.constant 5 : i32
    %c5_i32_69 = arith.constant 5 : i32
    %c0_i32_70 = arith.constant 0 : i32
    %142 = tpu.memref_slice %arg5[%35, %c0_i32_70] : memref<128x128xf32, #tpu.memory_space<any>> -> memref<1x128xf32, #tpu.memory_space<any>>
    %143 = tpu.memref_squeeze %142 : memref<1x128xf32, #tpu.memory_space<any>> -> memref<128xf32, #tpu.memory_space<any>>
    %c0_i32_71 = arith.constant 0 : i32
    %144 = tpu.memref_slice %arg31[%c5_i32_68, %c0_i32_71] : memref<16x128xf32, #tpu.memory_space<vmem>> -> memref<1x128xf32, #tpu.memory_space<vmem>>
    %145 = tpu.memref_squeeze %144 : memref<1x128xf32, #tpu.memory_space<vmem>> -> memref<128xf32, #tpu.memory_space<vmem>>
    %146 = tpu.memref_slice %arg32[%c5_i32_69] : memref<16x!tpu.dma_semaphore, #tpu.memory_space<semaphore_mem>> -> memref<1x!tpu.dma_semaphore, #tpu.memory_space<semaphore_mem>>
    %147 = tpu.memref_squeeze %146 : memref<1x!tpu.dma_semaphore, #tpu.memory_space<semaphore_mem>> -> memref<!tpu.dma_semaphore, #tpu.memory_space<semaphore_mem>>
    tpu.wait_dma2 semaphore(%147 : memref<!tpu.dma_semaphore, #tpu.memory_space<semaphore_mem>>) src(%143 : memref<128xf32, #tpu.memory_space<any>>) dst(%145 : memref<128xf32, #tpu.memory_space<vmem>>)
    %c6_i32_72 = arith.constant 6 : i32
    %c6_i32_73 = arith.constant 6 : i32
    %c0_i32_74 = arith.constant 0 : i32
    %148 = tpu.memref_slice %arg5[%42, %c0_i32_74] : memref<128x128xf32, #tpu.memory_space<any>> -> memref<1x128xf32, #tpu.memory_space<any>>
    %149 = tpu.memref_squeeze %148 : memref<1x128xf32, #tpu.memory_space<any>> -> memref<128xf32, #tpu.memory_space<any>>
    %c0_i32_75 = arith.constant 0 : i32
    %150 = tpu.memref_slice %arg31[%c6_i32_72, %c0_i32_75] : memref<16x128xf32, #tpu.memory_space<vmem>> -> memref<1x128xf32, #tpu.memory_space<vmem>>
    %151 = tpu.memref_squeeze %150 : memref<1x128xf32, #tpu.memory_space<vmem>> -> memref<128xf32, #tpu.memory_space<vmem>>
    %152 = tpu.memref_slice %arg32[%c6_i32_73] : memref<16x!tpu.dma_semaphore, #tpu.memory_space<semaphore_mem>> -> memref<1x!tpu.dma_semaphore, #tpu.memory_space<semaphore_mem>>
    %153 = tpu.memref_squeeze %152 : memref<1x!tpu.dma_semaphore, #tpu.memory_space<semaphore_mem>> -> memref<!tpu.dma_semaphore, #tpu.memory_space<semaphore_mem>>
    tpu.wait_dma2 semaphore(%153 : memref<!tpu.dma_semaphore, #tpu.memory_space<semaphore_mem>>) src(%149 : memref<128xf32, #tpu.memory_space<any>>) dst(%151 : memref<128xf32, #tpu.memory_space<vmem>>)
    %c7_i32_76 = arith.constant 7 : i32
    %c7_i32_77 = arith.constant 7 : i32
    %c0_i32_78 = arith.constant 0 : i32
    %154 = tpu.memref_slice %arg5[%49, %c0_i32_78] : memref<128x128xf32, #tpu.memory_space<any>> -> memref<1x128xf32, #tpu.memory_space<any>>
    %155 = tpu.memref_squeeze %154 : memref<1x128xf32, #tpu.memory_space<any>> -> memref<128xf32, #tpu.memory_space<any>>
    %c0_i32_79 = arith.constant 0 : i32
    %156 = tpu.memref_slice %arg31[%c7_i32_76, %c0_i32_79] : memref<16x128xf32, #tpu.memory_space<vmem>> -> memref<1x128xf32, #tpu.memory_space<vmem>>
    %157 = tpu.memref_squeeze %156 : memref<1x128xf32, #tpu.memory_space<vmem>> -> memref<128xf32, #tpu.memory_space<vmem>>
    %158 = tpu.memref_slice %arg32[%c7_i32_77] : memref<16x!tpu.dma_semaphore, #tpu.memory_space<semaphore_mem>> -> memref<1x!tpu.dma_semaphore, #tpu.memory_space<semaphore_mem>>
    %159 = tpu.memref_squeeze %158 : memref<1x!tpu.dma_semaphore, #tpu.memory_space<semaphore_mem>> -> memref<!tpu.dma_semaphore, #tpu.memory_space<semaphore_mem>>
    tpu.wait_dma2 semaphore(%159 : memref<!tpu.dma_semaphore, #tpu.memory_space<semaphore_mem>>) src(%155 : memref<128xf32, #tpu.memory_space<any>>) dst(%157 : memref<128xf32, #tpu.memory_space<vmem>>)
    %c8_i32_80 = arith.constant 8 : i32
    %c8_i32_81 = arith.constant 8 : i32
    %c0_i32_82 = arith.constant 0 : i32
    %160 = tpu.memref_slice %arg5[%56, %c0_i32_82] : memref<128x128xf32, #tpu.memory_space<any>> -> memref<1x128xf32, #tpu.memory_space<any>>
    %161 = tpu.memref_squeeze %160 : memref<1x128xf32, #tpu.memory_space<any>> -> memref<128xf32, #tpu.memory_space<any>>
    %c0_i32_83 = arith.constant 0 : i32
    %162 = tpu.memref_slice %arg31[%c8_i32_80, %c0_i32_83] : memref<16x128xf32, #tpu.memory_space<vmem>> -> memref<1x128xf32, #tpu.memory_space<vmem>>
    %163 = tpu.memref_squeeze %162 : memref<1x128xf32, #tpu.memory_space<vmem>> -> memref<128xf32, #tpu.memory_space<vmem>>
    %164 = tpu.memref_slice %arg32[%c8_i32_81] : memref<16x!tpu.dma_semaphore, #tpu.memory_space<semaphore_mem>> -> memref<1x!tpu.dma_semaphore, #tpu.memory_space<semaphore_mem>>
    %165 = tpu.memref_squeeze %164 : memref<1x!tpu.dma_semaphore, #tpu.memory_space<semaphore_mem>> -> memref<!tpu.dma_semaphore, #tpu.memory_space<semaphore_mem>>
    tpu.wait_dma2 semaphore(%165 : memref<!tpu.dma_semaphore, #tpu.memory_space<semaphore_mem>>) src(%161 : memref<128xf32, #tpu.memory_space<any>>) dst(%163 : memref<128xf32, #tpu.memory_space<vmem>>)
    %c9_i32_84 = arith.constant 9 : i32
    %c9_i32_85 = arith.constant 9 : i32
    %c0_i32_86 = arith.constant 0 : i32
    %166 = tpu.memref_slice %arg5[%63, %c0_i32_86] : memref<128x128xf32, #tpu.memory_space<any>> -> memref<1x128xf32, #tpu.memory_space<any>>
    %167 = tpu.memref_squeeze %166 : memref<1x128xf32, #tpu.memory_space<any>> -> memref<128xf32, #tpu.memory_space<any>>
    %c0_i32_87 = arith.constant 0 : i32
    %168 = tpu.memref_slice %arg31[%c9_i32_84, %c0_i32_87] : memref<16x128xf32, #tpu.memory_space<vmem>> -> memref<1x128xf32, #tpu.memory_space<vmem>>
    %169 = tpu.memref_squeeze %168 : memref<1x128xf32, #tpu.memory_space<vmem>> -> memref<128xf32, #tpu.memory_space<vmem>>
    %170 = tpu.memref_slice %arg32[%c9_i32_85] : memref<16x!tpu.dma_semaphore, #tpu.memory_space<semaphore_mem>> -> memref<1x!tpu.dma_semaphore, #tpu.memory_space<semaphore_mem>>
    %171 = tpu.memref_squeeze %170 : memref<1x!tpu.dma_semaphore, #tpu.memory_space<semaphore_mem>> -> memref<!tpu.dma_semaphore, #tpu.memory_space<semaphore_mem>>
    tpu.wait_dma2 semaphore(%171 : memref<!tpu.dma_semaphore, #tpu.memory_space<semaphore_mem>>) src(%167 : memref<128xf32, #tpu.memory_space<any>>) dst(%169 : memref<128xf32, #tpu.memory_space<vmem>>)
    %c10_i32_88 = arith.constant 10 : i32
    %c10_i32_89 = arith.constant 10 : i32
    %c0_i32_90 = arith.constant 0 : i32
    %172 = tpu.memref_slice %arg5[%70, %c0_i32_90] : memref<128x128xf32, #tpu.memory_space<any>> -> memref<1x128xf32, #tpu.memory_space<any>>
    %173 = tpu.memref_squeeze %172 : memref<1x128xf32, #tpu.memory_space<any>> -> memref<128xf32, #tpu.memory_space<any>>
    %c0_i32_91 = arith.constant 0 : i32
    %174 = tpu.memref_slice %arg31[%c10_i32_88, %c0_i32_91] : memref<16x128xf32, #tpu.memory_space<vmem>> -> memref<1x128xf32, #tpu.memory_space<vmem>>
    %175 = tpu.memref_squeeze %174 : memref<1x128xf32, #tpu.memory_space<vmem>> -> memref<128xf32, #tpu.memory_space<vmem>>
    %176 = tpu.memref_slice %arg32[%c10_i32_89] : memref<16x!tpu.dma_semaphore, #tpu.memory_space<semaphore_mem>> -> memref<1x!tpu.dma_semaphore, #tpu.memory_space<semaphore_mem>>
    %177 = tpu.memref_squeeze %176 : memref<1x!tpu.dma_semaphore, #tpu.memory_space<semaphore_mem>> -> memref<!tpu.dma_semaphore, #tpu.memory_space<semaphore_mem>>
    tpu.wait_dma2 semaphore(%177 : memref<!tpu.dma_semaphore, #tpu.memory_space<semaphore_mem>>) src(%173 : memref<128xf32, #tpu.memory_space<any>>) dst(%175 : memref<128xf32, #tpu.memory_space<vmem>>)
    %c11_i32_92 = arith.constant 11 : i32
    %c11_i32_93 = arith.constant 11 : i32
    %c0_i32_94 = arith.constant 0 : i32
    %178 = tpu.memref_slice %arg5[%77, %c0_i32_94] : memref<128x128xf32, #tpu.memory_space<any>> -> memref<1x128xf32, #tpu.memory_space<any>>
    %179 = tpu.memref_squeeze %178 : memref<1x128xf32, #tpu.memory_space<any>> -> memref<128xf32, #tpu.memory_space<any>>
    %c0_i32_95 = arith.constant 0 : i32
    %180 = tpu.memref_slice %arg31[%c11_i32_92, %c0_i32_95] : memref<16x128xf32, #tpu.memory_space<vmem>> -> memref<1x128xf32, #tpu.memory_space<vmem>>
    %181 = tpu.memref_squeeze %180 : memref<1x128xf32, #tpu.memory_space<vmem>> -> memref<128xf32, #tpu.memory_space<vmem>>
    %182 = tpu.memref_slice %arg32[%c11_i32_93] : memref<16x!tpu.dma_semaphore, #tpu.memory_space<semaphore_mem>> -> memref<1x!tpu.dma_semaphore, #tpu.memory_space<semaphore_mem>>
    %183 = tpu.memref_squeeze %182 : memref<1x!tpu.dma_semaphore, #tpu.memory_space<semaphore_mem>> -> memref<!tpu.dma_semaphore, #tpu.memory_space<semaphore_mem>>
    tpu.wait_dma2 semaphore(%183 : memref<!tpu.dma_semaphore, #tpu.memory_space<semaphore_mem>>) src(%179 : memref<128xf32, #tpu.memory_space<any>>) dst(%181 : memref<128xf32, #tpu.memory_space<vmem>>)
    %c12_i32_96 = arith.constant 12 : i32
    %c12_i32_97 = arith.constant 12 : i32
    %c0_i32_98 = arith.constant 0 : i32
    %184 = tpu.memref_slice %arg5[%84, %c0_i32_98] : memref<128x128xf32, #tpu.memory_space<any>> -> memref<1x128xf32, #tpu.memory_space<any>>
    %185 = tpu.memref_squeeze %184 : memref<1x128xf32, #tpu.memory_space<any>> -> memref<128xf32, #tpu.memory_space<any>>
    %c0_i32_99 = arith.constant 0 : i32
    %186 = tpu.memref_slice %arg31[%c12_i32_96, %c0_i32_99] : memref<16x128xf32, #tpu.memory_space<vmem>> -> memref<1x128xf32, #tpu.memory_space<vmem>>
    %187 = tpu.memref_squeeze %186 : memref<1x128xf32, #tpu.memory_space<vmem>> -> memref<128xf32, #tpu.memory_space<vmem>>
    %188 = tpu.memref_slice %arg32[%c12_i32_97] : memref<16x!tpu.dma_semaphore, #tpu.memory_space<semaphore_mem>> -> memref<1x!tpu.dma_semaphore, #tpu.memory_space<semaphore_mem>>
    %189 = tpu.memref_squeeze %188 : memref<1x!tpu.dma_semaphore, #tpu.memory_space<semaphore_mem>> -> memref<!tpu.dma_semaphore, #tpu.memory_space<semaphore_mem>>
    tpu.wait_dma2 semaphore(%189 : memref<!tpu.dma_semaphore, #tpu.memory_space<semaphore_mem>>) src(%185 : memref<128xf32, #tpu.memory_space<any>>) dst(%187 : memref<128xf32, #tpu.memory_space<vmem>>)
    %c13_i32_100 = arith.constant 13 : i32
    %c13_i32_101 = arith.constant 13 : i32
    %c0_i32_102 = arith.constant 0 : i32
    %190 = tpu.memref_slice %arg5[%91, %c0_i32_102] : memref<128x128xf32, #tpu.memory_space<any>> -> memref<1x128xf32, #tpu.memory_space<any>>
    %191 = tpu.memref_squeeze %190 : memref<1x128xf32, #tpu.memory_space<any>> -> memref<128xf32, #tpu.memory_space<any>>
    %c0_i32_103 = arith.constant 0 : i32
    %192 = tpu.memref_slice %arg31[%c13_i32_100, %c0_i32_103] : memref<16x128xf32, #tpu.memory_space<vmem>> -> memref<1x128xf32, #tpu.memory_space<vmem>>
    %193 = tpu.memref_squeeze %192 : memref<1x128xf32, #tpu.memory_space<vmem>> -> memref<128xf32, #tpu.memory_space<vmem>>
    %194 = tpu.memref_slice %arg32[%c13_i32_101] : memref<16x!tpu.dma_semaphore, #tpu.memory_space<semaphore_mem>> -> memref<1x!tpu.dma_semaphore, #tpu.memory_space<semaphore_mem>>
    %195 = tpu.memref_squeeze %194 : memref<1x!tpu.dma_semaphore, #tpu.memory_space<semaphore_mem>> -> memref<!tpu.dma_semaphore, #tpu.memory_space<semaphore_mem>>
    tpu.wait_dma2 semaphore(%195 : memref<!tpu.dma_semaphore, #tpu.memory_space<semaphore_mem>>) src(%191 : memref<128xf32, #tpu.memory_space<any>>) dst(%193 : memref<128xf32, #tpu.memory_space<vmem>>)
    %c14_i32_104 = arith.constant 14 : i32
    %c14_i32_105 = arith.constant 14 : i32
    %c0_i32_106 = arith.constant 0 : i32
    %196 = tpu.memref_slice %arg5[%98, %c0_i32_106] : memref<128x128xf32, #tpu.memory_space<any>> -> memref<1x128xf32, #tpu.memory_space<any>>
    %197 = tpu.memref_squeeze %196 : memref<1x128xf32, #tpu.memory_space<any>> -> memref<128xf32, #tpu.memory_space<any>>
    %c0_i32_107 = arith.constant 0 : i32
    %198 = tpu.memref_slice %arg31[%c14_i32_104, %c0_i32_107] : memref<16x128xf32, #tpu.memory_space<vmem>> -> memref<1x128xf32, #tpu.memory_space<vmem>>
    %199 = tpu.memref_squeeze %198 : memref<1x128xf32, #tpu.memory_space<vmem>> -> memref<128xf32, #tpu.memory_space<vmem>>
    %200 = tpu.memref_slice %arg32[%c14_i32_105] : memref<16x!tpu.dma_semaphore, #tpu.memory_space<semaphore_mem>> -> memref<1x!tpu.dma_semaphore, #tpu.memory_space<semaphore_mem>>
    %201 = tpu.memref_squeeze %200 : memref<1x!tpu.dma_semaphore, #tpu.memory_space<semaphore_mem>> -> memref<!tpu.dma_semaphore, #tpu.memory_space<semaphore_mem>>
    tpu.wait_dma2 semaphore(%201 : memref<!tpu.dma_semaphore, #tpu.memory_space<semaphore_mem>>) src(%197 : memref<128xf32, #tpu.memory_space<any>>) dst(%199 : memref<128xf32, #tpu.memory_space<vmem>>)
    %c15_i32_108 = arith.constant 15 : i32
    %c15_i32_109 = arith.constant 15 : i32
    %c0_i32_110 = arith.constant 0 : i32
    %202 = tpu.memref_slice %arg5[%105, %c0_i32_110] : memref<128x128xf32, #tpu.memory_space<any>> -> memref<1x128xf32, #tpu.memory_space<any>>
    %203 = tpu.memref_squeeze %202 : memref<1x128xf32, #tpu.memory_space<any>> -> memref<128xf32, #tpu.memory_space<any>>
    %c0_i32_111 = arith.constant 0 : i32
    %204 = tpu.memref_slice %arg31[%c15_i32_108, %c0_i32_111] : memref<16x128xf32, #tpu.memory_space<vmem>> -> memref<1x128xf32, #tpu.memory_space<vmem>>
    %205 = tpu.memref_squeeze %204 : memref<1x128xf32, #tpu.memory_space<vmem>> -> memref<128xf32, #tpu.memory_space<vmem>>
    %206 = tpu.memref_slice %arg32[%c15_i32_109] : memref<16x!tpu.dma_semaphore, #tpu.memory_space<semaphore_mem>> -> memref<1x!tpu.dma_semaphore, #tpu.memory_space<semaphore_mem>>
    %207 = tpu.memref_squeeze %206 : memref<1x!tpu.dma_semaphore, #tpu.memory_space<semaphore_mem>> -> memref<!tpu.dma_semaphore, #tpu.memory_space<semaphore_mem>>
    tpu.wait_dma2 semaphore(%207 : memref<!tpu.dma_semaphore, #tpu.memory_space<semaphore_mem>>) src(%203 : memref<128xf32, #tpu.memory_space<any>>) dst(%205 : memref<128xf32, #tpu.memory_space<vmem>>)
    %c0_112 = arith.constant 0 : index
    %c0_113 = arith.constant 0 : index
    %208 = vector.load %arg31[%c0_112, %c0_113] : memref<16x128xf32, #tpu.memory_space<vmem>>, vector<16x128xf32>
    %c0_114 = arith.constant 0 : index
    %c0_115 = arith.constant 0 : index
    %209 = vector.load %arg2[%c0_114, %c0_115] : memref<16x1xf32, #tpu.memory_space<vmem>>, vector<16x1xf32>
    %c0_116 = arith.constant 0 : index
    %c0_117 = arith.constant 0 : index
    %210 = vector.load %arg3[%c0_116, %c0_117] : memref<2x128xf32, #tpu.memory_space<vmem>>, vector<1x128xf32>
    %cst = arith.constant 1.000000e+00 : f32
    %211 = vector.broadcast %cst : f32 to vector<16x1xf32>
    %212 = arith.subf %211, %209 : vector<16x1xf32>
    %213 = vector.broadcast %210 : vector<1x128xf32> to vector<16x128xf32>
    %214 = vector.broadcast %212 : vector<16x1xf32> to vector<16x128xf32>
    %215 = arith.mulf %213, %214 : vector<16x128xf32>
    %c1_118 = arith.constant 1 : index
    %c0_119 = arith.constant 0 : index
    %216 = vector.load %arg3[%c1_118, %c0_119] : memref<2x128xf32, #tpu.memory_space<vmem>>, vector<1x128xf32>
    %217 = vector.broadcast %216 : vector<1x128xf32> to vector<16x128xf32>
    %218 = vector.broadcast %209 : vector<16x1xf32> to vector<16x128xf32>
    %219 = arith.mulf %217, %218 : vector<16x128xf32>
    %220 = arith.addf %215, %219 : vector<16x128xf32>
    %c0_120 = arith.constant 0 : index
    %c0_121 = arith.constant 0 : index
    %221 = vector.load %arg4[%c0_120, %c0_121] : memref<8x128xf32, #tpu.memory_space<vmem>>, vector<8x128xf32>
    %222 = tpu.concatenate %221, %221 in 0 : vector<8x128xf32>, vector<8x128xf32> -> vector<16x128xf32>
    %223 = arith.addf %208, %220 : vector<16x128xf32>
    %224 = arith.addf %223, %222 : vector<16x128xf32>
    %225 = tpu.iota {dimensions = array<i32: 1>} : vector<8x8xi32>
    %226 = arith.truncf %224 : vector<16x128xf32> to vector<16x128xbf16>
    %c0_122 = arith.constant 0 : index
    %c0_123 = arith.constant 0 : index
    %227 = vector.load %arg6[%c0_122, %c0_123] : memref<128x384xbf16, #tpu.memory_space<vmem>>, vector<128x384xbf16>
    %cst_124 = arith.constant dense<0.000000e+00> : vector<16x384xf32>
    %228 = tpu.matmul %226, %227, %cst_124 {dimension_numbers = #tpu.dot_dimension_numbers<[1], [0], [0], [1], [0, 0, 1, 1], [], []>} : vector<16x128xbf16>, vector<128x384xbf16>, vector<16x384xf32> -> vector<16x384xf32>
    %c0_125 = arith.constant 0 : index
    %c0_126 = arith.constant 0 : index
    %229 = vector.load %arg7[%c0_125, %c0_126] : memref<1x384xf32, #tpu.memory_space<vmem>>, vector<1x384xf32>
    %230 = vector.broadcast %229 : vector<1x384xf32> to vector<16x384xf32>
    %231 = arith.addf %228, %230 : vector<16x384xf32>
    %c0_127 = arith.constant 0 : index
    %232 = memref.load %arg1[%c0_127] : memref<2xi32, #tpu.memory_space<smem>>
    %233 = vector.broadcast %232 : i32 to vector<8x8xi32>
    %234 = arith.cmpi slt, %225, %233 : vector<8x8xi32>
    %cst_128 = arith.constant 0.000000e+00 : f32
    %235 = vector.broadcast %cst_128 : f32 to vector<8x128xf32>
    %236 = vector.extract_strided_slice %231 {offsets = [0, 0], sizes = [8, 32], strides = [1, 1]} : vector<16x384xf32> to vector<8x32xf32>
    %237 = arith.truncf %236 : vector<8x32xf32> to vector<8x32xbf16>
    %238 = vector.extract_strided_slice %231 {offsets = [0, 128], sizes = [8, 32], strides = [1, 1]} : vector<16x384xf32> to vector<8x32xf32>
    %239 = arith.truncf %238 : vector<8x32xf32> to vector<8x32xbf16>
    %240 = vector.extract_strided_slice %231 {offsets = [0, 256], sizes = [8, 32], strides = [1, 1]} : vector<16x384xf32> to vector<8x32xf32>
    %241 = arith.truncf %240 : vector<8x32xf32> to vector<8x32xbf16>
    %cst_129 = arith.constant dense<0.000000e+00> : vector<8x8xf32>
    %242 = tpu.matmul %237, %239, %cst_129 {dimension_numbers = #tpu.dot_dimension_numbers<[1], [1], [0], [0], [0, 0, 1, 0], [], []>} : vector<8x32xbf16>, vector<8x32xbf16>, vector<8x8xf32> -> vector<8x8xf32>
    %cst_130 = arith.constant 0.176776692 : f32
    %243 = vector.broadcast %cst_130 : f32 to vector<8x8xf32>
    %244 = arith.mulf %242, %243 : vector<8x8xf32>
    %cst_131 = arith.constant -1.000000e+06 : f32
    %245 = vector.broadcast %cst_131 : f32 to vector<8x8xf32>
    %246 = arith.select %234, %244, %245 : vector<8x8xi1>, vector<8x8xf32>
    %cst_132 = arith.constant dense<0xFF800000> : vector<8xf32>
    %247 = vector.multi_reduction <maximumf>, %246, %cst_132 [1] : vector<8x8xf32> to vector<8xf32>
    %248 = vector.shape_cast %247 : vector<8xf32> to vector<8x1xf32>
    %249 = vector.broadcast %248 : vector<8x1xf32> to vector<8x8xf32>
    %250 = arith.subf %246, %249 : vector<8x8xf32>
    %251 = math.exp %250 : vector<8x8xf32>
    %cst_133 = arith.constant dense<0.000000e+00> : vector<8xf32>
    %252 = vector.multi_reduction <add>, %251, %cst_133 [1] : vector<8x8xf32> to vector<8xf32>
    %253 = vector.shape_cast %252 : vector<8xf32> to vector<8x1xf32>
    %254 = tpu.reciprocal %253 {approx = true} : vector<8x1xf32> -> vector<8x1xf32>
    %255 = vector.broadcast %254 : vector<8x1xf32> to vector<8x8xf32>
    %256 = arith.mulf %251, %255 : vector<8x8xf32>
    %257 = arith.truncf %256 : vector<8x8xf32> to vector<8x8xbf16>
    %cst_134 = arith.constant dense<0.000000e+00> : vector<8x32xf32>
    %258 = tpu.matmul %257, %241, %cst_134 {dimension_numbers = #tpu.dot_dimension_numbers<[1], [0], [0], [1], [0, 0, 1, 1], [], []>} : vector<8x8xbf16>, vector<8x32xbf16>, vector<8x32xf32> -> vector<8x32xf32>
    %259 = arith.truncf %258 : vector<8x32xf32> to vector<8x32xbf16>
    %c0_135 = arith.constant 0 : index
    %c0_136 = arith.constant 0 : index
    %260 = vector.load %arg8[%c0_135, %c0_136] : memref<128x128xbf16, #tpu.memory_space<vmem>>, vector<32x128xbf16>
    %cst_137 = arith.constant dense<0.000000e+00> : vector<8x128xf32>
    %261 = tpu.matmul %259, %260, %cst_137 {dimension_numbers = #tpu.dot_dimension_numbers<[1], [0], [0], [1], [0, 0, 1, 1], [], []>} : vector<8x32xbf16>, vector<32x128xbf16>, vector<8x128xf32> -> vector<8x128xf32>
    %262 = arith.addf %235, %261 : vector<8x128xf32>
    %263 = vector.extract_strided_slice %231 {offsets = [0, 32], sizes = [8, 32], strides = [1, 1]} : vector<16x384xf32> to vector<8x32xf32>
    %264 = arith.truncf %263 : vector<8x32xf32> to vector<8x32xbf16>
    %265 = vector.extract_strided_slice %231 {offsets = [0, 160], sizes = [8, 32], strides = [1, 1]} : vector<16x384xf32> to vector<8x32xf32>
    %266 = arith.truncf %265 : vector<8x32xf32> to vector<8x32xbf16>
    %267 = vector.extract_strided_slice %231 {offsets = [0, 288], sizes = [8, 32], strides = [1, 1]} : vector<16x384xf32> to vector<8x32xf32>
    %268 = arith.truncf %267 : vector<8x32xf32> to vector<8x32xbf16>
    %cst_138 = arith.constant dense<0.000000e+00> : vector<8x8xf32>
    %269 = tpu.matmul %264, %266, %cst_138 {dimension_numbers = #tpu.dot_dimension_numbers<[1], [1], [0], [0], [0, 0, 1, 0], [], []>} : vector<8x32xbf16>, vector<8x32xbf16>, vector<8x8xf32> -> vector<8x8xf32>
    %cst_139 = arith.constant 0.176776692 : f32
    %270 = vector.broadcast %cst_139 : f32 to vector<8x8xf32>
    %271 = arith.mulf %269, %270 : vector<8x8xf32>
    %cst_140 = arith.constant -1.000000e+06 : f32
    %272 = vector.broadcast %cst_140 : f32 to vector<8x8xf32>
    %273 = arith.select %234, %271, %272 : vector<8x8xi1>, vector<8x8xf32>
    %cst_141 = arith.constant dense<0xFF800000> : vector<8xf32>
    %274 = vector.multi_reduction <maximumf>, %273, %cst_141 [1] : vector<8x8xf32> to vector<8xf32>
    %275 = vector.shape_cast %274 : vector<8xf32> to vector<8x1xf32>
    %276 = vector.broadcast %275 : vector<8x1xf32> to vector<8x8xf32>
    %277 = arith.subf %273, %276 : vector<8x8xf32>
    %278 = math.exp %277 : vector<8x8xf32>
    %cst_142 = arith.constant dense<0.000000e+00> : vector<8xf32>
    %279 = vector.multi_reduction <add>, %278, %cst_142 [1] : vector<8x8xf32> to vector<8xf32>
    %280 = vector.shape_cast %279 : vector<8xf32> to vector<8x1xf32>
    %281 = tpu.reciprocal %280 {approx = true} : vector<8x1xf32> -> vector<8x1xf32>
    %282 = vector.broadcast %281 : vector<8x1xf32> to vector<8x8xf32>
    %283 = arith.mulf %278, %282 : vector<8x8xf32>
    %284 = arith.truncf %283 : vector<8x8xf32> to vector<8x8xbf16>
    %cst_143 = arith.constant dense<0.000000e+00> : vector<8x32xf32>
    %285 = tpu.matmul %284, %268, %cst_143 {dimension_numbers = #tpu.dot_dimension_numbers<[1], [0], [0], [1], [0, 0, 1, 1], [], []>} : vector<8x8xbf16>, vector<8x32xbf16>, vector<8x32xf32> -> vector<8x32xf32>
    %286 = arith.truncf %285 : vector<8x32xf32> to vector<8x32xbf16>
    %c32 = arith.constant 32 : index
    %c0_144 = arith.constant 0 : index
    %287 = vector.load %arg8[%c32, %c0_144] : memref<128x128xbf16, #tpu.memory_space<vmem>>, vector<32x128xbf16>
    %cst_145 = arith.constant dense<0.000000e+00> : vector<8x128xf32>
    %288 = tpu.matmul %286, %287, %cst_145 {dimension_numbers = #tpu.dot_dimension_numbers<[1], [0], [0], [1], [0, 0, 1, 1], [], []>} : vector<8x32xbf16>, vector<32x128xbf16>, vector<8x128xf32> -> vector<8x128xf32>
    %289 = arith.addf %262, %288 : vector<8x128xf32>
    %290 = vector.extract_strided_slice %231 {offsets = [0, 64], sizes = [8, 32], strides = [1, 1]} : vector<16x384xf32> to vector<8x32xf32>
    %291 = arith.truncf %290 : vector<8x32xf32> to vector<8x32xbf16>
    %292 = vector.extract_strided_slice %231 {offsets = [0, 192], sizes = [8, 32], strides = [1, 1]} : vector<16x384xf32> to vector<8x32xf32>
    %293 = arith.truncf %292 : vector<8x32xf32> to vector<8x32xbf16>
    %294 = vector.extract_strided_slice %231 {offsets = [0, 320], sizes = [8, 32], strides = [1, 1]} : vector<16x384xf32> to vector<8x32xf32>
    %295 = arith.truncf %294 : vector<8x32xf32> to vector<8x32xbf16>
    %cst_146 = arith.constant dense<0.000000e+00> : vector<8x8xf32>
    %296 = tpu.matmul %291, %293, %cst_146 {dimension_numbers = #tpu.dot_dimension_numbers<[1], [1], [0], [0], [0, 0, 1, 0], [], []>} : vector<8x32xbf16>, vector<8x32xbf16>, vector<8x8xf32> -> vector<8x8xf32>
    %cst_147 = arith.constant 0.176776692 : f32
    %297 = vector.broadcast %cst_147 : f32 to vector<8x8xf32>
    %298 = arith.mulf %296, %297 : vector<8x8xf32>
    %cst_148 = arith.constant -1.000000e+06 : f32
    %299 = vector.broadcast %cst_148 : f32 to vector<8x8xf32>
    %300 = arith.select %234, %298, %299 : vector<8x8xi1>, vector<8x8xf32>
    %cst_149 = arith.constant dense<0xFF800000> : vector<8xf32>
    %301 = vector.multi_reduction <maximumf>, %300, %cst_149 [1] : vector<8x8xf32> to vector<8xf32>
    %302 = vector.shape_cast %301 : vector<8xf32> to vector<8x1xf32>
    %303 = vector.broadcast %302 : vector<8x1xf32> to vector<8x8xf32>
    %304 = arith.subf %300, %303 : vector<8x8xf32>
    %305 = math.exp %304 : vector<8x8xf32>
    %cst_150 = arith.constant dense<0.000000e+00> : vector<8xf32>
    %306 = vector.multi_reduction <add>, %305, %cst_150 [1] : vector<8x8xf32> to vector<8xf32>
    %307 = vector.shape_cast %306 : vector<8xf32> to vector<8x1xf32>
    %308 = tpu.reciprocal %307 {approx = true} : vector<8x1xf32> -> vector<8x1xf32>
    %309 = vector.broadcast %308 : vector<8x1xf32> to vector<8x8xf32>
    %310 = arith.mulf %305, %309 : vector<8x8xf32>
    %311 = arith.truncf %310 : vector<8x8xf32> to vector<8x8xbf16>
    %cst_151 = arith.constant dense<0.000000e+00> : vector<8x32xf32>
    %312 = tpu.matmul %311, %295, %cst_151 {dimension_numbers = #tpu.dot_dimension_numbers<[1], [0], [0], [1], [0, 0, 1, 1], [], []>} : vector<8x8xbf16>, vector<8x32xbf16>, vector<8x32xf32> -> vector<8x32xf32>
    %313 = arith.truncf %312 : vector<8x32xf32> to vector<8x32xbf16>
    %c64 = arith.constant 64 : index
    %c0_152 = arith.constant 0 : index
    %314 = vector.load %arg8[%c64, %c0_152] : memref<128x128xbf16, #tpu.memory_space<vmem>>, vector<32x128xbf16>
    %cst_153 = arith.constant dense<0.000000e+00> : vector<8x128xf32>
    %315 = tpu.matmul %313, %314, %cst_153 {dimension_numbers = #tpu.dot_dimension_numbers<[1], [0], [0], [1], [0, 0, 1, 1], [], []>} : vector<8x32xbf16>, vector<32x128xbf16>, vector<8x128xf32> -> vector<8x128xf32>
    %316 = arith.addf %289, %315 : vector<8x128xf32>
    %317 = vector.extract_strided_slice %231 {offsets = [0, 96], sizes = [8, 32], strides = [1, 1]} : vector<16x384xf32> to vector<8x32xf32>
    %318 = arith.truncf %317 : vector<8x32xf32> to vector<8x32xbf16>
    %319 = vector.extract_strided_slice %231 {offsets = [0, 224], sizes = [8, 32], strides = [1, 1]} : vector<16x384xf32> to vector<8x32xf32>
    %320 = arith.truncf %319 : vector<8x32xf32> to vector<8x32xbf16>
    %321 = vector.extract_strided_slice %231 {offsets = [0, 352], sizes = [8, 32], strides = [1, 1]} : vector<16x384xf32> to vector<8x32xf32>
    %322 = arith.truncf %321 : vector<8x32xf32> to vector<8x32xbf16>
    %cst_154 = arith.constant dense<0.000000e+00> : vector<8x8xf32>
    %323 = tpu.matmul %318, %320, %cst_154 {dimension_numbers = #tpu.dot_dimension_numbers<[1], [1], [0], [0], [0, 0, 1, 0], [], []>} : vector<8x32xbf16>, vector<8x32xbf16>, vector<8x8xf32> -> vector<8x8xf32>
    %cst_155 = arith.constant 0.176776692 : f32
    %324 = vector.broadcast %cst_155 : f32 to vector<8x8xf32>
    %325 = arith.mulf %323, %324 : vector<8x8xf32>
    %cst_156 = arith.constant -1.000000e+06 : f32
    %326 = vector.broadcast %cst_156 : f32 to vector<8x8xf32>
    %327 = arith.select %234, %325, %326 : vector<8x8xi1>, vector<8x8xf32>
    %cst_157 = arith.constant dense<0xFF800000> : vector<8xf32>
    %328 = vector.multi_reduction <maximumf>, %327, %cst_157 [1] : vector<8x8xf32> to vector<8xf32>
    %329 = vector.shape_cast %328 : vector<8xf32> to vector<8x1xf32>
    %330 = vector.broadcast %329 : vector<8x1xf32> to vector<8x8xf32>
    %331 = arith.subf %327, %330 : vector<8x8xf32>
    %332 = math.exp %331 : vector<8x8xf32>
    %cst_158 = arith.constant dense<0.000000e+00> : vector<8xf32>
    %333 = vector.multi_reduction <add>, %332, %cst_158 [1] : vector<8x8xf32> to vector<8xf32>
    %334 = vector.shape_cast %333 : vector<8xf32> to vector<8x1xf32>
    %335 = tpu.reciprocal %334 {approx = true} : vector<8x1xf32> -> vector<8x1xf32>
    %336 = vector.broadcast %335 : vector<8x1xf32> to vector<8x8xf32>
    %337 = arith.mulf %332, %336 : vector<8x8xf32>
    %338 = arith.truncf %337 : vector<8x8xf32> to vector<8x8xbf16>
    %cst_159 = arith.constant dense<0.000000e+00> : vector<8x32xf32>
    %339 = tpu.matmul %338, %322, %cst_159 {dimension_numbers = #tpu.dot_dimension_numbers<[1], [0], [0], [1], [0, 0, 1, 1], [], []>} : vector<8x8xbf16>, vector<8x32xbf16>, vector<8x32xf32> -> vector<8x32xf32>
    %340 = arith.truncf %339 : vector<8x32xf32> to vector<8x32xbf16>
    %c96 = arith.constant 96 : index
    %c0_160 = arith.constant 0 : index
    %341 = vector.load %arg8[%c96, %c0_160] : memref<128x128xbf16, #tpu.memory_space<vmem>>, vector<32x128xbf16>
    %cst_161 = arith.constant dense<0.000000e+00> : vector<8x128xf32>
    %342 = tpu.matmul %340, %341, %cst_161 {dimension_numbers = #tpu.dot_dimension_numbers<[1], [0], [0], [1], [0, 0, 1, 1], [], []>} : vector<8x32xbf16>, vector<32x128xbf16>, vector<8x128xf32> -> vector<8x128xf32>
    %343 = arith.addf %316, %342 : vector<8x128xf32>
    %c1_162 = arith.constant 1 : index
    %344 = memref.load %arg1[%c1_162] : memref<2xi32, #tpu.memory_space<smem>>
    %345 = vector.broadcast %344 : i32 to vector<8x8xi32>
    %346 = arith.cmpi slt, %225, %345 : vector<8x8xi32>
    %cst_163 = arith.constant 0.000000e+00 : f32
    %347 = vector.broadcast %cst_163 : f32 to vector<8x128xf32>
    %348 = vector.extract_strided_slice %231 {offsets = [8, 0], sizes = [8, 32], strides = [1, 1]} : vector<16x384xf32> to vector<8x32xf32>
    %349 = arith.truncf %348 : vector<8x32xf32> to vector<8x32xbf16>
    %350 = vector.extract_strided_slice %231 {offsets = [8, 128], sizes = [8, 32], strides = [1, 1]} : vector<16x384xf32> to vector<8x32xf32>
    %351 = arith.truncf %350 : vector<8x32xf32> to vector<8x32xbf16>
    %352 = vector.extract_strided_slice %231 {offsets = [8, 256], sizes = [8, 32], strides = [1, 1]} : vector<16x384xf32> to vector<8x32xf32>
    %353 = arith.truncf %352 : vector<8x32xf32> to vector<8x32xbf16>
    %cst_164 = arith.constant dense<0.000000e+00> : vector<8x8xf32>
    %354 = tpu.matmul %349, %351, %cst_164 {dimension_numbers = #tpu.dot_dimension_numbers<[1], [1], [0], [0], [0, 0, 1, 0], [], []>} : vector<8x32xbf16>, vector<8x32xbf16>, vector<8x8xf32> -> vector<8x8xf32>
    %cst_165 = arith.constant 0.176776692 : f32
    %355 = vector.broadcast %cst_165 : f32 to vector<8x8xf32>
    %356 = arith.mulf %354, %355 : vector<8x8xf32>
    %cst_166 = arith.constant -1.000000e+06 : f32
    %357 = vector.broadcast %cst_166 : f32 to vector<8x8xf32>
    %358 = arith.select %346, %356, %357 : vector<8x8xi1>, vector<8x8xf32>
    %cst_167 = arith.constant dense<0xFF800000> : vector<8xf32>
    %359 = vector.multi_reduction <maximumf>, %358, %cst_167 [1] : vector<8x8xf32> to vector<8xf32>
    %360 = vector.shape_cast %359 : vector<8xf32> to vector<8x1xf32>
    %361 = vector.broadcast %360 : vector<8x1xf32> to vector<8x8xf32>
    %362 = arith.subf %358, %361 : vector<8x8xf32>
    %363 = math.exp %362 : vector<8x8xf32>
    %cst_168 = arith.constant dense<0.000000e+00> : vector<8xf32>
    %364 = vector.multi_reduction <add>, %363, %cst_168 [1] : vector<8x8xf32> to vector<8xf32>
    %365 = vector.shape_cast %364 : vector<8xf32> to vector<8x1xf32>
    %366 = tpu.reciprocal %365 {approx = true} : vector<8x1xf32> -> vector<8x1xf32>
    %367 = vector.broadcast %366 : vector<8x1xf32> to vector<8x8xf32>
    %368 = arith.mulf %363, %367 : vector<8x8xf32>
    %369 = arith.truncf %368 : vector<8x8xf32> to vector<8x8xbf16>
    %cst_169 = arith.constant dense<0.000000e+00> : vector<8x32xf32>
    %370 = tpu.matmul %369, %353, %cst_169 {dimension_numbers = #tpu.dot_dimension_numbers<[1], [0], [0], [1], [0, 0, 1, 1], [], []>} : vector<8x8xbf16>, vector<8x32xbf16>, vector<8x32xf32> -> vector<8x32xf32>
    %371 = arith.truncf %370 : vector<8x32xf32> to vector<8x32xbf16>
    %c0_170 = arith.constant 0 : index
    %c0_171 = arith.constant 0 : index
    %372 = vector.load %arg8[%c0_170, %c0_171] : memref<128x128xbf16, #tpu.memory_space<vmem>>, vector<32x128xbf16>
    %cst_172 = arith.constant dense<0.000000e+00> : vector<8x128xf32>
    %373 = tpu.matmul %371, %372, %cst_172 {dimension_numbers = #tpu.dot_dimension_numbers<[1], [0], [0], [1], [0, 0, 1, 1], [], []>} : vector<8x32xbf16>, vector<32x128xbf16>, vector<8x128xf32> -> vector<8x128xf32>
    %374 = arith.addf %347, %373 : vector<8x128xf32>
    %375 = vector.extract_strided_slice %231 {offsets = [8, 32], sizes = [8, 32], strides = [1, 1]} : vector<16x384xf32> to vector<8x32xf32>
    %376 = arith.truncf %375 : vector<8x32xf32> to vector<8x32xbf16>
    %377 = vector.extract_strided_slice %231 {offsets = [8, 160], sizes = [8, 32], strides = [1, 1]} : vector<16x384xf32> to vector<8x32xf32>
    %378 = arith.truncf %377 : vector<8x32xf32> to vector<8x32xbf16>
    %379 = vector.extract_strided_slice %231 {offsets = [8, 288], sizes = [8, 32], strides = [1, 1]} : vector<16x384xf32> to vector<8x32xf32>
    %380 = arith.truncf %379 : vector<8x32xf32> to vector<8x32xbf16>
    %cst_173 = arith.constant dense<0.000000e+00> : vector<8x8xf32>
    %381 = tpu.matmul %376, %378, %cst_173 {dimension_numbers = #tpu.dot_dimension_numbers<[1], [1], [0], [0], [0, 0, 1, 0], [], []>} : vector<8x32xbf16>, vector<8x32xbf16>, vector<8x8xf32> -> vector<8x8xf32>
    %cst_174 = arith.constant 0.176776692 : f32
    %382 = vector.broadcast %cst_174 : f32 to vector<8x8xf32>
    %383 = arith.mulf %381, %382 : vector<8x8xf32>
    %cst_175 = arith.constant -1.000000e+06 : f32
    %384 = vector.broadcast %cst_175 : f32 to vector<8x8xf32>
    %385 = arith.select %346, %383, %384 : vector<8x8xi1>, vector<8x8xf32>
    %cst_176 = arith.constant dense<0xFF800000> : vector<8xf32>
    %386 = vector.multi_reduction <maximumf>, %385, %cst_176 [1] : vector<8x8xf32> to vector<8xf32>
    %387 = vector.shape_cast %386 : vector<8xf32> to vector<8x1xf32>
    %388 = vector.broadcast %387 : vector<8x1xf32> to vector<8x8xf32>
    %389 = arith.subf %385, %388 : vector<8x8xf32>
    %390 = math.exp %389 : vector<8x8xf32>
    %cst_177 = arith.constant dense<0.000000e+00> : vector<8xf32>
    %391 = vector.multi_reduction <add>, %390, %cst_177 [1] : vector<8x8xf32> to vector<8xf32>
    %392 = vector.shape_cast %391 : vector<8xf32> to vector<8x1xf32>
    %393 = tpu.reciprocal %392 {approx = true} : vector<8x1xf32> -> vector<8x1xf32>
    %394 = vector.broadcast %393 : vector<8x1xf32> to vector<8x8xf32>
    %395 = arith.mulf %390, %394 : vector<8x8xf32>
    %396 = arith.truncf %395 : vector<8x8xf32> to vector<8x8xbf16>
    %cst_178 = arith.constant dense<0.000000e+00> : vector<8x32xf32>
    %397 = tpu.matmul %396, %380, %cst_178 {dimension_numbers = #tpu.dot_dimension_numbers<[1], [0], [0], [1], [0, 0, 1, 1], [], []>} : vector<8x8xbf16>, vector<8x32xbf16>, vector<8x32xf32> -> vector<8x32xf32>
    %398 = arith.truncf %397 : vector<8x32xf32> to vector<8x32xbf16>
    %c32_179 = arith.constant 32 : index
    %c0_180 = arith.constant 0 : index
    %399 = vector.load %arg8[%c32_179, %c0_180] : memref<128x128xbf16, #tpu.memory_space<vmem>>, vector<32x128xbf16>
    %cst_181 = arith.constant dense<0.000000e+00> : vector<8x128xf32>
    %400 = tpu.matmul %398, %399, %cst_181 {dimension_numbers = #tpu.dot_dimension_numbers<[1], [0], [0], [1], [0, 0, 1, 1], [], []>} : vector<8x32xbf16>, vector<32x128xbf16>, vector<8x128xf32> -> vector<8x128xf32>
    %401 = arith.addf %374, %400 : vector<8x128xf32>
    %402 = vector.extract_strided_slice %231 {offsets = [8, 64], sizes = [8, 32], strides = [1, 1]} : vector<16x384xf32> to vector<8x32xf32>
    %403 = arith.truncf %402 : vector<8x32xf32> to vector<8x32xbf16>
    %404 = vector.extract_strided_slice %231 {offsets = [8, 192], sizes = [8, 32], strides = [1, 1]} : vector<16x384xf32> to vector<8x32xf32>
    %405 = arith.truncf %404 : vector<8x32xf32> to vector<8x32xbf16>
    %406 = vector.extract_strided_slice %231 {offsets = [8, 320], sizes = [8, 32], strides = [1, 1]} : vector<16x384xf32> to vector<8x32xf32>
    %407 = arith.truncf %406 : vector<8x32xf32> to vector<8x32xbf16>
    %cst_182 = arith.constant dense<0.000000e+00> : vector<8x8xf32>
    %408 = tpu.matmul %403, %405, %cst_182 {dimension_numbers = #tpu.dot_dimension_numbers<[1], [1], [0], [0], [0, 0, 1, 0], [], []>} : vector<8x32xbf16>, vector<8x32xbf16>, vector<8x8xf32> -> vector<8x8xf32>
    %cst_183 = arith.constant 0.176776692 : f32
    %409 = vector.broadcast %cst_183 : f32 to vector<8x8xf32>
    %410 = arith.mulf %408, %409 : vector<8x8xf32>
    %cst_184 = arith.constant -1.000000e+06 : f32
    %411 = vector.broadcast %cst_184 : f32 to vector<8x8xf32>
    %412 = arith.select %346, %410, %411 : vector<8x8xi1>, vector<8x8xf32>
    %cst_185 = arith.constant dense<0xFF800000> : vector<8xf32>
    %413 = vector.multi_reduction <maximumf>, %412, %cst_185 [1] : vector<8x8xf32> to vector<8xf32>
    %414 = vector.shape_cast %413 : vector<8xf32> to vector<8x1xf32>
    %415 = vector.broadcast %414 : vector<8x1xf32> to vector<8x8xf32>
    %416 = arith.subf %412, %415 : vector<8x8xf32>
    %417 = math.exp %416 : vector<8x8xf32>
    %cst_186 = arith.constant dense<0.000000e+00> : vector<8xf32>
    %418 = vector.multi_reduction <add>, %417, %cst_186 [1] : vector<8x8xf32> to vector<8xf32>
    %419 = vector.shape_cast %418 : vector<8xf32> to vector<8x1xf32>
    %420 = tpu.reciprocal %419 {approx = true} : vector<8x1xf32> -> vector<8x1xf32>
    %421 = vector.broadcast %420 : vector<8x1xf32> to vector<8x8xf32>
    %422 = arith.mulf %417, %421 : vector<8x8xf32>
    %423 = arith.truncf %422 : vector<8x8xf32> to vector<8x8xbf16>
    %cst_187 = arith.constant dense<0.000000e+00> : vector<8x32xf32>
    %424 = tpu.matmul %423, %407, %cst_187 {dimension_numbers = #tpu.dot_dimension_numbers<[1], [0], [0], [1], [0, 0, 1, 1], [], []>} : vector<8x8xbf16>, vector<8x32xbf16>, vector<8x32xf32> -> vector<8x32xf32>
    %425 = arith.truncf %424 : vector<8x32xf32> to vector<8x32xbf16>
    %c64_188 = arith.constant 64 : index
    %c0_189 = arith.constant 0 : index
    %426 = vector.load %arg8[%c64_188, %c0_189] : memref<128x128xbf16, #tpu.memory_space<vmem>>, vector<32x128xbf16>
    %cst_190 = arith.constant dense<0.000000e+00> : vector<8x128xf32>
    %427 = tpu.matmul %425, %426, %cst_190 {dimension_numbers = #tpu.dot_dimension_numbers<[1], [0], [0], [1], [0, 0, 1, 1], [], []>} : vector<8x32xbf16>, vector<32x128xbf16>, vector<8x128xf32> -> vector<8x128xf32>
    %428 = arith.addf %401, %427 : vector<8x128xf32>
    %429 = vector.extract_strided_slice %231 {offsets = [8, 96], sizes = [8, 32], strides = [1, 1]} : vector<16x384xf32> to vector<8x32xf32>
    %430 = arith.truncf %429 : vector<8x32xf32> to vector<8x32xbf16>
    %431 = vector.extract_strided_slice %231 {offsets = [8, 224], sizes = [8, 32], strides = [1, 1]} : vector<16x384xf32> to vector<8x32xf32>
    %432 = arith.truncf %431 : vector<8x32xf32> to vector<8x32xbf16>
    %433 = vector.extract_strided_slice %231 {offsets = [8, 352], sizes = [8, 32], strides = [1, 1]} : vector<16x384xf32> to vector<8x32xf32>
    %434 = arith.truncf %433 : vector<8x32xf32> to vector<8x32xbf16>
    %cst_191 = arith.constant dense<0.000000e+00> : vector<8x8xf32>
    %435 = tpu.matmul %430, %432, %cst_191 {dimension_numbers = #tpu.dot_dimension_numbers<[1], [1], [0], [0], [0, 0, 1, 0], [], []>} : vector<8x32xbf16>, vector<8x32xbf16>, vector<8x8xf32> -> vector<8x8xf32>
    %cst_192 = arith.constant 0.176776692 : f32
    %436 = vector.broadcast %cst_192 : f32 to vector<8x8xf32>
    %437 = arith.mulf %435, %436 : vector<8x8xf32>
    %cst_193 = arith.constant -1.000000e+06 : f32
    %438 = vector.broadcast %cst_193 : f32 to vector<8x8xf32>
    %439 = arith.select %346, %437, %438 : vector<8x8xi1>, vector<8x8xf32>
    %cst_194 = arith.constant dense<0xFF800000> : vector<8xf32>
    %440 = vector.multi_reduction <maximumf>, %439, %cst_194 [1] : vector<8x8xf32> to vector<8xf32>
    %441 = vector.shape_cast %440 : vector<8xf32> to vector<8x1xf32>
    %442 = vector.broadcast %441 : vector<8x1xf32> to vector<8x8xf32>
    %443 = arith.subf %439, %442 : vector<8x8xf32>
    %444 = math.exp %443 : vector<8x8xf32>
    %cst_195 = arith.constant dense<0.000000e+00> : vector<8xf32>
    %445 = vector.multi_reduction <add>, %444, %cst_195 [1] : vector<8x8xf32> to vector<8xf32>
    %446 = vector.shape_cast %445 : vector<8xf32> to vector<8x1xf32>
    %447 = tpu.reciprocal %446 {approx = true} : vector<8x1xf32> -> vector<8x1xf32>
    %448 = vector.broadcast %447 : vector<8x1xf32> to vector<8x8xf32>
    %449 = arith.mulf %444, %448 : vector<8x8xf32>
    %450 = arith.truncf %449 : vector<8x8xf32> to vector<8x8xbf16>
    %cst_196 = arith.constant dense<0.000000e+00> : vector<8x32xf32>
    %451 = tpu.matmul %450, %434, %cst_196 {dimension_numbers = #tpu.dot_dimension_numbers<[1], [0], [0], [1], [0, 0, 1, 1], [], []>} : vector<8x8xbf16>, vector<8x32xbf16>, vector<8x32xf32> -> vector<8x32xf32>
    %452 = arith.truncf %451 : vector<8x32xf32> to vector<8x32xbf16>
    %c96_197 = arith.constant 96 : index
    %c0_198 = arith.constant 0 : index
    %453 = vector.load %arg8[%c96_197, %c0_198] : memref<128x128xbf16, #tpu.memory_space<vmem>>, vector<32x128xbf16>
    %cst_199 = arith.constant dense<0.000000e+00> : vector<8x128xf32>
    %454 = tpu.matmul %452, %453, %cst_199 {dimension_numbers = #tpu.dot_dimension_numbers<[1], [0], [0], [1], [0, 0, 1, 1], [], []>} : vector<8x32xbf16>, vector<32x128xbf16>, vector<8x128xf32> -> vector<8x128xf32>
    %455 = arith.addf %428, %454 : vector<8x128xf32>
    %456 = tpu.concatenate %343, %455 in 0 : vector<8x128xf32>, vector<8x128xf32> -> vector<16x128xf32>
    %c0_200 = arith.constant 0 : index
    %c0_201 = arith.constant 0 : index
    %457 = vector.load %arg9[%c0_200, %c0_201] : memref<1x128xf32, #tpu.memory_space<vmem>>, vector<1x128xf32>
    %458 = vector.broadcast %457 : vector<1x128xf32> to vector<16x128xf32>
    %459 = arith.addf %456, %458 : vector<16x128xf32>
    %460 = arith.addf %459, %224 : vector<16x128xf32>
    %c0_202 = arith.constant 0 : index
    %c0_203 = arith.constant 0 : index
    %461 = vector.load %arg10[%c0_202, %c0_203] : memref<1x128xf32, #tpu.memory_space<vmem>>, vector<1x128xf32>
    %c0_204 = arith.constant 0 : index
    %c0_205 = arith.constant 0 : index
    %462 = vector.load %arg11[%c0_204, %c0_205] : memref<1x128xf32, #tpu.memory_space<vmem>>, vector<1x128xf32>
    %cst_206 = arith.constant dense<0.000000e+00> : vector<16xf32>
    %463 = vector.multi_reduction <add>, %460, %cst_206 [1] : vector<16x128xf32> to vector<16xf32>
    %464 = vector.shape_cast %463 : vector<16xf32> to vector<16x1xf32>
    %cst_207 = arith.constant 1.280000e+02 : f32
    %465 = vector.broadcast %cst_207 : f32 to vector<16x1xf32>
    %466 = arith.divf %464, %465 : vector<16x1xf32>
    %467 = vector.broadcast %466 : vector<16x1xf32> to vector<16x128xf32>
    %468 = arith.subf %460, %467 : vector<16x128xf32>
    %469 = arith.mulf %468, %468 : vector<16x128xf32>
    %cst_208 = arith.constant dense<0.000000e+00> : vector<16xf32>
    %470 = vector.multi_reduction <add>, %469, %cst_208 [1] : vector<16x128xf32> to vector<16xf32>
    %471 = vector.shape_cast %470 : vector<16xf32> to vector<16x1xf32>
    %cst_209 = arith.constant 1.280000e+02 : f32
    %472 = vector.broadcast %cst_209 : f32 to vector<16x1xf32>
    %473 = arith.divf %471, %472 : vector<16x1xf32>
    %474 = vector.broadcast %466 : vector<16x1xf32> to vector<16x128xf32>
    %475 = arith.subf %460, %474 : vector<16x128xf32>
    %cst_210 = arith.constant 9.99999974E-6 : f32
    %476 = vector.broadcast %cst_210 : f32 to vector<16x1xf32>
    %477 = arith.addf %473, %476 : vector<16x1xf32>
    %478 = math.rsqrt %477 : vector<16x1xf32>
    %479 = vector.broadcast %478 : vector<16x1xf32> to vector<16x128xf32>
    %480 = arith.mulf %475, %479 : vector<16x128xf32>
    %481 = vector.broadcast %461 : vector<1x128xf32> to vector<16x128xf32>
    %482 = arith.mulf %480, %481 : vector<16x128xf32>
    %483 = vector.broadcast %462 : vector<1x128xf32> to vector<16x128xf32>
    %484 = arith.addf %482, %483 : vector<16x128xf32>
    %485 = arith.truncf %484 : vector<16x128xf32> to vector<16x128xbf16>
    %c0_211 = arith.constant 0 : index
    %c0_212 = arith.constant 0 : index
    %486 = vector.load %arg12[%c0_211, %c0_212] : memref<128x256xbf16, #tpu.memory_space<vmem>>, vector<128x256xbf16>
    %cst_213 = arith.constant dense<0.000000e+00> : vector<16x256xf32>
    %487 = tpu.matmul %485, %486, %cst_213 {dimension_numbers = #tpu.dot_dimension_numbers<[1], [0], [0], [1], [0, 0, 1, 1], [], []>} : vector<16x128xbf16>, vector<128x256xbf16>, vector<16x256xf32> -> vector<16x256xf32>
    %c0_214 = arith.constant 0 : index
    %c0_215 = arith.constant 0 : index
    %488 = vector.load %arg13[%c0_214, %c0_215] : memref<1x256xf32, #tpu.memory_space<vmem>>, vector<1x256xf32>
    %489 = vector.broadcast %488 : vector<1x256xf32> to vector<16x256xf32>
    %490 = arith.addf %487, %489 : vector<16x256xf32>
    %cst_216 = arith.constant 0.000000e+00 : f32
    %491 = vector.broadcast %cst_216 : f32 to vector<16x256xf32>
    %492 = arith.maximumf %490, %491 : vector<16x256xf32>
    %493 = arith.truncf %492 : vector<16x256xf32> to vector<16x256xbf16>
    %c0_217 = arith.constant 0 : index
    %c0_218 = arith.constant 0 : index
    %494 = vector.load %arg14[%c0_217, %c0_218] : memref<256x128xbf16, #tpu.memory_space<vmem>>, vector<256x128xbf16>
    %cst_219 = arith.constant dense<0.000000e+00> : vector<16x128xf32>
    %495 = tpu.matmul %493, %494, %cst_219 {dimension_numbers = #tpu.dot_dimension_numbers<[1], [0], [0], [1], [0, 0, 1, 1], [], []>} : vector<16x256xbf16>, vector<256x128xbf16>, vector<16x128xf32> -> vector<16x128xf32>
    %c0_220 = arith.constant 0 : index
    %c0_221 = arith.constant 0 : index
    %496 = vector.load %arg15[%c0_220, %c0_221] : memref<1x128xf32, #tpu.memory_space<vmem>>, vector<1x128xf32>
    %497 = vector.broadcast %496 : vector<1x128xf32> to vector<16x128xf32>
    %498 = arith.addf %495, %497 : vector<16x128xf32>
    %499 = arith.addf %498, %484 : vector<16x128xf32>
    %c0_222 = arith.constant 0 : index
    %c0_223 = arith.constant 0 : index
    %500 = vector.load %arg16[%c0_222, %c0_223] : memref<1x128xf32, #tpu.memory_space<vmem>>, vector<1x128xf32>
    %c0_224 = arith.constant 0 : index
    %c0_225 = arith.constant 0 : index
    %501 = vector.load %arg17[%c0_224, %c0_225] : memref<1x128xf32, #tpu.memory_space<vmem>>, vector<1x128xf32>
    %cst_226 = arith.constant dense<0.000000e+00> : vector<16xf32>
    %502 = vector.multi_reduction <add>, %499, %cst_226 [1] : vector<16x128xf32> to vector<16xf32>
    %503 = vector.shape_cast %502 : vector<16xf32> to vector<16x1xf32>
    %cst_227 = arith.constant 1.280000e+02 : f32
    %504 = vector.broadcast %cst_227 : f32 to vector<16x1xf32>
    %505 = arith.divf %503, %504 : vector<16x1xf32>
    %506 = vector.broadcast %505 : vector<16x1xf32> to vector<16x128xf32>
    %507 = arith.subf %499, %506 : vector<16x128xf32>
    %508 = arith.mulf %507, %507 : vector<16x128xf32>
    %cst_228 = arith.constant dense<0.000000e+00> : vector<16xf32>
    %509 = vector.multi_reduction <add>, %508, %cst_228 [1] : vector<16x128xf32> to vector<16xf32>
    %510 = vector.shape_cast %509 : vector<16xf32> to vector<16x1xf32>
    %cst_229 = arith.constant 1.280000e+02 : f32
    %511 = vector.broadcast %cst_229 : f32 to vector<16x1xf32>
    %512 = arith.divf %510, %511 : vector<16x1xf32>
    %513 = vector.broadcast %505 : vector<16x1xf32> to vector<16x128xf32>
    %514 = arith.subf %499, %513 : vector<16x128xf32>
    %cst_230 = arith.constant 9.99999974E-6 : f32
    %515 = vector.broadcast %cst_230 : f32 to vector<16x1xf32>
    %516 = arith.addf %512, %515 : vector<16x1xf32>
    %517 = math.rsqrt %516 : vector<16x1xf32>
    %518 = vector.broadcast %517 : vector<16x1xf32> to vector<16x128xf32>
    %519 = arith.mulf %514, %518 : vector<16x128xf32>
    %520 = vector.broadcast %500 : vector<1x128xf32> to vector<16x128xf32>
    %521 = arith.mulf %519, %520 : vector<16x128xf32>
    %522 = vector.broadcast %501 : vector<1x128xf32> to vector<16x128xf32>
    %523 = arith.addf %521, %522 : vector<16x128xf32>
    %524 = arith.truncf %523 : vector<16x128xf32> to vector<16x128xbf16>
    %c0_231 = arith.constant 0 : index
    %c0_232 = arith.constant 0 : index
    %525 = vector.load %arg18[%c0_231, %c0_232] : memref<128x384xbf16, #tpu.memory_space<vmem>>, vector<128x384xbf16>
    %cst_233 = arith.constant dense<0.000000e+00> : vector<16x384xf32>
    %526 = tpu.matmul %524, %525, %cst_233 {dimension_numbers = #tpu.dot_dimension_numbers<[1], [0], [0], [1], [0, 0, 1, 1], [], []>} : vector<16x128xbf16>, vector<128x384xbf16>, vector<16x384xf32> -> vector<16x384xf32>
    %c0_234 = arith.constant 0 : index
    %c0_235 = arith.constant 0 : index
    %527 = vector.load %arg19[%c0_234, %c0_235] : memref<1x384xf32, #tpu.memory_space<vmem>>, vector<1x384xf32>
    %528 = vector.broadcast %527 : vector<1x384xf32> to vector<16x384xf32>
    %529 = arith.addf %526, %528 : vector<16x384xf32>
    %c0_236 = arith.constant 0 : index
    %530 = memref.load %arg1[%c0_236] : memref<2xi32, #tpu.memory_space<smem>>
    %531 = vector.broadcast %530 : i32 to vector<8x8xi32>
    %532 = arith.cmpi slt, %225, %531 : vector<8x8xi32>
    %cst_237 = arith.constant 0.000000e+00 : f32
    %533 = vector.broadcast %cst_237 : f32 to vector<8x128xf32>
    %534 = vector.extract_strided_slice %529 {offsets = [0, 0], sizes = [8, 32], strides = [1, 1]} : vector<16x384xf32> to vector<8x32xf32>
    %535 = arith.truncf %534 : vector<8x32xf32> to vector<8x32xbf16>
    %536 = vector.extract_strided_slice %529 {offsets = [0, 128], sizes = [8, 32], strides = [1, 1]} : vector<16x384xf32> to vector<8x32xf32>
    %537 = arith.truncf %536 : vector<8x32xf32> to vector<8x32xbf16>
    %538 = vector.extract_strided_slice %529 {offsets = [0, 256], sizes = [8, 32], strides = [1, 1]} : vector<16x384xf32> to vector<8x32xf32>
    %539 = arith.truncf %538 : vector<8x32xf32> to vector<8x32xbf16>
    %cst_238 = arith.constant dense<0.000000e+00> : vector<8x8xf32>
    %540 = tpu.matmul %535, %537, %cst_238 {dimension_numbers = #tpu.dot_dimension_numbers<[1], [1], [0], [0], [0, 0, 1, 0], [], []>} : vector<8x32xbf16>, vector<8x32xbf16>, vector<8x8xf32> -> vector<8x8xf32>
    %cst_239 = arith.constant 0.176776692 : f32
    %541 = vector.broadcast %cst_239 : f32 to vector<8x8xf32>
    %542 = arith.mulf %540, %541 : vector<8x8xf32>
    %cst_240 = arith.constant -1.000000e+06 : f32
    %543 = vector.broadcast %cst_240 : f32 to vector<8x8xf32>
    %544 = arith.select %532, %542, %543 : vector<8x8xi1>, vector<8x8xf32>
    %cst_241 = arith.constant dense<0xFF800000> : vector<8xf32>
    %545 = vector.multi_reduction <maximumf>, %544, %cst_241 [1] : vector<8x8xf32> to vector<8xf32>
    %546 = vector.shape_cast %545 : vector<8xf32> to vector<8x1xf32>
    %547 = vector.broadcast %546 : vector<8x1xf32> to vector<8x8xf32>
    %548 = arith.subf %544, %547 : vector<8x8xf32>
    %549 = math.exp %548 : vector<8x8xf32>
    %cst_242 = arith.constant dense<0.000000e+00> : vector<8xf32>
    %550 = vector.multi_reduction <add>, %549, %cst_242 [1] : vector<8x8xf32> to vector<8xf32>
    %551 = vector.shape_cast %550 : vector<8xf32> to vector<8x1xf32>
    %552 = tpu.reciprocal %551 {approx = true} : vector<8x1xf32> -> vector<8x1xf32>
    %553 = vector.broadcast %552 : vector<8x1xf32> to vector<8x8xf32>
    %554 = arith.mulf %549, %553 : vector<8x8xf32>
    %555 = arith.truncf %554 : vector<8x8xf32> to vector<8x8xbf16>
    %cst_243 = arith.constant dense<0.000000e+00> : vector<8x32xf32>
    %556 = tpu.matmul %555, %539, %cst_243 {dimension_numbers = #tpu.dot_dimension_numbers<[1], [0], [0], [1], [0, 0, 1, 1], [], []>} : vector<8x8xbf16>, vector<8x32xbf16>, vector<8x32xf32> -> vector<8x32xf32>
    %557 = arith.truncf %556 : vector<8x32xf32> to vector<8x32xbf16>
    %c0_244 = arith.constant 0 : index
    %c0_245 = arith.constant 0 : index
    %558 = vector.load %arg20[%c0_244, %c0_245] : memref<128x128xbf16, #tpu.memory_space<vmem>>, vector<32x128xbf16>
    %cst_246 = arith.constant dense<0.000000e+00> : vector<8x128xf32>
    %559 = tpu.matmul %557, %558, %cst_246 {dimension_numbers = #tpu.dot_dimension_numbers<[1], [0], [0], [1], [0, 0, 1, 1], [], []>} : vector<8x32xbf16>, vector<32x128xbf16>, vector<8x128xf32> -> vector<8x128xf32>
    %560 = arith.addf %533, %559 : vector<8x128xf32>
    %561 = vector.extract_strided_slice %529 {offsets = [0, 32], sizes = [8, 32], strides = [1, 1]} : vector<16x384xf32> to vector<8x32xf32>
    %562 = arith.truncf %561 : vector<8x32xf32> to vector<8x32xbf16>
    %563 = vector.extract_strided_slice %529 {offsets = [0, 160], sizes = [8, 32], strides = [1, 1]} : vector<16x384xf32> to vector<8x32xf32>
    %564 = arith.truncf %563 : vector<8x32xf32> to vector<8x32xbf16>
    %565 = vector.extract_strided_slice %529 {offsets = [0, 288], sizes = [8, 32], strides = [1, 1]} : vector<16x384xf32> to vector<8x32xf32>
    %566 = arith.truncf %565 : vector<8x32xf32> to vector<8x32xbf16>
    %cst_247 = arith.constant dense<0.000000e+00> : vector<8x8xf32>
    %567 = tpu.matmul %562, %564, %cst_247 {dimension_numbers = #tpu.dot_dimension_numbers<[1], [1], [0], [0], [0, 0, 1, 0], [], []>} : vector<8x32xbf16>, vector<8x32xbf16>, vector<8x8xf32> -> vector<8x8xf32>
    %cst_248 = arith.constant 0.176776692 : f32
    %568 = vector.broadcast %cst_248 : f32 to vector<8x8xf32>
    %569 = arith.mulf %567, %568 : vector<8x8xf32>
    %cst_249 = arith.constant -1.000000e+06 : f32
    %570 = vector.broadcast %cst_249 : f32 to vector<8x8xf32>
    %571 = arith.select %532, %569, %570 : vector<8x8xi1>, vector<8x8xf32>
    %cst_250 = arith.constant dense<0xFF800000> : vector<8xf32>
    %572 = vector.multi_reduction <maximumf>, %571, %cst_250 [1] : vector<8x8xf32> to vector<8xf32>
    %573 = vector.shape_cast %572 : vector<8xf32> to vector<8x1xf32>
    %574 = vector.broadcast %573 : vector<8x1xf32> to vector<8x8xf32>
    %575 = arith.subf %571, %574 : vector<8x8xf32>
    %576 = math.exp %575 : vector<8x8xf32>
    %cst_251 = arith.constant dense<0.000000e+00> : vector<8xf32>
    %577 = vector.multi_reduction <add>, %576, %cst_251 [1] : vector<8x8xf32> to vector<8xf32>
    %578 = vector.shape_cast %577 : vector<8xf32> to vector<8x1xf32>
    %579 = tpu.reciprocal %578 {approx = true} : vector<8x1xf32> -> vector<8x1xf32>
    %580 = vector.broadcast %579 : vector<8x1xf32> to vector<8x8xf32>
    %581 = arith.mulf %576, %580 : vector<8x8xf32>
    %582 = arith.truncf %581 : vector<8x8xf32> to vector<8x8xbf16>
    %cst_252 = arith.constant dense<0.000000e+00> : vector<8x32xf32>
    %583 = tpu.matmul %582, %566, %cst_252 {dimension_numbers = #tpu.dot_dimension_numbers<[1], [0], [0], [1], [0, 0, 1, 1], [], []>} : vector<8x8xbf16>, vector<8x32xbf16>, vector<8x32xf32> -> vector<8x32xf32>
    %584 = arith.truncf %583 : vector<8x32xf32> to vector<8x32xbf16>
    %c32_253 = arith.constant 32 : index
    %c0_254 = arith.constant 0 : index
    %585 = vector.load %arg20[%c32_253, %c0_254] : memref<128x128xbf16, #tpu.memory_space<vmem>>, vector<32x128xbf16>
    %cst_255 = arith.constant dense<0.000000e+00> : vector<8x128xf32>
    %586 = tpu.matmul %584, %585, %cst_255 {dimension_numbers = #tpu.dot_dimension_numbers<[1], [0], [0], [1], [0, 0, 1, 1], [], []>} : vector<8x32xbf16>, vector<32x128xbf16>, vector<8x128xf32> -> vector<8x128xf32>
    %587 = arith.addf %560, %586 : vector<8x128xf32>
    %588 = vector.extract_strided_slice %529 {offsets = [0, 64], sizes = [8, 32], strides = [1, 1]} : vector<16x384xf32> to vector<8x32xf32>
    %589 = arith.truncf %588 : vector<8x32xf32> to vector<8x32xbf16>
    %590 = vector.extract_strided_slice %529 {offsets = [0, 192], sizes = [8, 32], strides = [1, 1]} : vector<16x384xf32> to vector<8x32xf32>
    %591 = arith.truncf %590 : vector<8x32xf32> to vector<8x32xbf16>
    %592 = vector.extract_strided_slice %529 {offsets = [0, 320], sizes = [8, 32], strides = [1, 1]} : vector<16x384xf32> to vector<8x32xf32>
    %593 = arith.truncf %592 : vector<8x32xf32> to vector<8x32xbf16>
    %cst_256 = arith.constant dense<0.000000e+00> : vector<8x8xf32>
    %594 = tpu.matmul %589, %591, %cst_256 {dimension_numbers = #tpu.dot_dimension_numbers<[1], [1], [0], [0], [0, 0, 1, 0], [], []>} : vector<8x32xbf16>, vector<8x32xbf16>, vector<8x8xf32> -> vector<8x8xf32>
    %cst_257 = arith.constant 0.176776692 : f32
    %595 = vector.broadcast %cst_257 : f32 to vector<8x8xf32>
    %596 = arith.mulf %594, %595 : vector<8x8xf32>
    %cst_258 = arith.constant -1.000000e+06 : f32
    %597 = vector.broadcast %cst_258 : f32 to vector<8x8xf32>
    %598 = arith.select %532, %596, %597 : vector<8x8xi1>, vector<8x8xf32>
    %cst_259 = arith.constant dense<0xFF800000> : vector<8xf32>
    %599 = vector.multi_reduction <maximumf>, %598, %cst_259 [1] : vector<8x8xf32> to vector<8xf32>
    %600 = vector.shape_cast %599 : vector<8xf32> to vector<8x1xf32>
    %601 = vector.broadcast %600 : vector<8x1xf32> to vector<8x8xf32>
    %602 = arith.subf %598, %601 : vector<8x8xf32>
    %603 = math.exp %602 : vector<8x8xf32>
    %cst_260 = arith.constant dense<0.000000e+00> : vector<8xf32>
    %604 = vector.multi_reduction <add>, %603, %cst_260 [1] : vector<8x8xf32> to vector<8xf32>
    %605 = vector.shape_cast %604 : vector<8xf32> to vector<8x1xf32>
    %606 = tpu.reciprocal %605 {approx = true} : vector<8x1xf32> -> vector<8x1xf32>
    %607 = vector.broadcast %606 : vector<8x1xf32> to vector<8x8xf32>
    %608 = arith.mulf %603, %607 : vector<8x8xf32>
    %609 = arith.truncf %608 : vector<8x8xf32> to vector<8x8xbf16>
    %cst_261 = arith.constant dense<0.000000e+00> : vector<8x32xf32>
    %610 = tpu.matmul %609, %593, %cst_261 {dimension_numbers = #tpu.dot_dimension_numbers<[1], [0], [0], [1], [0, 0, 1, 1], [], []>} : vector<8x8xbf16>, vector<8x32xbf16>, vector<8x32xf32> -> vector<8x32xf32>
    %611 = arith.truncf %610 : vector<8x32xf32> to vector<8x32xbf16>
    %c64_262 = arith.constant 64 : index
    %c0_263 = arith.constant 0 : index
    %612 = vector.load %arg20[%c64_262, %c0_263] : memref<128x128xbf16, #tpu.memory_space<vmem>>, vector<32x128xbf16>
    %cst_264 = arith.constant dense<0.000000e+00> : vector<8x128xf32>
    %613 = tpu.matmul %611, %612, %cst_264 {dimension_numbers = #tpu.dot_dimension_numbers<[1], [0], [0], [1], [0, 0, 1, 1], [], []>} : vector<8x32xbf16>, vector<32x128xbf16>, vector<8x128xf32> -> vector<8x128xf32>
    %614 = arith.addf %587, %613 : vector<8x128xf32>
    %615 = vector.extract_strided_slice %529 {offsets = [0, 96], sizes = [8, 32], strides = [1, 1]} : vector<16x384xf32> to vector<8x32xf32>
    %616 = arith.truncf %615 : vector<8x32xf32> to vector<8x32xbf16>
    %617 = vector.extract_strided_slice %529 {offsets = [0, 224], sizes = [8, 32], strides = [1, 1]} : vector<16x384xf32> to vector<8x32xf32>
    %618 = arith.truncf %617 : vector<8x32xf32> to vector<8x32xbf16>
    %619 = vector.extract_strided_slice %529 {offsets = [0, 352], sizes = [8, 32], strides = [1, 1]} : vector<16x384xf32> to vector<8x32xf32>
    %620 = arith.truncf %619 : vector<8x32xf32> to vector<8x32xbf16>
    %cst_265 = arith.constant dense<0.000000e+00> : vector<8x8xf32>
    %621 = tpu.matmul %616, %618, %cst_265 {dimension_numbers = #tpu.dot_dimension_numbers<[1], [1], [0], [0], [0, 0, 1, 0], [], []>} : vector<8x32xbf16>, vector<8x32xbf16>, vector<8x8xf32> -> vector<8x8xf32>
    %cst_266 = arith.constant 0.176776692 : f32
    %622 = vector.broadcast %cst_266 : f32 to vector<8x8xf32>
    %623 = arith.mulf %621, %622 : vector<8x8xf32>
    %cst_267 = arith.constant -1.000000e+06 : f32
    %624 = vector.broadcast %cst_267 : f32 to vector<8x8xf32>
    %625 = arith.select %532, %623, %624 : vector<8x8xi1>, vector<8x8xf32>
    %cst_268 = arith.constant dense<0xFF800000> : vector<8xf32>
    %626 = vector.multi_reduction <maximumf>, %625, %cst_268 [1] : vector<8x8xf32> to vector<8xf32>
    %627 = vector.shape_cast %626 : vector<8xf32> to vector<8x1xf32>
    %628 = vector.broadcast %627 : vector<8x1xf32> to vector<8x8xf32>
    %629 = arith.subf %625, %628 : vector<8x8xf32>
    %630 = math.exp %629 : vector<8x8xf32>
    %cst_269 = arith.constant dense<0.000000e+00> : vector<8xf32>
    %631 = vector.multi_reduction <add>, %630, %cst_269 [1] : vector<8x8xf32> to vector<8xf32>
    %632 = vector.shape_cast %631 : vector<8xf32> to vector<8x1xf32>
    %633 = tpu.reciprocal %632 {approx = true} : vector<8x1xf32> -> vector<8x1xf32>
    %634 = vector.broadcast %633 : vector<8x1xf32> to vector<8x8xf32>
    %635 = arith.mulf %630, %634 : vector<8x8xf32>
    %636 = arith.truncf %635 : vector<8x8xf32> to vector<8x8xbf16>
    %cst_270 = arith.constant dense<0.000000e+00> : vector<8x32xf32>
    %637 = tpu.matmul %636, %620, %cst_270 {dimension_numbers = #tpu.dot_dimension_numbers<[1], [0], [0], [1], [0, 0, 1, 1], [], []>} : vector<8x8xbf16>, vector<8x32xbf16>, vector<8x32xf32> -> vector<8x32xf32>
    %638 = arith.truncf %637 : vector<8x32xf32> to vector<8x32xbf16>
    %c96_271 = arith.constant 96 : index
    %c0_272 = arith.constant 0 : index
    %639 = vector.load %arg20[%c96_271, %c0_272] : memref<128x128xbf16, #tpu.memory_space<vmem>>, vector<32x128xbf16>
    %cst_273 = arith.constant dense<0.000000e+00> : vector<8x128xf32>
    %640 = tpu.matmul %638, %639, %cst_273 {dimension_numbers = #tpu.dot_dimension_numbers<[1], [0], [0], [1], [0, 0, 1, 1], [], []>} : vector<8x32xbf16>, vector<32x128xbf16>, vector<8x128xf32> -> vector<8x128xf32>
    %641 = arith.addf %614, %640 : vector<8x128xf32>
    %c1_274 = arith.constant 1 : index
    %642 = memref.load %arg1[%c1_274] : memref<2xi32, #tpu.memory_space<smem>>
    %643 = vector.broadcast %642 : i32 to vector<8x8xi32>
    %644 = arith.cmpi slt, %225, %643 : vector<8x8xi32>
    %cst_275 = arith.constant 0.000000e+00 : f32
    %645 = vector.broadcast %cst_275 : f32 to vector<8x128xf32>
    %646 = vector.extract_strided_slice %529 {offsets = [8, 0], sizes = [8, 32], strides = [1, 1]} : vector<16x384xf32> to vector<8x32xf32>
    %647 = arith.truncf %646 : vector<8x32xf32> to vector<8x32xbf16>
    %648 = vector.extract_strided_slice %529 {offsets = [8, 128], sizes = [8, 32], strides = [1, 1]} : vector<16x384xf32> to vector<8x32xf32>
    %649 = arith.truncf %648 : vector<8x32xf32> to vector<8x32xbf16>
    %650 = vector.extract_strided_slice %529 {offsets = [8, 256], sizes = [8, 32], strides = [1, 1]} : vector<16x384xf32> to vector<8x32xf32>
    %651 = arith.truncf %650 : vector<8x32xf32> to vector<8x32xbf16>
    %cst_276 = arith.constant dense<0.000000e+00> : vector<8x8xf32>
    %652 = tpu.matmul %647, %649, %cst_276 {dimension_numbers = #tpu.dot_dimension_numbers<[1], [1], [0], [0], [0, 0, 1, 0], [], []>} : vector<8x32xbf16>, vector<8x32xbf16>, vector<8x8xf32> -> vector<8x8xf32>
    %cst_277 = arith.constant 0.176776692 : f32
    %653 = vector.broadcast %cst_277 : f32 to vector<8x8xf32>
    %654 = arith.mulf %652, %653 : vector<8x8xf32>
    %cst_278 = arith.constant -1.000000e+06 : f32
    %655 = vector.broadcast %cst_278 : f32 to vector<8x8xf32>
    %656 = arith.select %644, %654, %655 : vector<8x8xi1>, vector<8x8xf32>
    %cst_279 = arith.constant dense<0xFF800000> : vector<8xf32>
    %657 = vector.multi_reduction <maximumf>, %656, %cst_279 [1] : vector<8x8xf32> to vector<8xf32>
    %658 = vector.shape_cast %657 : vector<8xf32> to vector<8x1xf32>
    %659 = vector.broadcast %658 : vector<8x1xf32> to vector<8x8xf32>
    %660 = arith.subf %656, %659 : vector<8x8xf32>
    %661 = math.exp %660 : vector<8x8xf32>
    %cst_280 = arith.constant dense<0.000000e+00> : vector<8xf32>
    %662 = vector.multi_reduction <add>, %661, %cst_280 [1] : vector<8x8xf32> to vector<8xf32>
    %663 = vector.shape_cast %662 : vector<8xf32> to vector<8x1xf32>
    %664 = tpu.reciprocal %663 {approx = true} : vector<8x1xf32> -> vector<8x1xf32>
    %665 = vector.broadcast %664 : vector<8x1xf32> to vector<8x8xf32>
    %666 = arith.mulf %661, %665 : vector<8x8xf32>
    %667 = arith.truncf %666 : vector<8x8xf32> to vector<8x8xbf16>
    %cst_281 = arith.constant dense<0.000000e+00> : vector<8x32xf32>
    %668 = tpu.matmul %667, %651, %cst_281 {dimension_numbers = #tpu.dot_dimension_numbers<[1], [0], [0], [1], [0, 0, 1, 1], [], []>} : vector<8x8xbf16>, vector<8x32xbf16>, vector<8x32xf32> -> vector<8x32xf32>
    %669 = arith.truncf %668 : vector<8x32xf32> to vector<8x32xbf16>
    %c0_282 = arith.constant 0 : index
    %c0_283 = arith.constant 0 : index
    %670 = vector.load %arg20[%c0_282, %c0_283] : memref<128x128xbf16, #tpu.memory_space<vmem>>, vector<32x128xbf16>
    %cst_284 = arith.constant dense<0.000000e+00> : vector<8x128xf32>
    %671 = tpu.matmul %669, %670, %cst_284 {dimension_numbers = #tpu.dot_dimension_numbers<[1], [0], [0], [1], [0, 0, 1, 1], [], []>} : vector<8x32xbf16>, vector<32x128xbf16>, vector<8x128xf32> -> vector<8x128xf32>
    %672 = arith.addf %645, %671 : vector<8x128xf32>
    %673 = vector.extract_strided_slice %529 {offsets = [8, 32], sizes = [8, 32], strides = [1, 1]} : vector<16x384xf32> to vector<8x32xf32>
    %674 = arith.truncf %673 : vector<8x32xf32> to vector<8x32xbf16>
    %675 = vector.extract_strided_slice %529 {offsets = [8, 160], sizes = [8, 32], strides = [1, 1]} : vector<16x384xf32> to vector<8x32xf32>
    %676 = arith.truncf %675 : vector<8x32xf32> to vector<8x32xbf16>
    %677 = vector.extract_strided_slice %529 {offsets = [8, 288], sizes = [8, 32], strides = [1, 1]} : vector<16x384xf32> to vector<8x32xf32>
    %678 = arith.truncf %677 : vector<8x32xf32> to vector<8x32xbf16>
    %cst_285 = arith.constant dense<0.000000e+00> : vector<8x8xf32>
    %679 = tpu.matmul %674, %676, %cst_285 {dimension_numbers = #tpu.dot_dimension_numbers<[1], [1], [0], [0], [0, 0, 1, 0], [], []>} : vector<8x32xbf16>, vector<8x32xbf16>, vector<8x8xf32> -> vector<8x8xf32>
    %cst_286 = arith.constant 0.176776692 : f32
    %680 = vector.broadcast %cst_286 : f32 to vector<8x8xf32>
    %681 = arith.mulf %679, %680 : vector<8x8xf32>
    %cst_287 = arith.constant -1.000000e+06 : f32
    %682 = vector.broadcast %cst_287 : f32 to vector<8x8xf32>
    %683 = arith.select %644, %681, %682 : vector<8x8xi1>, vector<8x8xf32>
    %cst_288 = arith.constant dense<0xFF800000> : vector<8xf32>
    %684 = vector.multi_reduction <maximumf>, %683, %cst_288 [1] : vector<8x8xf32> to vector<8xf32>
    %685 = vector.shape_cast %684 : vector<8xf32> to vector<8x1xf32>
    %686 = vector.broadcast %685 : vector<8x1xf32> to vector<8x8xf32>
    %687 = arith.subf %683, %686 : vector<8x8xf32>
    %688 = math.exp %687 : vector<8x8xf32>
    %cst_289 = arith.constant dense<0.000000e+00> : vector<8xf32>
    %689 = vector.multi_reduction <add>, %688, %cst_289 [1] : vector<8x8xf32> to vector<8xf32>
    %690 = vector.shape_cast %689 : vector<8xf32> to vector<8x1xf32>
    %691 = tpu.reciprocal %690 {approx = true} : vector<8x1xf32> -> vector<8x1xf32>
    %692 = vector.broadcast %691 : vector<8x1xf32> to vector<8x8xf32>
    %693 = arith.mulf %688, %692 : vector<8x8xf32>
    %694 = arith.truncf %693 : vector<8x8xf32> to vector<8x8xbf16>
    %cst_290 = arith.constant dense<0.000000e+00> : vector<8x32xf32>
    %695 = tpu.matmul %694, %678, %cst_290 {dimension_numbers = #tpu.dot_dimension_numbers<[1], [0], [0], [1], [0, 0, 1, 1], [], []>} : vector<8x8xbf16>, vector<8x32xbf16>, vector<8x32xf32> -> vector<8x32xf32>
    %696 = arith.truncf %695 : vector<8x32xf32> to vector<8x32xbf16>
    %c32_291 = arith.constant 32 : index
    %c0_292 = arith.constant 0 : index
    %697 = vector.load %arg20[%c32_291, %c0_292] : memref<128x128xbf16, #tpu.memory_space<vmem>>, vector<32x128xbf16>
    %cst_293 = arith.constant dense<0.000000e+00> : vector<8x128xf32>
    %698 = tpu.matmul %696, %697, %cst_293 {dimension_numbers = #tpu.dot_dimension_numbers<[1], [0], [0], [1], [0, 0, 1, 1], [], []>} : vector<8x32xbf16>, vector<32x128xbf16>, vector<8x128xf32> -> vector<8x128xf32>
    %699 = arith.addf %672, %698 : vector<8x128xf32>
    %700 = vector.extract_strided_slice %529 {offsets = [8, 64], sizes = [8, 32], strides = [1, 1]} : vector<16x384xf32> to vector<8x32xf32>
    %701 = arith.truncf %700 : vector<8x32xf32> to vector<8x32xbf16>
    %702 = vector.extract_strided_slice %529 {offsets = [8, 192], sizes = [8, 32], strides = [1, 1]} : vector<16x384xf32> to vector<8x32xf32>
    %703 = arith.truncf %702 : vector<8x32xf32> to vector<8x32xbf16>
    %704 = vector.extract_strided_slice %529 {offsets = [8, 320], sizes = [8, 32], strides = [1, 1]} : vector<16x384xf32> to vector<8x32xf32>
    %705 = arith.truncf %704 : vector<8x32xf32> to vector<8x32xbf16>
    %cst_294 = arith.constant dense<0.000000e+00> : vector<8x8xf32>
    %706 = tpu.matmul %701, %703, %cst_294 {dimension_numbers = #tpu.dot_dimension_numbers<[1], [1], [0], [0], [0, 0, 1, 0], [], []>} : vector<8x32xbf16>, vector<8x32xbf16>, vector<8x8xf32> -> vector<8x8xf32>
    %cst_295 = arith.constant 0.176776692 : f32
    %707 = vector.broadcast %cst_295 : f32 to vector<8x8xf32>
    %708 = arith.mulf %706, %707 : vector<8x8xf32>
    %cst_296 = arith.constant -1.000000e+06 : f32
    %709 = vector.broadcast %cst_296 : f32 to vector<8x8xf32>
    %710 = arith.select %644, %708, %709 : vector<8x8xi1>, vector<8x8xf32>
    %cst_297 = arith.constant dense<0xFF800000> : vector<8xf32>
    %711 = vector.multi_reduction <maximumf>, %710, %cst_297 [1] : vector<8x8xf32> to vector<8xf32>
    %712 = vector.shape_cast %711 : vector<8xf32> to vector<8x1xf32>
    %713 = vector.broadcast %712 : vector<8x1xf32> to vector<8x8xf32>
    %714 = arith.subf %710, %713 : vector<8x8xf32>
    %715 = math.exp %714 : vector<8x8xf32>
    %cst_298 = arith.constant dense<0.000000e+00> : vector<8xf32>
    %716 = vector.multi_reduction <add>, %715, %cst_298 [1] : vector<8x8xf32> to vector<8xf32>
    %717 = vector.shape_cast %716 : vector<8xf32> to vector<8x1xf32>
    %718 = tpu.reciprocal %717 {approx = true} : vector<8x1xf32> -> vector<8x1xf32>
    %719 = vector.broadcast %718 : vector<8x1xf32> to vector<8x8xf32>
    %720 = arith.mulf %715, %719 : vector<8x8xf32>
    %721 = arith.truncf %720 : vector<8x8xf32> to vector<8x8xbf16>
    %cst_299 = arith.constant dense<0.000000e+00> : vector<8x32xf32>
    %722 = tpu.matmul %721, %705, %cst_299 {dimension_numbers = #tpu.dot_dimension_numbers<[1], [0], [0], [1], [0, 0, 1, 1], [], []>} : vector<8x8xbf16>, vector<8x32xbf16>, vector<8x32xf32> -> vector<8x32xf32>
    %723 = arith.truncf %722 : vector<8x32xf32> to vector<8x32xbf16>
    %c64_300 = arith.constant 64 : index
    %c0_301 = arith.constant 0 : index
    %724 = vector.load %arg20[%c64_300, %c0_301] : memref<128x128xbf16, #tpu.memory_space<vmem>>, vector<32x128xbf16>
    %cst_302 = arith.constant dense<0.000000e+00> : vector<8x128xf32>
    %725 = tpu.matmul %723, %724, %cst_302 {dimension_numbers = #tpu.dot_dimension_numbers<[1], [0], [0], [1], [0, 0, 1, 1], [], []>} : vector<8x32xbf16>, vector<32x128xbf16>, vector<8x128xf32> -> vector<8x128xf32>
    %726 = arith.addf %699, %725 : vector<8x128xf32>
    %727 = vector.extract_strided_slice %529 {offsets = [8, 96], sizes = [8, 32], strides = [1, 1]} : vector<16x384xf32> to vector<8x32xf32>
    %728 = arith.truncf %727 : vector<8x32xf32> to vector<8x32xbf16>
    %729 = vector.extract_strided_slice %529 {offsets = [8, 224], sizes = [8, 32], strides = [1, 1]} : vector<16x384xf32> to vector<8x32xf32>
    %730 = arith.truncf %729 : vector<8x32xf32> to vector<8x32xbf16>
    %731 = vector.extract_strided_slice %529 {offsets = [8, 352], sizes = [8, 32], strides = [1, 1]} : vector<16x384xf32> to vector<8x32xf32>
    %732 = arith.truncf %731 : vector<8x32xf32> to vector<8x32xbf16>
    %cst_303 = arith.constant dense<0.000000e+00> : vector<8x8xf32>
    %733 = tpu.matmul %728, %730, %cst_303 {dimension_numbers = #tpu.dot_dimension_numbers<[1], [1], [0], [0], [0, 0, 1, 0], [], []>} : vector<8x32xbf16>, vector<8x32xbf16>, vector<8x8xf32> -> vector<8x8xf32>
    %cst_304 = arith.constant 0.176776692 : f32
    %734 = vector.broadcast %cst_304 : f32 to vector<8x8xf32>
    %735 = arith.mulf %733, %734 : vector<8x8xf32>
    %cst_305 = arith.constant -1.000000e+06 : f32
    %736 = vector.broadcast %cst_305 : f32 to vector<8x8xf32>
    %737 = arith.select %644, %735, %736 : vector<8x8xi1>, vector<8x8xf32>
    %cst_306 = arith.constant dense<0xFF800000> : vector<8xf32>
    %738 = vector.multi_reduction <maximumf>, %737, %cst_306 [1] : vector<8x8xf32> to vector<8xf32>
    %739 = vector.shape_cast %738 : vector<8xf32> to vector<8x1xf32>
    %740 = vector.broadcast %739 : vector<8x1xf32> to vector<8x8xf32>
    %741 = arith.subf %737, %740 : vector<8x8xf32>
    %742 = math.exp %741 : vector<8x8xf32>
    %cst_307 = arith.constant dense<0.000000e+00> : vector<8xf32>
    %743 = vector.multi_reduction <add>, %742, %cst_307 [1] : vector<8x8xf32> to vector<8xf32>
    %744 = vector.shape_cast %743 : vector<8xf32> to vector<8x1xf32>
    %745 = tpu.reciprocal %744 {approx = true} : vector<8x1xf32> -> vector<8x1xf32>
    %746 = vector.broadcast %745 : vector<8x1xf32> to vector<8x8xf32>
    %747 = arith.mulf %742, %746 : vector<8x8xf32>
    %748 = arith.truncf %747 : vector<8x8xf32> to vector<8x8xbf16>
    %cst_308 = arith.constant dense<0.000000e+00> : vector<8x32xf32>
    %749 = tpu.matmul %748, %732, %cst_308 {dimension_numbers = #tpu.dot_dimension_numbers<[1], [0], [0], [1], [0, 0, 1, 1], [], []>} : vector<8x8xbf16>, vector<8x32xbf16>, vector<8x32xf32> -> vector<8x32xf32>
    %750 = arith.truncf %749 : vector<8x32xf32> to vector<8x32xbf16>
    %c96_309 = arith.constant 96 : index
    %c0_310 = arith.constant 0 : index
    %751 = vector.load %arg20[%c96_309, %c0_310] : memref<128x128xbf16, #tpu.memory_space<vmem>>, vector<32x128xbf16>
    %cst_311 = arith.constant dense<0.000000e+00> : vector<8x128xf32>
    %752 = tpu.matmul %750, %751, %cst_311 {dimension_numbers = #tpu.dot_dimension_numbers<[1], [0], [0], [1], [0, 0, 1, 1], [], []>} : vector<8x32xbf16>, vector<32x128xbf16>, vector<8x128xf32> -> vector<8x128xf32>
    %753 = arith.addf %726, %752 : vector<8x128xf32>
    %754 = tpu.concatenate %641, %753 in 0 : vector<8x128xf32>, vector<8x128xf32> -> vector<16x128xf32>
    %c0_312 = arith.constant 0 : index
    %c0_313 = arith.constant 0 : index
    %755 = vector.load %arg21[%c0_312, %c0_313] : memref<1x128xf32, #tpu.memory_space<vmem>>, vector<1x128xf32>
    %756 = vector.broadcast %755 : vector<1x128xf32> to vector<16x128xf32>
    %757 = arith.addf %754, %756 : vector<16x128xf32>
    %758 = arith.addf %757, %523 : vector<16x128xf32>
    %c0_314 = arith.constant 0 : index
    %c0_315 = arith.constant 0 : index
    %759 = vector.load %arg22[%c0_314, %c0_315] : memref<1x128xf32, #tpu.memory_space<vmem>>, vector<1x128xf32>
    %c0_316 = arith.constant 0 : index
    %c0_317 = arith.constant 0 : index
    %760 = vector.load %arg23[%c0_316, %c0_317] : memref<1x128xf32, #tpu.memory_space<vmem>>, vector<1x128xf32>
    %cst_318 = arith.constant dense<0.000000e+00> : vector<16xf32>
    %761 = vector.multi_reduction <add>, %758, %cst_318 [1] : vector<16x128xf32> to vector<16xf32>
    %762 = vector.shape_cast %761 : vector<16xf32> to vector<16x1xf32>
    %cst_319 = arith.constant 1.280000e+02 : f32
    %763 = vector.broadcast %cst_319 : f32 to vector<16x1xf32>
    %764 = arith.divf %762, %763 : vector<16x1xf32>
    %765 = vector.broadcast %764 : vector<16x1xf32> to vector<16x128xf32>
    %766 = arith.subf %758, %765 : vector<16x128xf32>
    %767 = arith.mulf %766, %766 : vector<16x128xf32>
    %cst_320 = arith.constant dense<0.000000e+00> : vector<16xf32>
    %768 = vector.multi_reduction <add>, %767, %cst_320 [1] : vector<16x128xf32> to vector<16xf32>
    %769 = vector.shape_cast %768 : vector<16xf32> to vector<16x1xf32>
    %cst_321 = arith.constant 1.280000e+02 : f32
    %770 = vector.broadcast %cst_321 : f32 to vector<16x1xf32>
    %771 = arith.divf %769, %770 : vector<16x1xf32>
    %772 = vector.broadcast %764 : vector<16x1xf32> to vector<16x128xf32>
    %773 = arith.subf %758, %772 : vector<16x128xf32>
    %cst_322 = arith.constant 9.99999974E-6 : f32
    %774 = vector.broadcast %cst_322 : f32 to vector<16x1xf32>
    %775 = arith.addf %771, %774 : vector<16x1xf32>
    %776 = math.rsqrt %775 : vector<16x1xf32>
    %777 = vector.broadcast %776 : vector<16x1xf32> to vector<16x128xf32>
    %778 = arith.mulf %773, %777 : vector<16x128xf32>
    %779 = vector.broadcast %759 : vector<1x128xf32> to vector<16x128xf32>
    %780 = arith.mulf %778, %779 : vector<16x128xf32>
    %781 = vector.broadcast %760 : vector<1x128xf32> to vector<16x128xf32>
    %782 = arith.addf %780, %781 : vector<16x128xf32>
    %783 = arith.truncf %782 : vector<16x128xf32> to vector<16x128xbf16>
    %c0_323 = arith.constant 0 : index
    %c0_324 = arith.constant 0 : index
    %784 = vector.load %arg24[%c0_323, %c0_324] : memref<128x256xbf16, #tpu.memory_space<vmem>>, vector<128x256xbf16>
    %cst_325 = arith.constant dense<0.000000e+00> : vector<16x256xf32>
    %785 = tpu.matmul %783, %784, %cst_325 {dimension_numbers = #tpu.dot_dimension_numbers<[1], [0], [0], [1], [0, 0, 1, 1], [], []>} : vector<16x128xbf16>, vector<128x256xbf16>, vector<16x256xf32> -> vector<16x256xf32>
    %c0_326 = arith.constant 0 : index
    %c0_327 = arith.constant 0 : index
    %786 = vector.load %arg25[%c0_326, %c0_327] : memref<1x256xf32, #tpu.memory_space<vmem>>, vector<1x256xf32>
    %787 = vector.broadcast %786 : vector<1x256xf32> to vector<16x256xf32>
    %788 = arith.addf %785, %787 : vector<16x256xf32>
    %cst_328 = arith.constant 0.000000e+00 : f32
    %789 = vector.broadcast %cst_328 : f32 to vector<16x256xf32>
    %790 = arith.maximumf %788, %789 : vector<16x256xf32>
    %791 = arith.truncf %790 : vector<16x256xf32> to vector<16x256xbf16>
    %c0_329 = arith.constant 0 : index
    %c0_330 = arith.constant 0 : index
    %792 = vector.load %arg26[%c0_329, %c0_330] : memref<256x128xbf16, #tpu.memory_space<vmem>>, vector<256x128xbf16>
    %cst_331 = arith.constant dense<0.000000e+00> : vector<16x128xf32>
    %793 = tpu.matmul %791, %792, %cst_331 {dimension_numbers = #tpu.dot_dimension_numbers<[1], [0], [0], [1], [0, 0, 1, 1], [], []>} : vector<16x256xbf16>, vector<256x128xbf16>, vector<16x128xf32> -> vector<16x128xf32>
    %c0_332 = arith.constant 0 : index
    %c0_333 = arith.constant 0 : index
    %794 = vector.load %arg27[%c0_332, %c0_333] : memref<1x128xf32, #tpu.memory_space<vmem>>, vector<1x128xf32>
    %795 = vector.broadcast %794 : vector<1x128xf32> to vector<16x128xf32>
    %796 = arith.addf %793, %795 : vector<16x128xf32>
    %797 = arith.addf %796, %782 : vector<16x128xf32>
    %c0_334 = arith.constant 0 : index
    %c0_335 = arith.constant 0 : index
    %798 = vector.load %arg28[%c0_334, %c0_335] : memref<1x128xf32, #tpu.memory_space<vmem>>, vector<1x128xf32>
    %c0_336 = arith.constant 0 : index
    %c0_337 = arith.constant 0 : index
    %799 = vector.load %arg29[%c0_336, %c0_337] : memref<1x128xf32, #tpu.memory_space<vmem>>, vector<1x128xf32>
    %cst_338 = arith.constant dense<0.000000e+00> : vector<16xf32>
    %800 = vector.multi_reduction <add>, %797, %cst_338 [1] : vector<16x128xf32> to vector<16xf32>
    %801 = vector.shape_cast %800 : vector<16xf32> to vector<16x1xf32>
    %cst_339 = arith.constant 1.280000e+02 : f32
    %802 = vector.broadcast %cst_339 : f32 to vector<16x1xf32>
    %803 = arith.divf %801, %802 : vector<16x1xf32>
    %804 = vector.broadcast %803 : vector<16x1xf32> to vector<16x128xf32>
    %805 = arith.subf %797, %804 : vector<16x128xf32>
    %806 = arith.mulf %805, %805 : vector<16x128xf32>
    %cst_340 = arith.constant dense<0.000000e+00> : vector<16xf32>
    %807 = vector.multi_reduction <add>, %806, %cst_340 [1] : vector<16x128xf32> to vector<16xf32>
    %808 = vector.shape_cast %807 : vector<16xf32> to vector<16x1xf32>
    %cst_341 = arith.constant 1.280000e+02 : f32
    %809 = vector.broadcast %cst_341 : f32 to vector<16x1xf32>
    %810 = arith.divf %808, %809 : vector<16x1xf32>
    %811 = vector.broadcast %803 : vector<16x1xf32> to vector<16x128xf32>
    %812 = arith.subf %797, %811 : vector<16x128xf32>
    %cst_342 = arith.constant 9.99999974E-6 : f32
    %813 = vector.broadcast %cst_342 : f32 to vector<16x1xf32>
    %814 = arith.addf %810, %813 : vector<16x1xf32>
    %815 = math.rsqrt %814 : vector<16x1xf32>
    %816 = vector.broadcast %815 : vector<16x1xf32> to vector<16x128xf32>
    %817 = arith.mulf %812, %816 : vector<16x128xf32>
    %818 = vector.broadcast %798 : vector<1x128xf32> to vector<16x128xf32>
    %819 = arith.mulf %817, %818 : vector<16x128xf32>
    %820 = vector.broadcast %799 : vector<1x128xf32> to vector<16x128xf32>
    %821 = arith.addf %819, %820 : vector<16x128xf32>
    %c0_343 = arith.constant 0 : index
    %c0_344 = arith.constant 0 : index
    %822 = vector.load %arg30[%c0_343, %c0_344] : memref<16x128xf32, #tpu.memory_space<vmem>>, vector<16x128xf32>
    tpu.vector_store %arg30[%c0_343, %c0_344], %821 {strides = array<i32>} : memref<16x128xf32, #tpu.memory_space<vmem>>, vector<16x128xf32>,
    return
  }
}

</mosaic_0001>

<bundles_post_ra>
// kernel: tpu_custom_call.1
= control target key start
LH: loop header
LB: loop body
LE: loop exit
PB: predicated region body
PF: predicated region fallthrough
CT: control target
= control target key end

     0   :  { %s6501_s6 = smov 1   ;;  %s6502_s10 = smov 2   ;;  %s7639_s0 = inlined_call_operand.smem [shape: u32[31], index: -1, kind: input, shape index: {}] }
   0x1   :  { %s6576_s5 = sld [smem:[%s7639_s0]]   ;;  %s6503_s14 = smov 3  }
   0x2   :  { %s6581_s9 = sld [smem:[%s7639_s0 + %s6501_s6]]   ;;  %s6504_s18 = smov 4  }
   0x3   :  { %s6586_s13 = sld [smem:[%s7639_s0 + %s6502_s10]]   ;;  %s6505_s22 = smov 5  }
   0x4   :  { %s6591_s17 = sld [smem:[%s7639_s0 + %s6503_s14]]   ;;  %s6506_s26 = smov 6  }
   0x5   :  { %s6596_s21 = sld [smem:[%s7639_s0 + %s6504_s18]]   ;;  %s6507_s30 = smov 7  }
   0x6   :  { %s6601_s25 = sld [smem:[%s7639_s0 + %s6505_s22]]   ;;  %s6508_s4 = smov 8  }
   0x7   :  { %s6606_s29 = sld [smem:[%s7639_s0 + %s6506_s26]]   ;;  %s6509_s10 = smov 9  }
   0x8   :  { %s6611_s3 = sld [smem:[%s7639_s0 + %s6507_s30]]   ;;  %s6510_s15 = smov 10  }
   0x9   :  { %s6616_s8 = sld [smem:[%s7639_s0 + %s6508_s4]]   ;;  %s6511_s20 = smov 11  }
   0xa   :  { %s6621_s14 = sld [smem:[%s7639_s0 + %s6509_s10]]   ;;  %s6512_s26 = smov 12  }
   0xb   :  { %s6626_s19 = sld [smem:[%s7639_s0 + %s6510_s15]]   ;;  %s6513_s1 = smov 13  }
   0xc   :  { %s6631_s24 = sld [smem:[%s7639_s0 + %s6511_s20]]   ;;  %s6514_s7 = smov 14  }
   0xd   :  { %s6636_s30 = sld [smem:[%s7639_s0 + %s6512_s26]]   ;;  %s6515_s15 = smov 15  }
   0xe   :  { %s6641_s6 = sld [smem:[%s7639_s0 + %s6513_s1]]   ;;  %s6516_s22 = smov 16  }
   0xf   :  { %s6646_s12 = sld [smem:[%s7639_s0 + %s6514_s7]]   ;;  %s6517_s28 = smov 17  }
  0x10   :  { %7641 = sst [smem:[#allocation78_spill]] %s6621_s14  ;;  %s6518_s7 = smov 18  }
  0x11   :  { %7642 = sst [smem:[#allocation79_spill]] %s6626_s19 }
  0x12   :  { %7643 = sst [smem:[#allocation80_spill]] %s6631_s24 }
  0x13   :  { %s6651_s20 = sld [smem:[%s7639_s0 + %s6515_s15]]   ;;  %s6519_s15 = smov 19  }
  0x14   :  { %7644 = sst [smem:[#allocation81_spill]] %s6641_s6 }
  0x15   :  { %s6656_s27 = sld [smem:[%s7639_s0 + %s6516_s22]]   ;;  %s6520_s22 = smov 20  }
  0x16   :  { %s6661_s4 = sld [smem:[%s7639_s0 + %s6517_s28]]   ;;  %s6521_s28 = smov 21  }
  0x17   :  { %s6666_s6 = sld [smem:[%s7639_s0 + %s6518_s7]]   ;;  %s6522_s7 = smov 22  }
  0x18   :  { %s6686_s24 = sld [smem:[%s7639_s0 + %s6522_s7]]   ;;  %s6526_s7 = smov 26  }
  0x19   :  { %7645 = sst [smem:[#allocation82_spill]] %s6651_s20 }
  0x1a   :  { %s6671_s20 = sld [smem:[%s7639_s0 + %s6519_s15]]   ;;  %s6523_s15 = smov 23  }
  0x1b   :  { %7646 = sst [smem:[#allocation83_spill]] %s6656_s27 }
  0x1c   :  { %7647 = sst [smem:[#allocation84_spill]] %s6661_s4 }
  0x1d   :  { %s6676_s27 = sld [smem:[%s7639_s0 + %s6520_s22]]   ;;  %s6524_s22 = smov 24  }
  0x1e   :  { %s6681_s4 = sld [smem:[%s7639_s0 + %s6521_s28]]   ;;  %s6525_s28 = smov 25  }
  0x1f   :  { %7651 = sst [smem:[#allocation88_spill]] %s6686_s24 }
  0x20   :  { %7648 = sst [smem:[#allocation85_spill]] %s6671_s20 }
  0x21   :  { %s6691_s20 = sld [smem:[%s7639_s0 + %s6523_s15]]   ;;  %s6527_s15 = smov 27  }
  0x22   :  { %s6706_s24 = sld [smem:[%s7639_s0 + %s6526_s7]]   ;;  %s6530_s7 = smov 30  }
  0x23   :  { %7649 = sst [smem:[#allocation86_spill]] %s6676_s27 }
  0x24   :  { %7650 = sst [smem:[#allocation87_spill]] %s6681_s4 }
  0x25   :  { %s6696_s27 = sld [smem:[%s7639_s0 + %s6524_s22]]   ;;  %s6528_s22 = smov 28  }
  0x26   :  { %s6701_s4 = sld [smem:[%s7639_s0 + %s6525_s28]]   ;;  %s6529_s28 = smov 29  }
  0x27   :  { %7652 = sst [smem:[#allocation89_spill]] %s6691_s20 }
  0x28   :  { %s6711_s20 = sld [smem:[%s7639_s0 + %s6527_s15]]  }
  0x29   :  { %s6716_s19 = sld [smem:[%s7639_s0 + %s6528_s22]]  }
  0x2a   :  { %s6726_s14 = sld [smem:[%s7639_s0 + %s6530_s7]]  }
  0x2c   :  { %7653 = sst [smem:[#allocation90_spill]] %s6701_s4 }
  0x2d   :  { %s6721_s4 = sld [smem:[%s7639_s0 + %s6529_s28]]  }
  0x2e   :  { %66 = vsyncpa [#allocation7], 0 }
  0x2f   :  { %67 = vsyncpa [#allocation9], 0 }
  0x30   :  { %68 = vsyncpa [#allocation5], 0 }
  0x31   :  { %69 = vsyncpa [#allocation12], 0 }
  0x32   :  { %70 = vsyncpa [#allocation15], 0 }
  0x33   :  { %71 = vsyncpa [#allocation18], 0 }
  0x34   :  { %72 = vsyncpa [#allocation6], 0  ;;  %s6531_s15 = smov [#allocation11]   ;;  %s5875_s18 = scalar_lea.hbm %s6616_s8, 1024 }
  0x35   :  { %s114_s16 = sshll.u32 %s6531_s15, 4  ;;  %p5876_p0 = scmp.ne.s32.totalorder %s6616_s8, %s5875_s18  ;;  %s115_s16 = int_to_ptr.vmem [resolvable:$true] %s114_s16 }
  0x36   :  { %p5879_p1 = scmp.lt.u32.totalorder %s5875_s18, %s6616_s8 }
  0x38   :  { %p5881_p2 = pnand %p5879_p1, %p5876_p0 }
  0x3a   :  { %5884 = shalt.err (!%p5881_p2)
}
  0x3b   :  { %s5885_s0 = scalar_lea.vmem %s115_s16, 1024  ;;  %p5890_p4 = scmp.lt.s32.totalorder %s115_s16, %s115_s16 }
  0x3c   :  { %p5886_p3 = scmp.ne.s32.totalorder %s115_s16, %s5885_s0  ;;  %p5891_p5 = scmp.lt.s32.totalorder %s5885_s0, %s5885_s0 }
  0x3e   :  { %p5892_p6 = por %p5891_p5, %p5890_p4 }
  0x40   :  { %p5893_p7 = pnand %p5892_p6, %p5886_p3 }
  0x42   :  { %5896 = shalt.err (!%p5893_p7)
}
  0x43   :  { %s6532_s22 = smov 64   ;;  %s6533_s23 = smov 4  }
  0x44   :  { %120 = dma.hbm_to_vmem [thread:$0]  %s6616_s8, 1024, %s115_s16, [#allocation12], %s6532_s22, %s6532_s22, %s6533_s23  }
  0x45   :  { %s6534_s26 = smov [#allocation14]   ;;  %s5897_s1 = scalar_lea.hbm %s6646_s12, 2048 }
  0x46   :  { %s146_s28 = sshll.u32 %s6534_s26, 4  ;;  %p5898_p8 = scmp.ne.s32.totalorder %s6646_s12, %s5897_s1  ;;  %s147_s28 = int_to_ptr.vmem [resolvable:$true] %s146_s28 }
  0x47   :  { %p5901_p9 = scmp.lt.u32.totalorder %s5897_s1, %s6646_s12 }
  0x49   :  { %p5903_p10 = pnand %p5901_p9, %p5898_p8 }
  0x4b   :  { %5906 = shalt.err (!%p5903_p10)
}
  0x4c   :  { %s5907_s2 = scalar_lea.vmem %s147_s28, 2048  ;;  %p5912_p12 = scmp.lt.s32.totalorder %s147_s28, %s147_s28 }
  0x4d   :  { %p5908_p11 = scmp.ne.s32.totalorder %s147_s28, %s5907_s2  ;;  %p5913_p13 = scmp.lt.s32.totalorder %s5907_s2, %s5907_s2 }
  0x4f   :  { %p5914_p0 = por %p5913_p13, %p5912_p12 }
  0x51   :  { %p5915_p1 = pnand %p5914_p0, %p5908_p11 }
  0x53   :  { %5918 = shalt.err (!%p5915_p1)
}
  0x54   :  { %152 = dma.hbm_to_vmem [thread:$0]  %s6646_s12, 2048, %s147_s28, [#allocation15], %s6532_s22, %s6532_s22, %s6533_s23  }
  0x55   :  { %s6535_s8 = smov [#allocation17]   ;;  %s5919_s10 = scalar_lea.hbm %s6696_s27, 2048 }
  0x56   :  { %s186_s7 = sshll.u32 %s6535_s8, 4  ;;  %p5920_p2 = scmp.ne.s32.totalorder %s6696_s27, %s5919_s10  ;;  %s187_s7 = int_to_ptr.vmem [resolvable:$true] %s186_s7 }
  0x57   :  { %p5923_p3 = scmp.lt.u32.totalorder %s5919_s10, %s6696_s27 }
  0x59   :  { %p5925_p4 = pnand %p5923_p3, %p5920_p2 }
  0x5b   :  { %5928 = shalt.err (!%p5925_p4)
}
  0x5c   :  { %s5929_s11 = scalar_lea.vmem %s187_s7, 2048  ;;  %p5934_p6 = scmp.lt.s32.totalorder %s187_s7, %s187_s7 }
  0x5d   :  { %p5930_p5 = scmp.ne.s32.totalorder %s187_s7, %s5929_s11  ;;  %p5935_p7 = scmp.lt.s32.totalorder %s5929_s11, %s5929_s11 }
  0x5f   :  { %p5936_p8 = por %p5935_p7, %p5934_p6 }
  0x61   :  { %p5937_p9 = pnand %p5936_p8, %p5930_p5 }
  0x63   :  { %5940 = shalt.err (!%p5937_p9)
}
  0x64   :  { %s6536_s15 = smov 128   ;;  %s6537_s12 = smov 8  }
  0x65   :  { %192 = dma.hbm_to_vmem [thread:$0]  %s6696_s27, 2048, %s187_s7, [#allocation18], %s6536_s15, %s6536_s15, %s6537_s12  }
  0x66   :  { %s5941_s16 = scalar_lea.hbm %s6576_s5, 16 }
  0x67   :  { %p5942_p10 = scmp.ne.s32.totalorder %s6576_s5, %s5941_s16  ;;  %p5945_p11 = scmp.lt.u32.totalorder %s5941_s16, %s6576_s5 }
  0x69   :  { %p5947_p12 = pnand %p5945_p11, %p5942_p10 }
  0x6b   :  { %5950 = shalt.err (!%p5947_p12)
}
  0x6c   :  { %s6538_s18 = smov [#allocation4]   ;;  %s5951_s0 = scalar_lea.hbm %s6581_s9, 16 }
  0x6d   :  { %80 = dma.hbm_to_smem %s6576_s5, 16, %s6538_s18, [#allocation7]  }
  0x6e   :  { %p5952_p13 = scmp.ne.s32.totalorder %s6581_s9, %s5951_s0  ;;  %p5955_p0 = scmp.lt.u32.totalorder %s5951_s0, %s6581_s9 }
  0x70   :  { %p5957_p1 = pnand %p5955_p0, %p5952_p13 }
  0x72   :  { %5960 = shalt.err (!%p5957_p1)
}
  0x73   :  { %s6539_s26 = smov [#allocation8]   ;;  %s6540_s27 = smov [#allocation10]  }
  0x74   :  { %88 = dma.hbm_to_smem %s6581_s9, 16, %s6539_s26, [#allocation9]  }
  0x75   :  { %s100_s28 = sshll.u32 %s6540_s27, 4  ;;  %s5961_s1 = scalar_lea.hbm %s6606_s29, 3072  ;;  %s101_s28 = int_to_ptr.vmem [resolvable:$true] %s100_s28 }
  0x76   :  { %p5962_p2 = scmp.ne.s32.totalorder %s6606_s29, %s5961_s1  ;;  %p5965_p3 = scmp.lt.u32.totalorder %s5961_s1, %s6606_s29 }
  0x78   :  { %p5967_p4 = pnand %p5965_p3, %p5962_p2 }
  0x7a   :  { %5970 = shalt.err (!%p5967_p4)
}
  0x7b   :  { %s5971_s5 = scalar_lea.vmem %s101_s28, 3072  ;;  %p5976_p6 = scmp.lt.s32.totalorder %s101_s28, %s101_s28 }
  0x7c   :  { %p5972_p5 = scmp.ne.s32.totalorder %s101_s28, %s5971_s5  ;;  %p5977_p7 = scmp.lt.s32.totalorder %s5971_s5, %s5971_s5 }
  0x7e   :  { %p5978_p8 = por %p5977_p7, %p5976_p6 }
  0x80   :  { %p5979_p9 = pnand %p5978_p8, %p5972_p5 }
  0x82   :  { %5982 = shalt.err (!%p5979_p9)
}
  0x83   :  { %s6541_s2 = smov 192   ;;  %s6542_s9 = smov 12  }
  0x84   :  { %106 = dma.hbm_to_vmem [thread:$0]  %s6606_s29, 3072, %s101_s28, [#allocation5], %s6541_s2, %s6541_s2, %s6542_s9  }
  0x85   :  { %s6543_s8 = smov [#allocation13]   ;;  %s6544_s10 = smov [#allocation16]  }
  0x86   :  { %s132_s7 = sshll.u32 %s6543_s8, 4  ;;  %s164_s11 = sshll.u32 %s6544_s10, 4  ;;  %s133_s7 = int_to_ptr.vmem [resolvable:$true] %s132_s7  ;;  %s6764_s11 = int_to_ptr.vmem [resolvable:$true] %s164_s11 }
  0x87   :  { %s5983_s16 = scalar_lea.hbm %s6636_s30, 2048 }
  0x88   :  { %p5984_p10 = scmp.ne.s32.totalorder %s6636_s30, %s5983_s16  ;;  %p5987_p11 = scmp.lt.u32.totalorder %s5983_s16, %s6636_s30 }
  0x8a   :  { %p5989_p12 = pnand %p5987_p11, %p5984_p10 }
  0x8c   :  { %5992 = shalt.err (!%p5989_p12)
}
  0x8d   :  { %s5993_s18 = scalar_lea.vmem %s133_s7, 2048  ;;  %p5998_p0 = scmp.lt.s32.totalorder %s133_s7, %s133_s7 }
  0x8e   :  { %p5994_p13 = scmp.ne.s32.totalorder %s133_s7, %s5993_s18  ;;  %p5999_p1 = scmp.lt.s32.totalorder %s5993_s18, %s5993_s18 }
  0x90   :  { %p6000_p2 = por %p5999_p1, %p5998_p0 }
  0x92   :  { %p6001_p3 = pnand %p6000_p2, %p5994_p13 }
  0x94   :  { %6004 = shalt.err (!%p6001_p3)
}
  0x95   :  { %138 = dma.hbm_to_vmem [thread:$0]  %s6636_s30, 2048, %s133_s7, [#allocation12], %s6536_s15, %s6536_s15, %s6537_s12  }
  0x96   :  { %s6005_s29 = scalar_lea.hbm %s6666_s6, 3072 }
  0x97   :  { %p6006_p4 = scmp.ne.s32.totalorder %s6666_s6, %s6005_s29  ;;  %p6009_p5 = scmp.lt.u32.totalorder %s6005_s29, %s6666_s6 }
  0x99   :  { %p6011_p6 = pnand %p6009_p5, %p6006_p4 }
  0x9b   :  { %6014 = shalt.err (!%p6011_p6)
}
  0x9c   :  { %s6015_s0 = scalar_lea.vmem %s6764_s11, 3072  ;;  %p6020_p8 = scmp.lt.s32.totalorder %s6764_s11, %s6764_s11 }
  0x9d   :  { %p6016_p7 = scmp.ne.s32.totalorder %s6764_s11, %s6015_s0  ;;  %p6021_p9 = scmp.lt.s32.totalorder %s6015_s0, %s6015_s0 }
  0x9f   :  { %p6022_p10 = por %p6021_p9, %p6020_p8 }
  0xa1   :  { %p6023_p11 = pnand %p6022_p10, %p6016_p7 }
  0xa3   :  { %6026 = shalt.err (!%p6023_p11)
}
  0xa4   :  { %170 = dma.hbm_to_vmem [thread:$0]  %s6666_s6, 3072, %s6764_s11, [#allocation15], %s6541_s2, %s6541_s2, %s6542_s9  }
  0xa5   :  { %s6545_s30 = smov [#allocation19]   ;;  %s6027_s27 = scalar_lea.hbm %s6706_s24, 2048 }
  0xa6   :  { %s200_s26 = sshll.u32 %s6545_s30, 4  ;;  %p6028_p12 = scmp.ne.s32.totalorder %s6706_s24, %s6027_s27  ;;  %s201_s26 = int_to_ptr.vmem [resolvable:$true] %s200_s26 }
  0xa7   :  { %p6031_p13 = scmp.lt.u32.totalorder %s6027_s27, %s6706_s24 }
  0xa9   :  { %p6033_p0 = pnand %p6031_p13, %p6028_p12 }
  0xab   :  { %6036 = shalt.err (!%p6033_p0)
}
  0xac   :  { %s6037_s28 = scalar_lea.vmem %s201_s26, 2048  ;;  %p6042_p2 = scmp.lt.s32.totalorder %s201_s26, %s201_s26 }
  0xad   :  { %p6038_p1 = scmp.ne.s32.totalorder %s201_s26, %s6037_s28  ;;  %p6043_p3 = scmp.lt.s32.totalorder %s6037_s28, %s6037_s28 }
  0xaf   :  { %p6044_p4 = por %p6043_p3, %p6042_p2 }
  0xb1   :  { %p6045_p5 = pnand %p6044_p4, %p6038_p1 }
  0xb3   :  { %6048 = shalt.err (!%p6045_p5)
}
  0xb4   :  { %206 = dma.hbm_to_vmem [thread:$0]  %s6706_s24, 2048, %s201_s26, [#allocation18], %s6532_s22, %s6532_s22, %s6533_s23  }
  0xb5   :  { %6455 = dma.done.wait [#allocation7], 16  }
  0xb6   :  { %6456 = vsyncadd [#allocation7], 4294967280 }
  0xb7   :  { %6457 = dma.done.wait [#allocation9], 16  }
  0xb8   :  { %6458 = vsyncadd [#allocation9], 4294967280 }
  0xb9   :  { %6459 = dma.done.wait [#allocation5], 3072  }
  0xba   :  { %6460 = vsyncadd [#allocation5], 4294964224 }
  0xbb   :  { %6461 = dma.done.wait [#allocation12], 3072  }
  0xbc   :  { %6462 = vsyncadd [#allocation12], 4294964224 }
  0xbd   :  { %6463 = dma.done.wait [#allocation15], 5120  }
  0xbe   :  { %6464 = vsyncadd [#allocation15], 4294962176 }
  0xbf   :  { %6465 = dma.done.wait [#allocation18], 4096  }
  0xc0   :  { %6466 = vsyncadd [#allocation18], 4294963200 }
  0xc1   :  { %240 = sfence }
  0xc2   :  { %s242_s6 = sld [smem:[#allocation4]]  ;;  %s6546_s1 = smov [#allocation2]  }
  0xc3   :  { %s252_s5 = sshll.u32 %s6546_s1, 4  ;;  %s6792_s2 = sld [smem:[#allocation4 + $0x1]]  ;;  %s6794_s5 = int_to_ptr.vmem [resolvable:$true] %s252_s5 }
  0xc4   :  { %s6547_s24 = smov [#allocation2 + $0x1]   ;;  %s6796_s9 = sld [smem:[#allocation4 + $0x2]] }
  0xc5   :  { %s268_s23 = sshll.u32 %s6547_s24, 4  ;;  %s6548_s8 = smov [#allocation2 + $0x2]   ;;  %s6798_s23 = int_to_ptr.vmem [resolvable:$true] %s268_s23 }
  0xc6   :  { %s284_s7 = sshll.u32 %s6548_s8, 4  ;;  %s6800_s10 = sld [smem:[#allocation4 + $0x3]]  ;;  %s6802_s7 = int_to_ptr.vmem [resolvable:$true] %s284_s7 }
  0xc7   :  { %s6807_s0 = scalar_lea.hbm %s6601_s25, 2048 }
  0xc8   :  { %s4794_s11 = sshll.u32 %s242_s6, 4 }
  0xc9   :  { %s244_s16 = scalar_lea.hbm %s6601_s25, %s4794_s11  ;;  %s4796_s18 = sshll.u32 %s6792_s2, 4 }
  0xca   :  { %s6049_s29 = scalar_lea.hbm %s244_s16, 16  ;;  %p6052_p7 = scmp.lt.u32.totalorder %s244_s16, %s6601_s25 }
  0xcb   :  { %p6050_p6 = scmp.ne.s32.totalorder %s244_s16, %s6049_s29  ;;  %p6053_p8 = scmp.lt.u32.totalorder %s6807_s0, %s6049_s29 }
  0xcc   :  { %p6055_p10 = scmp.lt.u32.totalorder %s6049_s29, %s244_s16 }
  0xcd   :  { %p6054_p9 = por %p6053_p8, %p6052_p7 }
  0xcf   :  { %p6056_p11 = por %p6055_p10, %p6054_p9 }
  0xd1   :  { %p6057_p12 = pnand %p6056_p11, %p6050_p6 }
  0xd3   :  { %6060 = shalt.err (!%p6057_p12)  }
  0xd4   :  { %s6061_s30 = scalar_lea.vmem %s6794_s5, 16  ;;  %s6814_s26 = scalar_lea.vmem %s6794_s5, 256 }
  0xd5   :  { %p6062_p13 = scmp.ne.s32.totalorder %s6794_s5, %s6061_s30  ;;  %p6066_p0 = scmp.lt.s32.totalorder %s6794_s5, %s6794_s5 }
  0xd6   :  { %p6067_p1 = scmp.lt.s32.totalorder %s6814_s26, %s6061_s30 }
  0xd8   :  { %p6068_p2 = por %p6067_p1, %p6066_p0 }
  0xda   :  { %p6069_p3 = pnand %p6068_p2, %p6062_p13 }
  0xdc   :  { %6072 = shalt.err (!%p6069_p3)  }
  0xdd   :  { %255 = dma.hbm_to_vmem [thread:$0]  %s244_s16, 16, %s6794_s5, [#allocation3] }
  0xde   :  { %s258_s27 = scalar_lea.hbm %s6601_s25, %s4796_s18  ;;  %s4798_s28 = sshll.u32 %s6796_s9, 4 }
  0xdf   :  { %s6073_s6 = scalar_lea.hbm %s258_s27, 16  ;;  %p6076_p5 = scmp.lt.u32.totalorder %s258_s27, %s6601_s25 }
  0xe0   :  { %p6074_p4 = scmp.ne.s32.totalorder %s258_s27, %s6073_s6  ;;  %p6077_p6 = scmp.lt.u32.totalorder %s6807_s0, %s6073_s6 }
  0xe1   :  { %p6079_p8 = scmp.lt.u32.totalorder %s6073_s6, %s258_s27 }
  0xe2   :  { %p6078_p7 = por %p6077_p6, %p6076_p5 }
  0xe4   :  { %p6080_p9 = por %p6079_p8, %p6078_p7 }
  0xe6   :  { %p6081_p10 = pnand %p6080_p9, %p6074_p4 }
  0xe8   :  { %6084 = shalt.err (!%p6081_p10)  }
  0xe9   :  { %s6085_s1 = scalar_lea.vmem %s6798_s23, 16  ;;  %p6090_p12 = scmp.lt.s32.totalorder %s6798_s23, %s6794_s5 }
  0xea   :  { %p6086_p11 = scmp.ne.s32.totalorder %s6798_s23, %s6085_s1  ;;  %p6091_p13 = scmp.lt.s32.totalorder %s6814_s26, %s6085_s1 }
  0xec   :  { %p6092_p0 = por %p6091_p13, %p6090_p12 }
  0xee   :  { %p6093_p1 = pnand %p6092_p0, %p6086_p11 }
  0xf0   :  { %6096 = shalt.err (!%p6093_p1)  }
  0xf1   :  { %271 = dma.hbm_to_vmem [thread:$0]  %s258_s27, 16, %s6798_s23, [#allocation3 + $0x1] }
  0xf2   :  { %s274_s2 = scalar_lea.hbm %s6601_s25, %s4798_s28  ;;  %s4800_s24 = sshll.u32 %s6800_s10, 4 }
  0xf3   :  { %s6097_s9 = scalar_lea.hbm %s274_s2, 16  ;;  %p6100_p3 = scmp.lt.u32.totalorder %s274_s2, %s6601_s25 }
  0xf4   :  { %p6098_p2 = scmp.ne.s32.totalorder %s274_s2, %s6097_s9  ;;  %p6101_p4 = scmp.lt.u32.totalorder %s6807_s0, %s6097_s9 }
  0xf5   :  { %p6103_p6 = scmp.lt.u32.totalorder %s6097_s9, %s274_s2 }
  0xf6   :  { %p6102_p5 = por %p6101_p4, %p6100_p3 }
  0xf8   :  { %p6104_p7 = por %p6103_p6, %p6102_p5 }
  0xfa   :  { %p6105_p8 = pnand %p6104_p7, %p6098_p2 }
  0xfc   :  { %6108 = shalt.err (!%p6105_p8)  }
  0xfd   :  { %s6109_s8 = scalar_lea.vmem %s6802_s7, 16  ;;  %p6114_p10 = scmp.lt.s32.totalorder %s6802_s7, %s6794_s5 }
  0xfe   :  { %p6110_p9 = scmp.ne.s32.totalorder %s6802_s7, %s6109_s8  ;;  %p6115_p11 = scmp.lt.s32.totalorder %s6814_s26, %s6109_s8 }
 0x100   :  { %p6116_p12 = por %p6115_p11, %p6114_p10 }
 0x102   :  { %p6117_p13 = pnand %p6116_p12, %p6110_p9 }
 0x104   :  { %6120 = shalt.err (!%p6117_p13)  }
 0x105   :  { %287 = dma.hbm_to_vmem [thread:$0]  %s274_s2, 16, %s6802_s7, [#allocation3 + $0x2] }
 0x106   :  { %s290_s23 = scalar_lea.hbm %s6601_s25, %s4800_s24  ;;  %s6549_s10 = smov [#allocation2 + $0x3]  }
 0x107   :  { %s300_s11 = sshll.u32 %s6549_s10, 4  ;;  %s6841_s16 = sld [smem:[#allocation4 + $0x4]]  ;;  %s301_s11 = int_to_ptr.vmem [resolvable:$true] %s300_s11 }
 0x108   :  { %s6121_s18 = scalar_lea.hbm %s290_s23, 16  ;;  %p6124_p1 = scmp.lt.u32.totalorder %s290_s23, %s6601_s25 }
 0x109   :  { %p6122_p0 = scmp.ne.s32.totalorder %s290_s23, %s6121_s18  ;;  %p6125_p2 = scmp.lt.u32.totalorder %s6807_s0, %s6121_s18 }
 0x10a   :  { %p6127_p4 = scmp.lt.u32.totalorder %s6121_s18, %s290_s23 }
 0x10b   :  { %p6126_p3 = por %p6125_p2, %p6124_p1 }
 0x10d   :  { %p6128_p5 = por %p6127_p4, %p6126_p3 }
 0x10f   :  { %p6129_p6 = pnand %p6128_p5, %p6122_p0 }
 0x111   :  { %6132 = shalt.err (!%p6129_p6)  }
 0x112   :  { %s6133_s29 = scalar_lea.vmem %s301_s11, 16  ;;  %p6138_p8 = scmp.lt.s32.totalorder %s301_s11, %s6794_s5 }
 0x113   :  { %p6134_p7 = scmp.ne.s32.totalorder %s301_s11, %s6133_s29  ;;  %p6139_p9 = scmp.lt.s32.totalorder %s6814_s26, %s6133_s29 }
 0x115   :  { %p6140_p10 = por %p6139_p9, %p6138_p8 }
 0x117   :  { %p6141_p11 = pnand %p6140_p10, %p6134_p7 }
 0x119   :  { %6144 = shalt.err (!%p6141_p11)  }
 0x11a   :  { %303 = dma.hbm_to_vmem [thread:$0]  %s290_s23, 16, %s301_s11, [#allocation3 + $0x3] }
 0x11b   :  { %s6550_s7 = smov [#allocation2 + $0x4]   ;;  %s6847_s27 = sld [smem:[#allocation4 + $0x5]] }
 0x11c   :  { %s316_s30 = sshll.u32 %s6550_s7, 4  ;;  %s6551_s28 = smov [#allocation2 + $0x5]   ;;  %s317_s30 = int_to_ptr.vmem [resolvable:$true] %s316_s30 }
 0x11d   :  { %s332_s6 = sshll.u32 %s6551_s28, 4  ;;  %s6849_s1 = sld [smem:[#allocation4 + $0x6]]  ;;  %s6852_s6 = int_to_ptr.vmem [resolvable:$true] %s332_s6 }
 0x11e   :  { %s4802_s2 = sshll.u32 %s6841_s16, 4 }
 0x11f   :  { %s306_s24 = scalar_lea.hbm %s6601_s25, %s4802_s2 }
 0x120   :  { %s6145_s9 = scalar_lea.hbm %s306_s24, 16  ;;  %p6148_p13 = scmp.lt.u32.totalorder %s306_s24, %s6601_s25 }
 0x121   :  { %p6146_p12 = scmp.ne.s32.totalorder %s306_s24, %s6145_s9  ;;  %p6149_p0 = scmp.lt.u32.totalorder %s6807_s0, %s6145_s9 }
 0x122   :  { %p6151_p2 = scmp.lt.u32.totalorder %s6145_s9, %s306_s24 }
 0x123   :  { %p6150_p1 = por %p6149_p0, %p6148_p13 }
 0x125   :  { %p6152_p3 = por %p6151_p2, %p6150_p1 }
 0x127   :  { %p6153_p4 = pnand %p6152_p3, %p6146_p12 }
 0x129   :  { %6156 = shalt.err (!%p6153_p4)  }
 0x12a   :  { %s6157_s8 = scalar_lea.vmem %s317_s30, 16  ;;  %p6162_p6 = scmp.lt.s32.totalorder %s317_s30, %s6794_s5 }
 0x12b   :  { %p6158_p5 = scmp.ne.s32.totalorder %s317_s30, %s6157_s8  ;;  %p6163_p7 = scmp.lt.s32.totalorder %s6814_s26, %s6157_s8 }
 0x12d   :  { %p6164_p8 = por %p6163_p7, %p6162_p6 }
 0x12f   :  { %p6165_p9 = pnand %p6164_p8, %p6158_p5 }
 0x131   :  { %6168 = shalt.err (!%p6165_p9)  }
 0x132   :  { %319 = dma.hbm_to_vmem [thread:$0]  %s306_s24, 16, %s317_s30, [#allocation3 + $0x4] }
 0x133   :  { %s4804_s23 = sshll.u32 %s6847_s27, 4  ;;  %s6552_s10 = smov [#allocation2 + $0x6]  }
 0x134   :  { %s348_s11 = sshll.u32 %s6552_s10, 4  ;;  %s322_s16 = scalar_lea.hbm %s6601_s25, %s4804_s23  ;;  %s6861_s11 = int_to_ptr.vmem [resolvable:$true] %s348_s11 }
 0x135   :  { %s6169_s18 = scalar_lea.hbm %s322_s16, 16  ;;  %p6172_p11 = scmp.lt.u32.totalorder %s322_s16, %s6601_s25 }
 0x136   :  { %p6170_p10 = scmp.ne.s32.totalorder %s322_s16, %s6169_s18  ;;  %p6173_p12 = scmp.lt.u32.totalorder %s6807_s0, %s6169_s18 }
 0x137   :  { %p6175_p0 = scmp.lt.u32.totalorder %s6169_s18, %s322_s16 }
 0x138   :  { %p6174_p13 = por %p6173_p12, %p6172_p11 }
 0x13a   :  { %p6176_p1 = por %p6175_p0, %p6174_p13 }
 0x13c   :  { %p6177_p2 = pnand %p6176_p1, %p6170_p10 }
 0x13e   :  { %6180 = shalt.err (!%p6177_p2)  }
 0x13f   :  { %s6181_s29 = scalar_lea.vmem %s6852_s6, 16  ;;  %p6186_p4 = scmp.lt.s32.totalorder %s6852_s6, %s6794_s5 }
 0x140   :  { %p6182_p3 = scmp.ne.s32.totalorder %s6852_s6, %s6181_s29  ;;  %p6187_p5 = scmp.lt.s32.totalorder %s6814_s26, %s6181_s29 }
 0x142   :  { %p6188_p6 = por %p6187_p5, %p6186_p4 }
 0x144   :  { %p6189_p7 = pnand %p6188_p6, %p6182_p3 }
 0x146   :  { %6192 = shalt.err (!%p6189_p7)  }
 0x147   :  { %335 = dma.hbm_to_vmem [thread:$0]  %s322_s16, 16, %s6852_s6, [#allocation3 + $0x5] }
 0x148   :  { %s4806_s7 = sshll.u32 %s6849_s1, 4  ;;  %s6872_s30 = sld [smem:[#allocation4 + $0x7]] }
 0x149   :  { %s338_s27 = scalar_lea.hbm %s6601_s25, %s4806_s7 }
 0x14a   :  { %s6193_s28 = scalar_lea.hbm %s338_s27, 16  ;;  %p6196_p9 = scmp.lt.u32.totalorder %s338_s27, %s6601_s25 }
 0x14b   :  { %p6194_p8 = scmp.ne.s32.totalorder %s338_s27, %s6193_s28  ;;  %p6197_p10 = scmp.lt.u32.totalorder %s6807_s0, %s6193_s28 }
 0x14c   :  { %p6199_p12 = scmp.lt.u32.totalorder %s6193_s28, %s338_s27 }
 0x14d   :  { %p6198_p11 = por %p6197_p10, %p6196_p9 }
 0x14f   :  { %p6200_p13 = por %p6199_p12, %p6198_p11 }
 0x151   :  { %p6201_p0 = pnand %p6200_p13, %p6194_p8 }
 0x153   :  { %6204 = shalt.err (!%p6201_p0)  }
 0x154   :  { %s6205_s2 = scalar_lea.vmem %s6861_s11, 16  ;;  %p6210_p2 = scmp.lt.s32.totalorder %s6861_s11, %s6794_s5 }
 0x155   :  { %p6206_p1 = scmp.ne.s32.totalorder %s6861_s11, %s6205_s2  ;;  %p6211_p3 = scmp.lt.s32.totalorder %s6814_s26, %s6205_s2 }
 0x157   :  { %p6212_p4 = por %p6211_p3, %p6210_p2 }
 0x159   :  { %p6213_p5 = pnand %p6212_p4, %p6206_p1 }
 0x15b   :  { %6216 = shalt.err (!%p6213_p5)  }
 0x15c   :  { %351 = dma.hbm_to_vmem [thread:$0]  %s338_s27, 16, %s6861_s11, [#allocation3 + $0x6] }
 0x15d   :  { %s6553_s6 = smov [#allocation2 + $0x7]   ;;  %s6883_s24 = sld [smem:[#allocation4 + $0x8]] }
 0x15e   :  { %s364_s1 = sshll.u32 %s6553_s6, 4  ;;  %s6554_s9 = smov [#allocation2 + $0x8]   ;;  %s365_s1 = int_to_ptr.vmem [resolvable:$true] %s364_s1 }
 0x15f   :  { %s380_s8 = sshll.u32 %s6554_s9, 4  ;;  %s6885_s23 = sld [smem:[#allocation4 + $0x9]]  ;;  %s6888_s8 = int_to_ptr.vmem [resolvable:$true] %s380_s8 }
 0x160   :  { %s4808_s10 = sshll.u32 %s6872_s30, 4 }
 0x161   :  { %s354_s16 = scalar_lea.hbm %s6601_s25, %s4808_s10 }
 0x162   :  { %s6217_s18 = scalar_lea.hbm %s354_s16, 16  ;;  %p6220_p7 = scmp.lt.u32.totalorder %s354_s16, %s6601_s25 }
 0x163   :  { %p6218_p6 = scmp.ne.s32.totalorder %s354_s16, %s6217_s18  ;;  %p6221_p8 = scmp.lt.u32.totalorder %s6807_s0, %s6217_s18 }
 0x164   :  { %p6223_p10 = scmp.lt.u32.totalorder %s6217_s18, %s354_s16 }
 0x165   :  { %p6222_p9 = por %p6221_p8, %p6220_p7 }
 0x167   :  { %p6224_p11 = por %p6223_p10, %p6222_p9 }
 0x169   :  { %p6225_p12 = pnand %p6224_p11, %p6218_p6 }
 0x16b   :  { %6228 = shalt.err (!%p6225_p12)  }
 0x16c   :  { %s6229_s11 = scalar_lea.vmem %s365_s1, 16  ;;  %p6234_p0 = scmp.lt.s32.totalorder %s365_s1, %s6794_s5 }
 0x16d   :  { %p6230_p13 = scmp.ne.s32.totalorder %s365_s1, %s6229_s11  ;;  %p6235_p1 = scmp.lt.s32.totalorder %s6814_s26, %s6229_s11 }
 0x16f   :  { %p6236_p2 = por %p6235_p1, %p6234_p0 }
 0x171   :  { %p6237_p3 = pnand %p6236_p2, %p6230_p13 }
 0x173   :  { %6240 = shalt.err (!%p6237_p3)  }
 0x174   :  { %367 = dma.hbm_to_vmem [thread:$0]  %s354_s16, 16, %s365_s1, [#allocation3 + $0x7] }
 0x175   :  { %s4810_s29 = sshll.u32 %s6883_s24, 4  ;;  %s6555_s7 = smov [#allocation2 + $0x9]  }
 0x176   :  { %s396_s30 = sshll.u32 %s6555_s7, 4  ;;  %s370_s27 = scalar_lea.hbm %s6601_s25, %s4810_s29  ;;  %s6897_s30 = int_to_ptr.vmem [resolvable:$true] %s396_s30 }
 0x177   :  { %s6241_s28 = scalar_lea.hbm %s370_s27, 16  ;;  %p6244_p5 = scmp.lt.u32.totalorder %s370_s27, %s6601_s25 }
 0x178   :  { %p6242_p4 = scmp.ne.s32.totalorder %s370_s27, %s6241_s28  ;;  %p6245_p6 = scmp.lt.u32.totalorder %s6807_s0, %s6241_s28 }
 0x179   :  { %p6247_p8 = scmp.lt.u32.totalorder %s6241_s28, %s370_s27 }
 0x17a   :  { %p6246_p7 = por %p6245_p6, %p6244_p5 }
 0x17c   :  { %p6248_p9 = por %p6247_p8, %p6246_p7 }
 0x17e   :  { %p6249_p10 = pnand %p6248_p9, %p6242_p4 }
 0x180   :  { %6252 = shalt.err (!%p6249_p10)  }
 0x181   :  { %s6253_s2 = scalar_lea.vmem %s6888_s8, 16  ;;  %p6258_p12 = scmp.lt.s32.totalorder %s6888_s8, %s6794_s5 }
 0x182   :  { %p6254_p11 = scmp.ne.s32.totalorder %s6888_s8, %s6253_s2  ;;  %p6259_p13 = scmp.lt.s32.totalorder %s6814_s26, %s6253_s2 }
 0x184   :  { %p6260_p0 = por %p6259_p13, %p6258_p12 }
 0x186   :  { %p6261_p1 = pnand %p6260_p0, %p6254_p11 }
 0x188   :  { %6264 = shalt.err (!%p6261_p1)  }
 0x189   :  { %383 = dma.hbm_to_vmem [thread:$0]  %s370_s27, 16, %s6888_s8, [#allocation3 + $0x8] }
 0x18a   :  { %s4812_s6 = sshll.u32 %s6885_s23, 4  ;;  %s6908_s1 = sld [smem:[#allocation4 + $0xa]] }
 0x18b   :  { %s386_s24 = scalar_lea.hbm %s6601_s25, %s4812_s6 }
 0x18c   :  { %s6265_s9 = scalar_lea.hbm %s386_s24, 16  ;;  %p6268_p3 = scmp.lt.u32.totalorder %s386_s24, %s6601_s25 }
 0x18d   :  { %p6266_p2 = scmp.ne.s32.totalorder %s386_s24, %s6265_s9  ;;  %p6269_p4 = scmp.lt.u32.totalorder %s6807_s0, %s6265_s9 }
 0x18e   :  { %p6271_p6 = scmp.lt.u32.totalorder %s6265_s9, %s386_s24 }
 0x18f   :  { %p6270_p5 = por %p6269_p4, %p6268_p3 }
 0x191   :  { %p6272_p7 = por %p6271_p6, %p6270_p5 }
 0x193   :  { %p6273_p8 = pnand %p6272_p7, %p6266_p2 }
 0x195   :  { %6276 = shalt.err (!%p6273_p8)  }
 0x196   :  { %s6277_s10 = scalar_lea.vmem %s6897_s30, 16  ;;  %p6282_p10 = scmp.lt.s32.totalorder %s6897_s30, %s6794_s5 }
 0x197   :  { %p6278_p9 = scmp.ne.s32.totalorder %s6897_s30, %s6277_s10  ;;  %p6283_p11 = scmp.lt.s32.totalorder %s6814_s26, %s6277_s10 }
 0x199   :  { %p6284_p12 = por %p6283_p11, %p6282_p10 }
 0x19b   :  { %p6285_p13 = pnand %p6284_p12, %p6278_p9 }
 0x19d   :  { %6288 = shalt.err (!%p6285_p13)  }
 0x19e   :  { %399 = dma.hbm_to_vmem [thread:$0]  %s386_s24, 16, %s6897_s30, [#allocation3 + $0x9] }
 0x19f   :  { %s6556_s8 = smov [#allocation2 + $0xa]   ;;  %s6919_s16 = sld [smem:[#allocation4 + $0xb]] }
 0x1a0   :  { %s412_s23 = sshll.u32 %s6556_s8, 4  ;;  %s6557_s18 = smov [#allocation2 + $0xb]   ;;  %s413_s23 = int_to_ptr.vmem [resolvable:$true] %s412_s23 }
 0x1a1   :  { %s428_s11 = sshll.u32 %s6557_s18, 4  ;;  %s6921_s29 = sld [smem:[#allocation4 + $0xc]]  ;;  %s6924_s11 = int_to_ptr.vmem [resolvable:$true] %s428_s11 }
 0x1a2   :  { %s4814_s7 = sshll.u32 %s6908_s1, 4 }
 0x1a3   :  { %s402_s27 = scalar_lea.hbm %s6601_s25, %s4814_s7 }
 0x1a4   :  { %s6289_s28 = scalar_lea.hbm %s402_s27, 16  ;;  %p6292_p1 = scmp.lt.u32.totalorder %s402_s27, %s6601_s25 }
 0x1a5   :  { %p6290_p0 = scmp.ne.s32.totalorder %s402_s27, %s6289_s28  ;;  %p6293_p2 = scmp.lt.u32.totalorder %s6807_s0, %s6289_s28 }
 0x1a6   :  { %p6295_p4 = scmp.lt.u32.totalorder %s6289_s28, %s402_s27 }
 0x1a7   :  { %p6294_p3 = por %p6293_p2, %p6292_p1 }
 0x1a9   :  { %p6296_p5 = por %p6295_p4, %p6294_p3 }
 0x1ab   :  { %p6297_p6 = pnand %p6296_p5, %p6290_p0 }
 0x1ad   :  { %6300 = shalt.err (!%p6297_p6)  }
 0x1ae   :  { %s6301_s30 = scalar_lea.vmem %s413_s23, 16  ;;  %p6306_p8 = scmp.lt.s32.totalorder %s413_s23, %s6794_s5 }
 0x1af   :  { %p6302_p7 = scmp.ne.s32.totalorder %s413_s23, %s6301_s30  ;;  %p6307_p9 = scmp.lt.s32.totalorder %s6814_s26, %s6301_s30 }
 0x1b1   :  { %p6308_p10 = por %p6307_p9, %p6306_p8 }
 0x1b3   :  { %p6309_p11 = pnand %p6308_p10, %p6302_p7 }
 0x1b5   :  { %6312 = shalt.err (!%p6309_p11)  }
 0x1b6   :  { %415 = dma.hbm_to_vmem [thread:$0]  %s402_s27, 16, %s413_s23, [#allocation3 + $0xa] }
 0x1b7   :  { %s4816_s2 = sshll.u32 %s6919_s16, 4  ;;  %s6558_s6 = smov [#allocation2 + $0xc]  }
 0x1b8   :  { %s444_s1 = sshll.u32 %s6558_s6, 4  ;;  %s418_s24 = scalar_lea.hbm %s6601_s25, %s4816_s2  ;;  %s6933_s1 = int_to_ptr.vmem [resolvable:$true] %s444_s1 }
 0x1b9   :  { %s6313_s9 = scalar_lea.hbm %s418_s24, 16  ;;  %p6316_p13 = scmp.lt.u32.totalorder %s418_s24, %s6601_s25 }
 0x1ba   :  { %p6314_p12 = scmp.ne.s32.totalorder %s418_s24, %s6313_s9  ;;  %p6317_p0 = scmp.lt.u32.totalorder %s6807_s0, %s6313_s9 }
 0x1bb   :  { %p6319_p2 = scmp.lt.u32.totalorder %s6313_s9, %s418_s24 }
 0x1bc   :  { %p6318_p1 = por %p6317_p0, %p6316_p13 }
 0x1be   :  { %p6320_p3 = por %p6319_p2, %p6318_p1 }
 0x1c0   :  { %p6321_p4 = pnand %p6320_p3, %p6314_p12 }
 0x1c2   :  { %6324 = shalt.err (!%p6321_p4)  }
 0x1c3   :  { %s6325_s10 = scalar_lea.vmem %s6924_s11, 16  ;;  %p6330_p6 = scmp.lt.s32.totalorder %s6924_s11, %s6794_s5 }
 0x1c4   :  { %p6326_p5 = scmp.ne.s32.totalorder %s6924_s11, %s6325_s10  ;;  %p6331_p7 = scmp.lt.s32.totalorder %s6814_s26, %s6325_s10 }
 0x1c6   :  { %p6332_p8 = por %p6331_p7, %p6330_p6 }
 0x1c8   :  { %p6333_p9 = pnand %p6332_p8, %p6326_p5 }
 0x1ca   :  { %6336 = shalt.err (!%p6333_p9)  }
 0x1cb   :  { %431 = dma.hbm_to_vmem [thread:$0]  %s418_s24, 16, %s6924_s11, [#allocation3 + $0xb] }
 0x1cc   :  { %s4818_s8 = sshll.u32 %s6921_s29, 4  ;;  %s6944_s23 = sld [smem:[#allocation4 + $0xd]] }
 0x1cd   :  { %s434_s16 = scalar_lea.hbm %s6601_s25, %s4818_s8 }
 0x1ce   :  { %s6337_s18 = scalar_lea.hbm %s434_s16, 16  ;;  %p6340_p11 = scmp.lt.u32.totalorder %s434_s16, %s6601_s25 }
 0x1cf   :  { %p6338_p10 = scmp.ne.s32.totalorder %s434_s16, %s6337_s18  ;;  %p6341_p12 = scmp.lt.u32.totalorder %s6807_s0, %s6337_s18 }
 0x1d0   :  { %p6343_p0 = scmp.lt.u32.totalorder %s6337_s18, %s434_s16 }
 0x1d1   :  { %p6342_p13 = por %p6341_p12, %p6340_p11 }
 0x1d3   :  { %p6344_p1 = por %p6343_p0, %p6342_p13 }
 0x1d5   :  { %p6345_p2 = pnand %p6344_p1, %p6338_p10 }
 0x1d7   :  { %6348 = shalt.err (!%p6345_p2)  }
 0x1d8   :  { %s6349_s7 = scalar_lea.vmem %s6933_s1, 16  ;;  %p6354_p4 = scmp.lt.s32.totalorder %s6933_s1, %s6794_s5 }
 0x1d9   :  { %p6350_p3 = scmp.ne.s32.totalorder %s6933_s1, %s6349_s7  ;;  %p6355_p5 = scmp.lt.s32.totalorder %s6814_s26, %s6349_s7 }
 0x1db   :  { %p6356_p6 = por %p6355_p5, %p6354_p4 }
 0x1dd   :  { %p6357_p7 = pnand %p6356_p6, %p6350_p3 }
 0x1df   :  { %6360 = shalt.err (!%p6357_p7)  }
 0x1e0   :  { %447 = dma.hbm_to_vmem [thread:$0]  %s434_s16, 16, %s6933_s1, [#allocation3 + $0xc] }
 0x1e1   :  { %s6559_s11 = smov [#allocation2 + $0xd]   ;;  %s6955_s27 = sld [smem:[#allocation4 + $0xe]] }
 0x1e2   :  { %s460_s29 = sshll.u32 %s6559_s11, 4  ;;  %s6560_s28 = smov [#allocation2 + $0xe]   ;;  %s461_s29 = int_to_ptr.vmem [resolvable:$true] %s460_s29 }
 0x1e3   :  { %s476_s30 = sshll.u32 %s6560_s28, 4  ;;  %s6957_s2 = sld [smem:[#allocation4 + $0xf]]  ;;  %s6960_s30 = int_to_ptr.vmem [resolvable:$true] %s476_s30 }
 0x1e4   :  { %s4820_s6 = sshll.u32 %s6944_s23, 4 }
 0x1e5   :  { %s450_s24 = scalar_lea.hbm %s6601_s25, %s4820_s6 }
 0x1e6   :  { %s6361_s9 = scalar_lea.hbm %s450_s24, 16  ;;  %p6364_p9 = scmp.lt.u32.totalorder %s450_s24, %s6601_s25 }
 0x1e7   :  { %p6362_p8 = scmp.ne.s32.totalorder %s450_s24, %s6361_s9  ;;  %p6365_p10 = scmp.lt.u32.totalorder %s6807_s0, %s6361_s9 }
 0x1e8   :  { %p6367_p12 = scmp.lt.u32.totalorder %s6361_s9, %s450_s24 }
 0x1e9   :  { %p6366_p11 = por %p6365_p10, %p6364_p9 }
 0x1eb   :  { %p6368_p13 = por %p6367_p12, %p6366_p11 }
 0x1ed   :  { %p6369_p0 = pnand %p6368_p13, %p6362_p8 }
 0x1ef   :  { %6372 = shalt.err (!%p6369_p0)  }
 0x1f0   :  { %s6373_s1 = scalar_lea.vmem %s461_s29, 16  ;;  %p6378_p2 = scmp.lt.s32.totalorder %s461_s29, %s6794_s5 }
 0x1f1   :  { %p6374_p1 = scmp.ne.s32.totalorder %s461_s29, %s6373_s1  ;;  %p6379_p3 = scmp.lt.s32.totalorder %s6814_s26, %s6373_s1 }
 0x1f3   :  { %p6380_p4 = por %p6379_p3, %p6378_p2 }
 0x1f5   :  { %p6381_p5 = pnand %p6380_p4, %p6374_p1 }
 0x1f7   :  { %6384 = shalt.err (!%p6381_p5)  }
 0x1f8   :  { %463 = dma.hbm_to_vmem [thread:$0]  %s450_s24, 16, %s461_s29, [#allocation3 + $0xd] }
 0x1f9   :  { %s4822_s10 = sshll.u32 %s6955_s27, 4  ;;  %s6561_s8 = smov [#allocation2 + $0xf]  }
 0x1fa   :  { %s492_s23 = sshll.u32 %s6561_s8, 4  ;;  %s466_s16 = scalar_lea.hbm %s6601_s25, %s4822_s10  ;;  %s6969_s23 = int_to_ptr.vmem [resolvable:$true] %s492_s23 }
 0x1fb   :  { %s6385_s18 = scalar_lea.hbm %s466_s16, 16  ;;  %p6388_p7 = scmp.lt.u32.totalorder %s466_s16, %s6601_s25 }
 0x1fc   :  { %p6386_p6 = scmp.ne.s32.totalorder %s466_s16, %s6385_s18  ;;  %p6389_p8 = scmp.lt.u32.totalorder %s6807_s0, %s6385_s18 }
 0x1fd   :  { %p6391_p10 = scmp.lt.u32.totalorder %s6385_s18, %s466_s16 }
 0x1fe   :  { %p6390_p9 = por %p6389_p8, %p6388_p7 }
 0x200   :  { %p6392_p11 = por %p6391_p10, %p6390_p9 }
 0x202   :  { %p6393_p12 = pnand %p6392_p11, %p6386_p6 }
 0x204   :  { %6396 = shalt.err (!%p6393_p12)  }
 0x205   :  { %s6397_s7 = scalar_lea.vmem %s6960_s30, 16  ;;  %p6402_p0 = scmp.lt.s32.totalorder %s6960_s30, %s6794_s5 }
 0x206   :  { %p6398_p13 = scmp.ne.s32.totalorder %s6960_s30, %s6397_s7  ;;  %p6403_p1 = scmp.lt.s32.totalorder %s6814_s26, %s6397_s7 }
 0x208   :  { %p6404_p2 = por %p6403_p1, %p6402_p0 }
 0x20a   :  { %p6405_p3 = pnand %p6404_p2, %p6398_p13 }
 0x20c   :  { %6408 = shalt.err (!%p6405_p3)  }
 0x20d   :  { %479 = dma.hbm_to_vmem [thread:$0]  %s466_s16, 16, %s6960_s30, [#allocation3 + $0xe] }
 0x20e   :  { %s4824_s11 = sshll.u32 %s6957_s2, 4 }
 0x20f   :  { %s482_s29 = scalar_lea.hbm %s6601_s25, %s4824_s11 }
 0x210   :  { %s6409_s27 = scalar_lea.hbm %s482_s29, 16  ;;  %p6412_p5 = scmp.lt.u32.totalorder %s482_s29, %s6601_s25 }
 0x211   :  { %p6410_p4 = scmp.ne.s32.totalorder %s482_s29, %s6409_s27  ;;  %p6413_p6 = scmp.lt.u32.totalorder %s6807_s0, %s6409_s27 }
 0x212   :  { %p6415_p8 = scmp.lt.u32.totalorder %s6409_s27, %s482_s29 }
 0x213   :  { %p6414_p7 = por %p6413_p6, %p6412_p5 }
 0x215   :  { %p6416_p9 = por %p6415_p8, %p6414_p7 }
 0x217   :  { %p6417_p10 = pnand %p6416_p9, %p6410_p4 }
 0x219   :  { %6420 = shalt.err (!%p6417_p10)  }
 0x21a   :  { %s6421_s28 = scalar_lea.vmem %s6969_s23, 16  ;;  %p6426_p12 = scmp.lt.s32.totalorder %s6969_s23, %s6794_s5 }
 0x21b   :  { %p6422_p11 = scmp.ne.s32.totalorder %s6969_s23, %s6421_s28  ;;  %p6427_p13 = scmp.lt.s32.totalorder %s6814_s26, %s6421_s28 }
 0x21d   :  { %p6428_p0 = por %p6427_p13, %p6426_p12 }
 0x21f   :  { %p6429_p1 = pnand %p6428_p0, %p6422_p11 }
 0x221   :  { %6432 = shalt.err (!%p6429_p1)  }
 0x222   :  { %495 = dma.hbm_to_vmem [thread:$0]  %s482_s29, 16, %s6969_s23, [#allocation3 + $0xf] }
 0x223   :  { %6467 = dma.done.wait [#allocation3], 16 }
 0x224   :  { %6468 = vsyncadd [#allocation3], 4294967280 }
 0x225   :  { %6469 = dma.done.wait [#allocation3 + $0x1], 16 }
 0x226   :  { %6470 = vsyncadd [#allocation3 + $0x1], 4294967280 }
 0x227   :  { %6471 = dma.done.wait [#allocation3 + $0x2], 16 }
 0x228   :  { %6472 = vsyncadd [#allocation3 + $0x2], 4294967280 }
 0x229   :  { %6473 = dma.done.wait [#allocation3 + $0x3], 16 }
 0x22a   :  { %6474 = vsyncadd [#allocation3 + $0x3], 4294967280 }
 0x22b   :  { %6475 = dma.done.wait [#allocation3 + $0x4], 16 }
 0x22c   :  { %6476 = vsyncadd [#allocation3 + $0x4], 4294967280 }
 0x22d   :  { %6477 = dma.done.wait [#allocation3 + $0x5], 16 }
 0x22e   :  { %6478 = vsyncadd [#allocation3 + $0x5], 4294967280 }
 0x22f   :  { %6479 = dma.done.wait [#allocation3 + $0x6], 16 }
 0x230   :  { %6480 = vsyncadd [#allocation3 + $0x6], 4294967280 }
 0x231   :  { %6481 = dma.done.wait [#allocation3 + $0x7], 16 }
 0x232   :  { %6482 = vsyncadd [#allocation3 + $0x7], 4294967280 }
 0x233   :  { %6483 = dma.done.wait [#allocation3 + $0x8], 16 }
 0x234   :  { %6484 = vsyncadd [#allocation3 + $0x8], 4294967280 }
 0x235   :  { %6485 = dma.done.wait [#allocation3 + $0x9], 16 }
 0x236   :  { %6486 = vsyncadd [#allocation3 + $0x9], 4294967280 }
 0x237   :  { %6487 = dma.done.wait [#allocation3 + $0xa], 16 }
 0x238   :  { %6488 = vsyncadd [#allocation3 + $0xa], 4294967280 }
 0x239   :  { %6489 = dma.done.wait [#allocation3 + $0xb], 16 }
 0x23a   :  { %6490 = vsyncadd [#allocation3 + $0xb], 4294967280 }
 0x23b   :  { %6491 = dma.done.wait [#allocation3 + $0xc], 16 }
 0x23c   :  { %6492 = vsyncadd [#allocation3 + $0xc], 4294967280 }
 0x23d   :  { %6493 = dma.done.wait [#allocation3 + $0xd], 16 }
 0x23e   :  { %6494 = vsyncadd [#allocation3 + $0xd], 4294967280 }
 0x23f   :  { %6495 = dma.done.wait [#allocation3 + $0xe], 16 }
 0x240   :  { %6496 = vsyncadd [#allocation3 + $0xe], 4294967280 }
 0x241   :  { %6497 = dma.done.wait [#allocation3 + $0xf], 16 }
 0x242   :  { %6498 = vsyncadd [#allocation3 + $0xf], 4294967280  ;;  %v6562_v0 = vmov 0   ;;  %v6563_v1 = vmov 0.0   ;;  %v530_v2 = vld [vmem:[%s6586_s13] sm:$0xff]  ;;  %v531_v3 = vld [vmem:[%s6586_s13 + $0x8] sm:$0xff]  ;;  %v575_v50 = vlaneseq }
 0x243   :  { %5634 = vset.pattern.permute.xlu1 %v6562_v0  ;;  %5633 = vset.pattern.permute.xlu0 %v6562_v0  ;;  %v533_v4 = vsub.f32 1.0, %v530_v2  ;;  %v5635_v5 = vld [vmem:[#allocation10 + $0x4] ss:$12 sps:$4 sm:$0xff]   ;;  %v5637_v6 = vld [vmem:[#allocation10] ss:$12 sps:$4 sm:$0xff]   ;;  %v534_v7 = vsub.f32 1.0, %v531_v3 }
 0x244   :  { %5206 = vmatprep.subr.bf16.mxu1 %v6563_v1  ;;  %787 = vmatprep.mubr.bf16.mxu0 %v6562_v0  ;;  %v5638_v8 = vld [vmem:[#allocation10 + $0x8] ss:$12 sps:$4 sm:$0xff]   ;;  %v5641_v10 = vld [vmem:[#allocation10 + $0x18] ss:$12 sps:$4 sm:$0xff]   ;;  %v5642_v11 = vld [vmem:[#allocation10 + $0x20] ss:$12 sps:$4 sm:$0xff]  }
 0x245   :  { %558 = vperm.xlu1 %5634, %v530_v2   ;;  %541 = vperm.xlu0 %5633, %v533_v4   ;;  %v5639_v9 = vld [vmem:[#allocation10 + $0x1c] ss:$12 sps:$4 sm:$0xff]   ;;  %v5643_v12 = vld [vmem:[#allocation10 + $0x34] ss:$12 sps:$4 sm:$0xff]   ;;  %v5646_v14 = vld [vmem:[#allocation10 + $0x38] ss:$12 sps:$4 sm:$0xff]  }
 0x246   :  { %755 = vmatprep.subr.bf16.mxu0 %v5635_v5  ;;  %5207 = vmatpush3.bf16.msra.mxu1 %v5638_v8  ;;  %v5645_v13 = vld [vmem:[#allocation10 + $0x30] ss:$12 sps:$4 sm:$0xff]   ;;  %v5647_v15 = vld [vmem:[#allocation10 + $0x4c] ss:$12 sps:$4 sm:$0xff]   ;;  %v5649_v16 = vld [vmem:[#allocation10 + $0x48] ss:$12 sps:$4 sm:$0xff]  }
 0x247   :  { %756 = vmatpush1.bf16.msra.mxu0 %v5637_v6  ;;  %5208 = vmatprep.subr.bf16.mxu1 %v6563_v1  ;;  %v5650_v17 = vld [vmem:[#allocation10 + $0x50] ss:$12 sps:$4 sm:$0xff]   ;;  %vm6564_vm0 = vmmov 0   ;;  %v5653_v19 = vld [vmem:[#allocation10 + $0x60] ss:$12 sps:$4 sm:$0xff]   ;;  %v7019_v51 = vshrl.u32 %v575_v50, 7 }
 0x248   :  { %757 = vmatprep.subr.bf16.mxu0 %v5639_v9  ;;  %v5651_v18 = vld [vmem:[#allocation10 + $0x64] ss:$12 sps:$4 sm:$0xff]   ;;  %5222 = vmatprep.mubr.msk.bf16.mxu1 %vm6564_vm0, %v6563_v1  ;;  %v5654_v20 = vld [vmem:[#allocation10 + $0x68] ss:$12 sps:$4 sm:$0xff]   ;;  %v5658_v23 = vld [vmem:[#allocation10 + $0x80] ss:$12 sps:$4 sm:$0xff]  }
 0x249   :  { %563 = vperm.xlu1 %5634, %v531_v3   ;;  %546 = vperm.xlu0 %5633, %v534_v7   ;;  %v5655_v21 = vld [vmem:[#allocation10 + $0x7c] ss:$12 sps:$4 sm:$0xff]   ;;  %v5657_v22 = vld [vmem:[#allocation10 + $0x78] ss:$12 sps:$4 sm:$0xff]   ;;  %v5659_v24 = vld [vmem:[#allocation10 + $0x94] ss:$12 sps:$4 sm:$0xff]  }
 0x24a   :  { %5209 = vmatpush3.bf16.msra.mxu1 %v5642_v11  ;;  %v5661_v25 = vld [vmem:[#allocation10 + $0x90] ss:$12 sps:$4 sm:$0xff]   ;;  %v5662_v26 = vld [vmem:[#allocation10 + $0x98] ss:$12 sps:$4 sm:$0xff]   ;;  %v5665_v28 = vld [vmem:[#allocation10 + $0xa8] ss:$12 sps:$4 sm:$0xff]  }
 0x24b   :  { %758 = vmatpush1.bf16.msra.mxu0 %v5641_v10  ;;  %5210 = vmatprep.subr.bf16.mxu1 %v6563_v1  ;;  %v5663_v27 = vld [vmem:[#allocation10 + $0xac] ss:$12 sps:$4 sm:$0xff]   ;;  %v5666_v29 = vld [vmem:[#allocation10 + $0xb0] ss:$12 sps:$4 sm:$0xff]   ;;  %v7022_v52 = vsub.s32 0, %v7019_v51  ;;  %v622_v53 = vsub.s32 2, %v7019_v51 }
 0x24c   :  { %759 = vmatprep.subr.bf16.mxu0 %v5643_v12  ;;  %v4826_v30 = vld [vmem:[%s6591_s17 + $0x1] ss:$0 sm:$0xff]  ;;  %v4825_v32 = vld [vmem:[%s6591_s17] ss:$0 sm:$0xff]  ;;  %v529_v42 = vld [vmem:[#allocation2 + $0x8] sm:$0xff]  ;;  %v7027_v55 = vsub.s32 1, %v7019_v51 }
 0x24d   :  { %v528_v38 = vld [vmem:[#allocation2] sm:$0xff]  ;;  %vm910_vm1 = vcmask 1043456   ;;  %vm845_vm2 = vcmask 261120   ;;  %s6565_s13 = smov 96   ;;  %s839_s17 = sld [smem:[#allocation8]]  ;;  %vm894_vm4 = vcmask 64512  }
 0x24e   :  { %5211 = vmatpush3.bf16.msra.mxu1 %v5646_v14  ;;  %v570_v45 = vld [vmem:[%s6596_s21] sm:$0xff]  ;;  %s6566_s21 = smov 32   ;;  %s4871_s25 = sld [smem:[#allocation8 + $0x1]] }
 0x24f   :  { %760 = vmatpush1.bf16.msra.mxu0 %v5645_v13  ;;  %5212 = vmatprep.subr.bf16.mxu1 %v6563_v1  ;;  %v610_v54 = vld [vmem:[%s6611_s3] sm:$0x7]  ;;  %s7658_s3 = sld [smem:[#allocation78_spill]]  ;;  %s7659_s5 = sld [smem:[#allocation79_spill]] }
 0x250   :  { %761 = vmatprep.subr.bf16.mxu0 %v5647_v15  ;;  %v615_v56 = vrot.slane %v610_v54, %v7022_v52  ;;  %v623_v57 = vrot.slane %v610_v54, %v622_v53  ;;  %v619_v58 = vrot.slane %v610_v54, %v7027_v55  ;;  %s7660_s0 = sld [smem:[#allocation80_spill]]  ;;  %s7661_s26 = sld [smem:[#allocation81_spill]] }
 0x251   :  { %s7662_s30 = sld [smem:[#allocation82_spill]]  ;;  %s7663_s2 = sld [smem:[#allocation83_spill]] }
 0x252   :  { %5213 = vmatpush3.bf16.msra.mxu1 %v5650_v17  ;;  %s7664_s6 = sld [smem:[#allocation84_spill]]  ;;  %s7665_s24 = sld [smem:[#allocation85_spill]] }
 0x253   :  { %762 = vmatpush1.bf16.msra.mxu0 %v5649_v16  ;;  %5214 = vmatprep.subr.bf16.mxu1 %v6563_v1  ;;  %s7666_s9 = sld [smem:[#allocation86_spill]]  ;;  %s7668_s1 = sld [smem:[#allocation88_spill]] }
 0x254   :  { %763 = vmatprep.subr.bf16.mxu0 %v5651_v18  ;;  %s7669_s10 = sld [smem:[#allocation89_spill]]  ;;  %s7670_s8 = sld [smem:[#allocation90_spill]] }
 0x256   :  { %5215 = vmatpush3.bf16.msra.mxu1 %v5654_v20  ;;  %v840_v20 = vstv %s839_s17 }
 0x257   :  { %764 = vmatpush1.bf16.msra.mxu0 %v5653_v19  ;;  %5216 = vmatprep.subr.bf16.mxu1 %v6563_v1  ;;  %v7064_v19 = vand.u32 127, %v575_v50 }
 0x258   :  { %765 = vmatprep.subr.bf16.mxu0 %v5655_v21 }
 0x259   :  { %vm7067_vm3 = vcmp.lt.s32.totalorder %v7064_v19, %v840_v20 }
 0x25a   :  { %5217 = vmatpush3.bf16.msra.mxu1 %v5658_v23 }
 0x25b   :  { %766 = vmatpush1.bf16.msra.mxu0 %v5657_v22  ;;  %5218 = vmatprep.subr.bf16.mxu1 %v6563_v1 }
 0x25c   :  { %767 = vmatprep.subr.bf16.mxu0 %v5659_v24 }
 0x25e   :  { %5219 = vmatpush3.bf16.msra.mxu1 %v5662_v26 }
 0x25f   :  { %768 = vmatpush1.bf16.msra.mxu0 %v5661_v25  ;;  %5220 = vmatprep.subr.bf16.mxu1 %v6563_v1 }
 0x260   :  { %769 = vmatprep.subr.bf16.mxu0 %v5663_v27 }
 0x262   :  { %5221 = vmatpush3.bf16.msra.mxu1 %v5666_v29 }
 0x263   :  { %770 = vmatpush1.bf16.msra.mxu0 %v5665_v28  ;;  %5232 = vmatprep.subr.bf16.mxu1 %v6563_v1 }
 0x264   :  { %5226 = vmatprep.subr.bf16.mxu0 %v6563_v1 }
 0x2c4   :  { %v559_v31 = vpop.permute.xlu1 %558  ;;  %v542_v34 = vpop.permute.xlu0 %541 }
 0x2c5   :  { %v566_v33 = vmul.f32 %v4826_v30, %v559_v31  ;;  %v549_v35 = vmul.f32 %v4825_v32, %v542_v34 }
 0x2c7   :  { %v568_v37 = vadd.f32 %v566_v33, %v549_v35 }
 0x2c8   :  { %v564_v36 = vpop.permute.xlu1 %563  ;;  %v547_v39 = vpop.permute.xlu0 %546 }
 0x2c9   :  { %v567_v40 = vmul.f32 %v4826_v30, %v564_v36  ;;  %v550_v41 = vmul.f32 %v4825_v32, %v547_v39  ;;  %v571_v43 = vadd.f32 %v568_v37, %v528_v38 }
 0x2cb   :  { %v569_v44 = vadd.f32 %v567_v40, %v550_v41  ;;  %v7009_v47 = vadd.f32 %v571_v43, %v570_v45 }
 0x2cd   :  { %v572_v46 = vadd.f32 %v569_v44, %v529_v42 }
 0x2cf   :  { %v7011_v48 = vadd.f32 %v572_v46, %v570_v45 }
 0x2d1   :  { %v577_v49 = vpack.c.bf16 %v7011_v48, %v7009_v47 }
 0x2d3   :  { %788 = vmatmul.mubr.bf16.vlgmr.msra.gmra.mrb[0].mxu0 %v577_v49  ;;  %5223 = vmatmul.mubr.bf16.vlgmr.msra.gmra.mrb[0].mxu1 %v577_v49 }
 0x2d4   :  { %5228 = vmatprep.mubr.msk.bf16.mxu0 %vm6564_vm0, %v6563_v1  ;;  %5234 = vmatprep.mubr.msk.bf16.mxu1 %vm6564_vm0, %v6563_v1 }
 0x3a6   :  { %v789_v59 = vpop.f32.mrb[0].mxu0  ;;  %v832_v60 = vpop.f32.mrb[0].mxu1 }
 0x3a7   :  { %v790_v61 = vadd.f32 %v789_v59, %v615_v56  ;;  %v833_v62 = vadd.f32 %v832_v60, %v623_v57  ;;  %v791_v63 = vpop.f32.mrb[1].mxu0  ;;  %v5224_v2 = vpop.f32.mrb[1].mxu1  ;;  %v7093_v59 = vld [vmem:[#allocation11 + $0x18] sm:$0xff]  }
 0x3a8   :  { %v792_v3 = vadd.f32 %v791_v63, %v619_v58  ;;  %v793_v4 = vpop.f32.mrb[2].mxu0  ;;  %v835_v5 = vpop.f32.mrb[2].mxu1  ;;  %v7098_v63 = vld [vmem:[#allocation11] sm:$0xff]  }
 0x3a9   :  { %v7033_v6 = vpack.c.bf16 %v790_v61, %v790_v61  ;;  %v7035_v7 = vpack.c.bf16 %v833_v62, %v833_v62  ;;  %v7037_v8 = vadd.f32 %v793_v4, %v615_v56  ;;  %v7039_v9 = vadd.f32 %v835_v5, %v623_v57  ;;  %v795_v10 = vpop.f32.mrb[3].mxu0  ;;  %v5225_v11 = vpop.f32.mrb[3].mxu1 }
 0x3aa   :  { %v7041_v12 = vpack.c.bf16 %v792_v3, %v792_v3  ;;  %v7043_v13 = vadd.f32 %v795_v10, %v619_v58  ;;  %v7090_v58 = vld [vmem:[#allocation11 + $0x10] sm:$0xff]   ;;  %v7102_v3 = vld [vmem:[#allocation11 + $0x8] sm:$0xff]  }
 0x3ab   :  { %960 = vrot.lane.b32.xlu1 %v7033_v6, %s6565_s13  ;;  %v912_v14 = vsel %vm910_vm1, %v7035_v7, 0 }
 0x3ac   :  { %5233 = vmatpush3.bf16.msra.mxu1 %v912_v14  ;;  %963 = vrot.lane.b32.xlu0 %v7041_v12, %s6565_s13  ;;  %v850_v15 = vsel %vm845_vm2, %v7041_v12, 0 }
 0x3ad   :  { %5227 = vmatpush3.bf16.xpose.msra.mxu0 %v850_v15  ;;  %5244 = vmatprep.subr.bf16.mxu1 %v6563_v1 }
 0x3ae   :  { %5238 = vmatprep.subr.bf16.mxu0 %v6563_v1 }
 0x3b4   :  { %5229 = vmatmul.mubr.msk.bf16.vlgmr.msra.gmra.mrb[4].mxu0 %vm845_vm2, %v7033_v6 }
 0x3b5   :  { %5240 = vmatprep.mubr.msk.bf16.mxu0 %vm6564_vm0, %v6563_v1 }
 0x41d   :  { %v961_v18 = vpop.permute.xlu1 %960 }
 0x41e   :  { %v964_v16 = vpop.permute.xlu0 %963 }
 0x41f   :  { %v969_v17 = vsel %vm845_vm2, %v964_v16, 0 }
 0x420   :  { %5239 = vmatpush3.bf16.xpose.msra.mxu0 %v969_v17 }
 0x421   :  { %5250 = vmatprep.subr.bf16.mxu0 %v6563_v1 }
 0x427   :  { %5241 = vmatmul.mubr.msk.bf16.vlgmr.msra.gmra.mrb[8].mxu0 %vm845_vm2, %v961_v18 }
 0x428   :  { %5254 = vmatprep.mubr.msk.bf16.mxu0 %vm6564_vm0, %v6563_v1  ;;  %5251 = vmatpush3.bf16.msra.mxu0 %v7090_v58 }
 0x429   :  { %5252 = vmatprep.subr.bf16.mxu0 %v6563_v1 }
 0x42c   :  { %5253 = vmatpush3.bf16.msra.mxu0 %v7093_v59 }
 0x42d   :  { %5266 = vmatprep.subr.bf16.mxu0 %v6563_v1 }
 0x487   :  { %v886_v21 = vpop.f32.mrb[4].mxu0 }
 0x488   :  { %v892_v23 = vmul.f32 0.17677669, %v886_v21  ;;  %v5230_v24 = vpop.f32.mrb[5].mxu0 }
 0x489   :  { %v889_v25 = vpop.f32.mrb[6].mxu0 }
 0x48a   :  { %v5231_v26 = vpop.f32.mrb[7].mxu0  ;;  %v893_v27 = vsel %vm7067_vm3, %v892_v23, -1000000.0 }
 0x48b   :  { %v895_v28 = vsel %vm894_vm4, %v893_v27, -inf }
 0x48c   :  { %896 = vmax.xlane.f32.xlu0 %v895_v28 }
 0x4fa   :  { %v1005_v29 = vpop.f32.mrb[8].mxu0 }
 0x4fb   :  { %v1011_v30 = vmul.f32 0.17677669, %v1005_v29  ;;  %v5242_v31 = vpop.f32.mrb[9].mxu0 }
 0x4fc   :  { %v1008_v32 = vpop.f32.mrb[10].mxu0 }
 0x4fd   :  { %v5243_v33 = vpop.f32.mrb[11].mxu0  ;;  %v1012_v34 = vsel %vm7067_vm3, %v1011_v30, -1000000.0 }
 0x4fe   :  { %v1013_v35 = vsel %vm894_vm4, %v1012_v34, -inf }
 0x4ff   :  { %1014 = vmax.xlane.f32.xlu1 %v1013_v35 }
 0x510   :  { %1026 = vrot.lane.b32.xlu1 %v7035_v7, %s6565_s13 }
 0x514   :  { %1189 = vrot.lane.b32.xlu1 %v7033_v6, %s6532_s22 }
 0x519   :  { %v897_v36 = vpop.xlane.xlu0 %896 }
 0x51a   :  { %v898_v37 = vsub.f32 %v893_v27, %v897_v36 }
 0x51c   :  { %v899_v38 = vmul.f32 1.442695, %v898_v37 }
 0x51e   :  { %5795 = vpow2.f32 %v899_v38 }
 0x528   :  { %v5796_v39 = vpop.eup %5795 }
 0x529   :  { %v901_v40 = vsel %vm894_vm4, %v5796_v39, 0.0 }
 0x52a   :  { %902 = vadd.xlane.f32.xlu0 %v901_v40 }
 0x58c   :  { %v1015_v41 = vpop.xlane.xlu1 %1014 }
 0x58d   :  { %v1016_v42 = vsub.f32 %v1012_v34, %v1015_v41 }
 0x58f   :  { %v1017_v43 = vmul.f32 1.442695, %v1016_v42 }
 0x590   :  { %v1027_v54 = vpop.permute.xlu1 %1026 }
 0x591   :  { %5797 = vpow2.f32 %v1017_v43  ;;  %v1032_v57 = vsel %vm910_vm1, %v1027_v54, 0 }
 0x594   :  { %v1190_v24 = vpop.permute.xlu1 %1189 }
 0x59b   :  { %v5798_v44 = vpop.eup %5797 }
 0x59c   :  { %v1019_v45 = vsel %vm894_vm4, %v5798_v44, 0.0 }
 0x59d   :  { %1020 = vadd.xlane.f32.xlu0 %v1019_v45 }
 0x5b3   :  { %1191 = vrot.lane.b32.xlu0 %v7041_v12, %s6532_s22 }
 0x5b7   :  { %v903_v46 = vpop.xlane.xlu0 %902 }
 0x5b8   :  { %5799 = vrcp.f32 %v903_v46  ;;  %v7132_v46 = vld [vmem:[#allocation11 + $0x20] sm:$0xff]  }
 0x5c2   :  { %v5800_v49 = vpop.eup %5799 }
 0x5c3   :  { %v905_v50 = vmul.f32 %v5800_v49, %v5796_v39 }
 0x5c5   :  { %v906_v56 = vpack.c.bf16 %v905_v50, %v905_v50 }
 0x5c7   :  { %5235 = vmatmul.mubr.msk.bf16.vlgmr.msra.gmra.mrb[4].mxu1 %vm894_vm4, %v906_v56 }
 0x5c8   :  { %5245 = vmatpush3.bf16.msra.mxu1 %v1032_v57  ;;  %5246 = vmatprep.mubr.msk.bf16.mxu1 %vm6564_vm0, %v6563_v1 }
 0x5c9   :  { %5258 = vmatprep.subr.bf16.mxu1 %v6563_v1 }
 0x62a   :  { %v1021_v60 = vpop.xlane.xlu0 %1020 }
 0x62b   :  { %5801 = vrcp.f32 %v1021_v60 }
 0x62e   :  { %v1192_v15 = vpop.permute.xlu0 %1191 }
 0x62f   :  { %v1197_v21 = vsel %vm845_vm2, %v1192_v15, 0 }
 0x635   :  { %v5802_v61 = vpop.eup %5801 }
 0x636   :  { %v1023_v62 = vmul.f32 %v5802_v61, %v5798_v44 }
 0x638   :  { %v1024_v2 = vpack.c.bf16 %v1023_v62, %v1023_v62  ;;  %v7146_v62 = vld [vmem:[#allocation11 + $0x28] sm:$0xff]  }
 0x63a   :  { %5247 = vmatmul.mubr.msk.bf16.vlgmr.msra.gmra.mrb[8].mxu1 %vm894_vm4, %v1024_v2 }
 0x63b   :  { %5259 = vmatpush3.bf16.msra.mxu1 %v7098_v63  ;;  %5262 = vmatprep.mubr.msk.bf16.mxu1 %vm6564_vm0, %v6563_v1 }
 0x63c   :  { %5260 = vmatprep.subr.bf16.mxu1 %v6563_v1 }
 0x63f   :  { %5261 = vmatpush3.bf16.msra.mxu1 %v7102_v3 }
 0x640   :  { %5272 = vmatprep.subr.bf16.mxu1 %v6563_v1 }
 0x69a   :  { %v948_v4 = vpop.f32.mrb[4].mxu1 }
 0x69b   :  { %v954_v5 = vpack.c.bf16 %v948_v4, %v948_v4  ;;  %v5236_v10 = vpop.f32.mrb[5].mxu1 }
 0x69c   :  { %v951_v11 = vpop.f32.mrb[6].mxu1 }
 0x69d   :  { %v5237_v14 = vpop.f32.mrb[7].mxu1  ;;  %5263 = vmatmul.mubr.msk.bf16.vlgmr.msra.gmra.mrb[12].mxu1 %vm845_vm2, %v954_v5 }
 0x69e   :  { %5274 = vmatprep.mubr.msk.bf16.mxu1 %vm6564_vm0, %v6563_v1 }
 0x70d   :  { %v1068_v16 = vpop.f32.mrb[8].mxu1 }
 0x70e   :  { %v1074_v17 = vpack.c.bf16 %v1068_v16, %v1068_v16  ;;  %v5248_v18 = vpop.f32.mrb[9].mxu1 }
 0x70f   :  { %v1071_v20 = vpop.f32.mrb[10].mxu1 }
 0x710   :  { %v5249_v23 = vpop.f32.mrb[11].mxu1  ;;  %5255 = vmatmul.mubr.msk.bf16.vlgmr.msra.gmra.mrb[12].mxu0 %vm845_vm2, %v1074_v17 }
 0x711   :  { %5267 = vmatpush3.bf16.xpose.msra.mxu0 %v1197_v21  ;;  %5268 = vmatprep.mubr.msk.bf16.mxu0 %vm6564_vm0, %v6563_v1  ;;  %v7160_v23 = vpack.c.bf16 %v7037_v8, %v7037_v8  ;;  %v7169_v8 = vpack.c.bf16 %v7043_v13, %v7043_v13 }
 0x712   :  { %5278 = vmatprep.subr.bf16.mxu0 %v6563_v1 }
 0x718   :  { %5269 = vmatmul.mubr.msk.bf16.vlgmr.msra.gmra.mrb[16].mxu0 %vm845_vm2, %v1190_v24 }
 0x719   :  { %5282 = vmatprep.mubr.msk.bf16.mxu0 %vm6564_vm0, %v6563_v1  ;;  %5279 = vmatpush3.bf16.msra.mxu0 %v7132_v46 }
 0x71a   :  { %5280 = vmatprep.subr.bf16.mxu0 %v6563_v1 }
 0x71d   :  { %5281 = vmatpush3.bf16.msra.mxu0 %v7146_v62 }
 0x71e   :  { %5292 = vmatprep.subr.bf16.mxu0 %v6563_v1 }
 0x770   :  { %v1183_v25 = vpop.f32.mrb[12].mxu1 }
 0x771   :  { %v5264_v26 = vpop.f32.mrb[13].mxu1 }
 0x772   :  { %v1186_v27 = vpop.f32.mrb[14].mxu1 }
 0x773   :  { %v5265_v28 = vpop.f32.mrb[15].mxu1 }
 0x7e3   :  { %v1128_v29 = vpop.f32.mrb[12].mxu0 }
 0x7e4   :  { %v7120_v30 = vadd.f32 %v1183_v25, %v1128_v29  ;;  %v5256_v31 = vpop.f32.mrb[13].mxu0 }
 0x7e5   :  { %v1131_v32 = vpop.f32.mrb[14].mxu0 }
 0x7e6   :  { %v5257_v33 = vpop.f32.mrb[15].mxu0 }
 0x7eb   :  { %v1233_v34 = vpop.f32.mrb[16].mxu0 }
 0x7ec   :  { %v1239_v35 = vmul.f32 0.17677669, %v1233_v34  ;;  %v5270_v36 = vpop.f32.mrb[17].mxu0 }
 0x7ed   :  { %v1236_v37 = vpop.f32.mrb[18].mxu0 }
 0x7ee   :  { %v5271_v38 = vpop.f32.mrb[19].mxu0  ;;  %v1240_v39 = vsel %vm7067_vm3, %v1239_v35, -1000000.0  ;;  %v7176_v35 = vld [vmem:[#allocation11 + $0x30] sm:$0xff]   ;;  %v7179_v37 = vld [vmem:[#allocation11 + $0x38] sm:$0xff]  }
 0x7ef   :  { %v1241_v40 = vsel %vm894_vm4, %v1240_v39, -inf }
 0x7f0   :  { %1242 = vmax.xlane.f32.xlu1 %v1241_v40  ;;  %v1545_v40 = vsel %vm845_vm2, %v7169_v8, 0 }
 0x801   :  { %1364 = vrot.lane.b32.xlu1 %v7041_v12, %s6566_s21 }
 0x805   :  { %1362 = vrot.lane.b32.xlu1 %v7033_v6, %s6566_s21 }
 0x87d   :  { %v1243_v41 = vpop.xlane.xlu1 %1242 }
 0x87e   :  { %v1244_v42 = vsub.f32 %v1240_v39, %v1243_v41 }
 0x880   :  { %v1245_v43 = vmul.f32 1.442695, %v1244_v42 }
 0x881   :  { %v1365_v56 = vpop.permute.xlu1 %1364 }
 0x882   :  { %5803 = vpow2.f32 %v1245_v43  ;;  %v1370_v60 = vsel %vm845_vm2, %v1365_v56, 0 }
 0x885   :  { %v1363_v61 = vpop.permute.xlu1 %1362 }
 0x88c   :  { %v5804_v44 = vpop.eup %5803 }
 0x88d   :  { %v1247_v45 = vsel %vm894_vm4, %v5804_v44, 0.0 }
 0x88e   :  { %1248 = vadd.xlane.f32.xlu0 %v1247_v45 }
 0x8a4   :  { %1253 = vrot.lane.b32.xlu0 %v7035_v7, %s6532_s22 }
 0x91b   :  { %v1249_v12 = vpop.xlane.xlu0 %1248 }
 0x91c   :  { %5805 = vrcp.f32 %v1249_v12 }
 0x91f   :  { %v1254_v6 = vpop.permute.xlu0 %1253 }
 0x920   :  { %v1259_v49 = vsel %vm910_vm1, %v1254_v6, 0 }
 0x921   :  { %5273 = vmatpush3.bf16.msra.mxu1 %v1259_v49 }
 0x922   :  { %5286 = vmatprep.subr.bf16.mxu1 %v6563_v1 }
 0x926   :  { %v5806_v50 = vpop.eup %5805 }
 0x927   :  { %v1251_v54 = vmul.f32 %v5806_v50, %v5804_v44  ;;  %v7205_v44 = vpack.c.bf16 %v7039_v9, %v7039_v9 }
 0x929   :  { %v1252_v57 = vpack.c.bf16 %v1251_v54, %v1251_v54 }
 0x92b   :  { %5275 = vmatmul.mubr.msk.bf16.vlgmr.msra.gmra.mrb[16].mxu1 %vm894_vm4, %v1252_v57 }
 0x92c   :  { %5287 = vmatpush3.bf16.xpose.msra.mxu1 %v1370_v60  ;;  %5288 = vmatprep.mubr.msk.bf16.mxu1 %vm6564_vm0, %v6563_v1 }
 0x92d   :  { %5298 = vmatprep.subr.bf16.mxu1 %v6563_v1 }
 0x933   :  { %5289 = vmatmul.mubr.msk.bf16.vlgmr.msra.gmra.mrb[20].mxu1 %vm845_vm2, %v1363_v61 }
 0x934   :  { %5302 = vmatprep.mubr.msk.bf16.mxu1 %vm6564_vm0, %v6563_v1  ;;  %5299 = vmatpush3.bf16.msra.mxu1 %v7176_v35 }
 0x935   :  { %5300 = vmatprep.subr.bf16.mxu1 %v6563_v1 }
 0x938   :  { %5301 = vmatpush3.bf16.msra.mxu1 %v7179_v37 }
 0x939   :  { %5312 = vmatprep.subr.bf16.mxu1 %v6563_v1 }
 0x9fe   :  { %v1295_v2 = vpop.f32.mrb[16].mxu1 }
 0x9ff   :  { %v1301_v4 = vpack.c.bf16 %v1295_v2, %v1295_v2  ;;  %v5276_v5 = vpop.f32.mrb[17].mxu1 }
 0xa00   :  { %v1298_v10 = vpop.f32.mrb[18].mxu1 }
 0xa01   :  { %v5277_v11 = vpop.f32.mrb[19].mxu1  ;;  %5283 = vmatmul.mubr.msk.bf16.vlgmr.msra.gmra.mrb[20].mxu0 %vm845_vm2, %v1301_v4 }
 0xa02   :  { %5294 = vmatprep.mubr.msk.bf16.mxu0 %vm6564_vm0, %v6563_v1 }
 0xa06   :  { %v1406_v14 = vpop.f32.mrb[20].mxu1 }
 0xa07   :  { %v1412_v15 = vmul.f32 0.17677669, %v1406_v14  ;;  %v5290_v16 = vpop.f32.mrb[21].mxu1 }
 0xa08   :  { %v1409_v17 = vpop.f32.mrb[22].mxu1 }
 0xa09   :  { %v5291_v18 = vpop.f32.mrb[23].mxu1  ;;  %v1413_v20 = vsel %vm7067_vm3, %v1412_v15, -1000000.0 }
 0xa0a   :  { %v1414_v21 = vsel %vm894_vm4, %v1413_v20, -inf }
 0xa0b   :  { %1415 = vmax.xlane.f32.xlu0 %v1414_v21 }
 0xa21   :  { %1426 = vrot.lane.b32.xlu0 %v7035_v7, %s6566_s21 }
 0xa25   :  { %1649 = vrot.lane.b32.xlu0 %v7160_v23, %s6565_s13 }
 0xa98   :  { %v1416_v24 = vpop.xlane.xlu0 %1415 }
 0xa99   :  { %v1417_v25 = vsub.f32 %v1413_v20, %v1416_v24 }
 0xa9b   :  { %v1418_v26 = vmul.f32 1.442695, %v1417_v25 }
 0xa9c   :  { %v1427_v27 = vpop.permute.xlu0 %1426 }
 0xa9d   :  { %5807 = vpow2.f32 %v1418_v26  ;;  %v1432_v28 = vsel %vm910_vm1, %v1427_v27, 0 }
 0xa9e   :  { %5293 = vmatpush3.bf16.msra.mxu0 %v1432_v28 }
 0xa9f   :  { %5306 = vmatprep.subr.bf16.mxu0 %v6563_v1 }
 0xaa0   :  { %v1650_v43 = vpop.permute.xlu0 %1649 }
 0xaa7   :  { %v5808_v29 = vpop.eup %5807 }
 0xaa8   :  { %v1420_v7 = vsel %vm894_vm4, %v5808_v29, 0.0 }
 0xaa9   :  { %1421 = vadd.xlane.f32.xlu1 %v1420_v7 }
 0xaba   :  { %1652 = vrot.lane.b32.xlu1 %v7169_v8, %s6565_s13 }
 0xad4   :  { %v1355_v31 = vpop.f32.mrb[20].mxu0 }
 0xad5   :  { %v7174_v32 = vadd.f32 %v1355_v31, %v7120_v30  ;;  %v5284_v33 = vpop.f32.mrb[21].mxu0 }
 0xad6   :  { %v1358_v34 = vpop.f32.mrb[22].mxu0 }
 0xad7   :  { %v5285_v36 = vpop.f32.mrb[23].mxu0 }
 0xb36   :  { %v1422_v13 = vpop.xlane.xlu1 %1421 }
 0xb37   :  { %5809 = vrcp.f32 %v1422_v13 }
 0xb3a   :  { %v1653_v41 = vpop.permute.xlu1 %1652 }
 0xb3b   :  { %v1658_v42 = vsel %vm845_vm2, %v1653_v41, 0 }
 0xb41   :  { %v5810_v38 = vpop.eup %5809 }
 0xb42   :  { %v1424_v30 = vmul.f32 %v5810_v38, %v5808_v29 }
 0xb44   :  { %v1425_v39 = vpack.c.bf16 %v1424_v30, %v1424_v30 }
 0xb46   :  { %5295 = vmatmul.mubr.msk.bf16.vlgmr.msra.gmra.mrb[24].mxu0 %vm894_vm4, %v1425_v39 }
 0xb47   :  { %5307 = vmatpush3.bf16.xpose.msra.mxu0 %v1545_v40  ;;  %5308 = vmatprep.mubr.msk.bf16.mxu0 %vm6564_vm0, %v6563_v1 }
 0xb48   :  { %5318 = vmatprep.subr.bf16.mxu0 %v6563_v1 }
 0xb4e   :  { %5309 = vmatmul.mubr.msk.bf16.vlgmr.msra.gmra.mrb[28].mxu0 %vm845_vm2, %v7160_v23 }
 0xb4f   :  { %5319 = vmatpush3.bf16.xpose.msra.mxu0 %v1658_v42  ;;  %5320 = vmatprep.mubr.msk.bf16.mxu0 %vm6564_vm0, %v6563_v1 }
 0xb50   :  { %5330 = vmatprep.subr.bf16.mxu0 %v6563_v1 }
 0xb56   :  { %5321 = vmatmul.mubr.msk.bf16.vlgmr.msra.gmra.mrb[32].mxu0 %vm845_vm2, %v1650_v43 }
 0xb57   :  { %5331 = vmatpush3.bf16.msra.mxu0 %v7090_v58  ;;  %5334 = vmatprep.mubr.msk.bf16.mxu0 %vm6564_vm0, %v6563_v1  ;;  %v1605_v58 = vsel %vm910_vm1, %v7205_v44, 0 }
 0xb58   :  { %5332 = vmatprep.subr.bf16.mxu0 %v6563_v1 }
 0xb5b   :  { %5333 = vmatpush3.bf16.msra.mxu0 %v7093_v59  ;;  %v1536_v59 = vstv %s4871_s25 }
 0xb5c   :  { %5346 = vmatprep.subr.bf16.mxu0 %v6563_v1  ;;  %vm7214_vm5 = vcmp.lt.s32.totalorder %v7064_v19, %v1536_v59 }
 0xc19   :  { %v1468_v45 = vpop.f32.mrb[24].mxu0 }
 0xc1a   :  { %v1474_v12 = vpack.c.bf16 %v1468_v45, %v1468_v45  ;;  %v5296_v6 = vpop.f32.mrb[25].mxu0 }
 0xc1b   :  { %v1471_v49 = vpop.f32.mrb[26].mxu0 }
 0xc1c   :  { %v5297_v50 = vpop.f32.mrb[27].mxu0  ;;  %5303 = vmatmul.mubr.msk.bf16.vlgmr.msra.gmra.mrb[24].mxu1 %vm845_vm2, %v1474_v12 }
 0xc1d   :  { %5313 = vmatpush3.bf16.msra.mxu1 %v1605_v58  ;;  %5314 = vmatprep.mubr.msk.bf16.mxu1 %vm6564_vm0, %v6563_v1 }
 0xc1e   :  { %5324 = vmatprep.subr.bf16.mxu1 %v6563_v1 }
 0xc21   :  { %v1581_v54 = vpop.f32.mrb[28].mxu0 }
 0xc22   :  { %v1587_v56 = vmul.f32 0.17677669, %v1581_v54  ;;  %v5310_v57 = vpop.f32.mrb[29].mxu0 }
 0xc23   :  { %v1584_v60 = vpop.f32.mrb[30].mxu0 }
 0xc24   :  { %v5311_v61 = vpop.f32.mrb[31].mxu0  ;;  %v1588_v2 = vsel %vm7214_vm5, %v1587_v56, -1000000.0 }
 0xc25   :  { %v1589_v4 = vsel %vm894_vm4, %v1588_v2, -inf }
 0xc26   :  { %1590 = vmax.xlane.f32.xlu1 %v1589_v4 }
 0xc29   :  { %v1694_v5 = vpop.f32.mrb[32].mxu0 }
 0xc2a   :  { %v1700_v10 = vmul.f32 0.17677669, %v1694_v5  ;;  %v5322_v11 = vpop.f32.mrb[33].mxu0 }
 0xc2b   :  { %v1697_v14 = vpop.f32.mrb[34].mxu0 }
 0xc2c   :  { %v5323_v15 = vpop.f32.mrb[35].mxu0  ;;  %v1701_v19 = vsel %vm7214_vm5, %v1700_v10, -1000000.0 }
 0xc2d   :  { %v1702_v16 = vsel %vm894_vm4, %v1701_v19, -inf }
 0xc2e   :  { %1703 = vmax.xlane.f32.xlu0 %v1702_v16 }
 0xcb3   :  { %v1591_v17 = vpop.xlane.xlu1 %1590 }
 0xcb4   :  { %v1592_v18 = vsub.f32 %v1588_v2, %v1591_v17 }
 0xcb6   :  { %v1593_v20 = vmul.f32 1.442695, %v1592_v18 }
 0xcb8   :  { %5811 = vpow2.f32 %v1593_v20 }
 0xcbb   :  { %v1704_v21 = vpop.xlane.xlu0 %1703 }
 0xcbc   :  { %v1705_v24 = vsub.f32 %v1701_v19, %v1704_v21 }
 0xcbe   :  { %v1706_v25 = vmul.f32 1.442695, %v1705_v24 }
 0xcc0   :  { %5813 = vpow2.f32 %v1706_v25 }
 0xcc2   :  { %v5812_v26 = vpop.eup %5811 }
 0xcc3   :  { %v1595_v27 = vsel %vm894_vm4, %v5812_v26, 0.0 }
 0xcc4   :  { %1596 = vadd.xlane.f32.xlu0 %v1595_v27 }
 0xcca   :  { %v5814_v28 = vpop.eup %5813 }
 0xccb   :  { %v1708_v29 = vsel %vm894_vm4, %v5814_v28, 0.0 }
 0xccc   :  { %1709 = vadd.xlane.f32.xlu1 %v1708_v29 }
 0xcda   :  { %1715 = vrot.lane.b32.xlu0 %v7205_v44, %s6565_s13 }
 0xcdd   :  { %1852 = vrot.lane.b32.xlu1 %v7169_v8, %s6532_s22 }
 0xce1   :  { %1850 = vrot.lane.b32.xlu1 %v7160_v23, %s6532_s22 }
 0xcef   :  { %v1528_v7 = vpop.f32.mrb[24].mxu1 }
 0xcf0   :  { %v7233_v31 = vadd.f32 %v1528_v7, %v7174_v32  ;;  %v5304_v33 = vpop.f32.mrb[25].mxu1 }
 0xcf1   :  { %v1531_v34 = vpop.f32.mrb[26].mxu1 }
 0xcf2   :  { %v5305_v36 = vpop.f32.mrb[27].mxu1 }
 0xd51   :  { %v1597_v13 = vpop.xlane.xlu0 %1596 }
 0xd52   :  { %5815 = vrcp.f32 %v1597_v13 }
 0xd55   :  { %v1716_v40 = vpop.permute.xlu0 %1715 }
 0xd56   :  { %v1721_v42 = vsel %vm910_vm1, %v1716_v40, 0 }
 0xd59   :  { %v1710_v38 = vpop.xlane.xlu1 %1709 }
 0xd5a   :  { %5817 = vrcp.f32 %v1710_v38 }
 0xd5c   :  { %v5816_v30 = vpop.eup %5815 }
 0xd5d   :  { %v1599_v39 = vmul.f32 %v5816_v30, %v5812_v26 }
 0xd5f   :  { %v1600_v41 = vpack.c.bf16 %v1599_v39, %v1599_v39 }
 0xd61   :  { %5315 = vmatmul.mubr.msk.bf16.vlgmr.msra.gmra.mrb[28].mxu1 %vm894_vm4, %v1600_v41 }
 0xd62   :  { %5325 = vmatpush3.bf16.msra.mxu1 %v1721_v42  ;;  %5326 = vmatprep.mubr.msk.bf16.mxu1 %vm6564_vm0, %v6563_v1 }
 0xd63   :  { %5338 = vmatprep.subr.bf16.mxu1 %v6563_v1 }
 0xd64   :  { %v5818_v32 = vpop.eup %5817 }
 0xd65   :  { %v1712_v43 = vmul.f32 %v5818_v32, %v5814_v28 }
 0xd67   :  { %v1713_v45 = vpack.c.bf16 %v1712_v43, %v1712_v43  ;;  %v4884_v43 = vld [vmem:[%s7658_s3] ss:$0 sm:$0xff] }
 0xd69   :  { %5327 = vmatmul.mubr.msk.bf16.vlgmr.msra.gmra.mrb[32].mxu1 %vm894_vm4, %v1713_v45 }
 0xd6a   :  { %5339 = vmatpush3.bf16.msra.mxu1 %v7098_v63  ;;  %5342 = vmatprep.mubr.msk.bf16.mxu1 %vm6564_vm0, %v6563_v1  ;;  %v1853_v63 = vpop.permute.xlu1 %1852 }
 0xd6b   :  { %5340 = vmatprep.subr.bf16.mxu1 %v6563_v1  ;;  %v1858_v60 = vsel %vm845_vm2, %v1853_v63, 0 }
 0xd6e   :  { %5341 = vmatpush3.bf16.msra.mxu1 %v7102_v3  ;;  %v1851_v61 = vpop.permute.xlu1 %1850 }
 0xd6f   :  { %5352 = vmatprep.subr.bf16.mxu1 %v6563_v1 }
 0xe34   :  { %v1641_v12 = vpop.f32.mrb[28].mxu1 }
 0xe35   :  { %v1647_v6 = vpack.c.bf16 %v1641_v12, %v1641_v12  ;;  %v5316_v49 = vpop.f32.mrb[29].mxu1 }
 0xe36   :  { %v1644_v50 = vpop.f32.mrb[30].mxu1  ;;  %v2171_v49 = vadd.f32 %v4884_v43, %v7233_v31 }
 0xe37   :  { %v5317_v58 = vpop.f32.mrb[31].mxu1  ;;  %5343 = vmatmul.mubr.msk.bf16.vlgmr.msra.gmra.mrb[36].mxu1 %vm845_vm2, %v1647_v6 }
 0xe38   :  { %5354 = vmatprep.mubr.msk.bf16.mxu1 %vm6564_vm0, %v6563_v1  ;;  %v2173_v63 = vadd.f32 %v2171_v49, %v7009_v47  ;;  %v5696_v49 = vld [vmem:[#allocation13 + $0x70] ss:$8 sps:$4 sm:$0xff]  }
 0xe3c   :  { %v1757_v59 = vpop.f32.mrb[32].mxu1 }
 0xe3d   :  { %v1763_v54 = vpack.c.bf16 %v1757_v59, %v1757_v59  ;;  %v5328_v56 = vpop.f32.mrb[33].mxu1 }
 0xe3e   :  { %v1760_v57 = vpop.f32.mrb[34].mxu1 }
 0xe3f   :  { %v5329_v3 = vpop.f32.mrb[35].mxu1  ;;  %5335 = vmatmul.mubr.msk.bf16.vlgmr.msra.gmra.mrb[36].mxu0 %vm845_vm2, %v1763_v54 }
 0xe40   :  { %5347 = vmatpush3.bf16.xpose.msra.mxu0 %v1858_v60  ;;  %5348 = vmatprep.mubr.msk.bf16.mxu0 %vm6564_vm0, %v6563_v1 }
 0xe41   :  { %5358 = vmatprep.subr.bf16.mxu0 %v6563_v1 }
 0xe47   :  { %5349 = vmatmul.mubr.msk.bf16.vlgmr.msra.gmra.mrb[40].mxu0 %vm845_vm2, %v1851_v61 }
 0xe48   :  { %5359 = vmatpush3.bf16.msra.mxu0 %v7132_v46  ;;  %5362 = vmatprep.mubr.msk.bf16.mxu0 %vm6564_vm0, %v6563_v1 }
 0xe49   :  { %5360 = vmatprep.subr.bf16.mxu0 %v6563_v1 }
 0xe4c   :  { %5361 = vmatpush3.bf16.msra.mxu0 %v7146_v62 }
 0xe4d   :  { %5372 = vmatprep.subr.bf16.mxu0 %v6563_v1 }
 0xf0a   :  { %v1844_v2 = vpop.f32.mrb[36].mxu1 }
 0xf0b   :  { %v5344_v4 = vpop.f32.mrb[37].mxu1 }
 0xf0c   :  { %v1847_v5 = vpop.f32.mrb[38].mxu1 }
 0xf0d   :  { %v5345_v10 = vpop.f32.mrb[39].mxu1 }
 0xf12   :  { %v1801_v11 = vpop.f32.mrb[36].mxu0 }
 0xf13   :  { %v7262_v14 = vadd.f32 %v1844_v2, %v1801_v11  ;;  %v5336_v15 = vpop.f32.mrb[37].mxu0 }
 0xf14   :  { %v1804_v19 = vpop.f32.mrb[38].mxu0 }
 0xf15   :  { %v5337_v16 = vpop.f32.mrb[39].mxu0 }
 0xf1a   :  { %v1894_v46 = vpop.f32.mrb[40].mxu0 }
 0xf1b   :  { %v1900_v17 = vmul.f32 0.17677669, %v1894_v46  ;;  %v5350_v18 = vpop.f32.mrb[41].mxu0 }
 0xf1c   :  { %v1897_v20 = vpop.f32.mrb[42].mxu0 }
 0xf1d   :  { %v5351_v21 = vpop.f32.mrb[43].mxu0  ;;  %v1901_v62 = vsel %vm7214_vm5, %v1900_v17, -1000000.0 }
 0xf1e   :  { %v1902_v24 = vsel %vm894_vm4, %v1901_v62, -inf }
 0xf1f   :  { %1903 = vmax.xlane.f32.xlu0 %v1902_v24 }
 0xf35   :  { %1914 = vrot.lane.b32.xlu0 %v7205_v44, %s6532_s22 }
 0xf39   :  { %2007 = vrot.lane.b32.xlu0 %v7160_v23, %s6566_s21 }
 0xfac   :  { %v1904_v25 = vpop.xlane.xlu0 %1903 }
 0xfad   :  { %v1905_v26 = vsub.f32 %v1901_v62, %v1904_v25 }
 0xfaf   :  { %v1906_v27 = vmul.f32 1.442695, %v1905_v26 }
 0xfb0   :  { %v1915_v28 = vpop.permute.xlu0 %1914 }
 0xfb1   :  { %5819 = vpow2.f32 %v1906_v27  ;;  %v1920_v29 = vsel %vm910_vm1, %v1915_v28, 0 }
 0xfb2   :  { %5353 = vmatpush3.bf16.msra.mxu1 %v1920_v29 }
 0xfb3   :  { %5366 = vmatprep.subr.bf16.mxu1 %v6563_v1 }
 0xfb4   :  { %v2008_v39 = vpop.permute.xlu0 %2007 }
 0xfbb   :  { %v5820_v7 = vpop.eup %5819 }
 0xfbc   :  { %v1908_v33 = vsel %vm894_vm4, %v5820_v7, 0.0 }
 0xfbd   :  { %1909 = vadd.xlane.f32.xlu1 %v1908_v33  ;;  %v5675_v33 = vld [vmem:[#allocation13] ss:$8 sps:$4 sm:$0xff]  }
 0xfce   :  { %2009 = vrot.lane.b32.xlu1 %v7169_v8, %s6566_s21 }
0x104a   :  { %v1910_v34 = vpop.xlane.xlu1 %1909 }
0x104b   :  { %5821 = vrcp.f32 %v1910_v34  ;;  %v5677_v34 = vld [vmem:[#allocation13 + $0x4] ss:$8 sps:$4 sm:$0xff]  }
0x104e   :  { %v2010_v13 = vpop.permute.xlu1 %2009 }
0x104f   :  { %v2015_v30 = vsel %vm845_vm2, %v2010_v13, 0  ;;  %v5683_v13 = vld [vmem:[#allocation13 + $0x24] ss:$8 sps:$4 sm:$0xff]  }
0x1055   :  { %v5822_v23 = vpop.eup %5821 }
0x1056   :  { %v1912_v36 = vmul.f32 %v5822_v23, %v5820_v7  ;;  %v5680_v23 = vld [vmem:[#allocation13 + $0x14] ss:$8 sps:$4 sm:$0xff]  }
0x1058   :  { %v1913_v38 = vpack.c.bf16 %v1912_v36, %v1912_v36  ;;  %v5678_v36 = vld [vmem:[#allocation13 + $0x10] ss:$8 sps:$4 sm:$0xff]  }
0x105a   :  { %5355 = vmatmul.mubr.msk.bf16.vlgmr.msra.gmra.mrb[40].mxu1 %vm894_vm4, %v1913_v38  ;;  %v5681_v38 = vld [vmem:[#allocation13 + $0x20] ss:$8 sps:$4 sm:$0xff]  }
0x105b   :  { %5367 = vmatpush3.bf16.xpose.msra.mxu1 %v2015_v30  ;;  %5368 = vmatprep.mubr.msk.bf16.mxu1 %vm6564_vm0, %v6563_v1 }
0x105c   :  { %5378 = vmatprep.subr.bf16.mxu1 %v6563_v1 }
0x1062   :  { %5369 = vmatmul.mubr.msk.bf16.vlgmr.msra.gmra.mrb[44].mxu1 %vm845_vm2, %v2008_v39 }
0x1063   :  { %5379 = vmatpush3.bf16.msra.mxu1 %v7176_v35  ;;  %5382 = vmatprep.mubr.msk.bf16.mxu1 %vm6564_vm0, %v6563_v1 }
0x1064   :  { %5380 = vmatprep.subr.bf16.mxu1 %v6563_v1 }
0x1067   :  { %5381 = vmatpush3.bf16.msra.mxu1 %v7179_v37 }
0x112d   :  { %v1956_v8 = vpop.f32.mrb[40].mxu1 }
0x112e   :  { %v1962_v40 = vpack.c.bf16 %v1956_v8, %v1956_v8  ;;  %v5356_v41 = vpop.f32.mrb[41].mxu1 }
0x112f   :  { %v1959_v42 = vpop.f32.mrb[42].mxu1  ;;  %v5684_v41 = vld [vmem:[#allocation13 + $0x30] ss:$8 sps:$4 sm:$0xff]  }
0x1130   :  { %v5357_v32 = vpop.f32.mrb[43].mxu1  ;;  %5363 = vmatmul.mubr.msk.bf16.vlgmr.msra.gmra.mrb[44].mxu0 %vm845_vm2, %v1962_v40  ;;  %v5686_v40 = vld [vmem:[#allocation13 + $0x34] ss:$8 sps:$4 sm:$0xff]   ;;  %v5689_v42 = vld [vmem:[#allocation13 + $0x44] ss:$8 sps:$4 sm:$0xff]  }
0x1131   :  { %5374 = vmatprep.mubr.msk.bf16.mxu0 %vm6564_vm0, %v6563_v1  ;;  %v5687_v32 = vld [vmem:[#allocation13 + $0x40] ss:$8 sps:$4 sm:$0xff]  }
0x1135   :  { %v2051_v45 = vpop.f32.mrb[44].mxu1 }
0x1136   :  { %v2057_v35 = vmul.f32 0.17677669, %v2051_v45  ;;  %v5370_v12 = vpop.f32.mrb[45].mxu1  ;;  %v5690_v45 = vld [vmem:[#allocation13 + $0x50] ss:$8 sps:$4 sm:$0xff]  }
0x1137   :  { %v2054_v6 = vpop.f32.mrb[46].mxu1  ;;  %v5693_v12 = vld [vmem:[#allocation13 + $0x60] ss:$8 sps:$4 sm:$0xff]  }
0x1138   :  { %v5371_v50 = vpop.f32.mrb[47].mxu1  ;;  %v2058_v37 = vsel %vm7214_vm5, %v2057_v35, -1000000.0  ;;  %v5695_v35 = vld [vmem:[#allocation13 + $0x64] ss:$8 sps:$4 sm:$0xff]  }
0x1139   :  { %v2059_v58 = vsel %vm894_vm4, %v2058_v37, -inf  ;;  %v5698_v6 = vld [vmem:[#allocation13 + $0x74] ss:$8 sps:$4 sm:$0xff]   ;;  %v5699_v50 = vld [vmem:[#allocation14 + $0x40] sm:$0xff]  }
0x113a   :  { %2060 = vmax.xlane.f32.xlu1 %v2059_v58  ;;  %v5701_v58 = vld [vmem:[#allocation14 + $0x48] sm:$0xff]   ;;  %5097 = vmatprep.subr.bf16.mxu1 %v5699_v50 }
0x113e   :  { %2177 = vadd.xlane.f32.xlu1 %v2173_v63 }
0x11c7   :  { %v2061_v59 = vpop.xlane.xlu1 %2060 }
0x11c8   :  { %v2062_v54 = vsub.f32 %v2058_v37, %v2061_v59  ;;  %v5700_v37 = vld [vmem:[#allocation14] sm:$0xff]   ;;  %v5703_v59 = vld [vmem:[#allocation14 + $0x50] sm:$0xff]  }
0x11ca   :  { %v2063_v56 = vmul.f32 1.442695, %v2062_v54  ;;  %v5704_v54 = vld [vmem:[#allocation14 + $0x10] sm:$0xff]  }
0x11cb   :  { %v2178_v18 = vpop.xlane.xlu1 %2177 }
0x11cc   :  { %5823 = vpow2.f32 %v2063_v56  ;;  %v2182_v21 = vmul.f32 0.0078125, %v2178_v18  ;;  %v5705_v56 = vld [vmem:[#allocation14 + $0x58] sm:$0xff]  }
0x11ce   :  { %v7304_v28 = vsub.f32 %v2173_v63, %v2182_v21  ;;  %v5702_v63 = vld [vmem:[#allocation14 + $0x8] sm:$0xff]  }
0x11d0   :  { %v2186_v7 = vmul.f32 %v7304_v28, %v7304_v28 }
0x11d6   :  { %v5824_v57 = vpop.eup %5823 }
0x11d7   :  { %v2065_v60 = vsel %vm894_vm4, %v5824_v57, 0.0 }
0x11d8   :  { %2066 = vadd.xlane.f32.xlu0 %v2065_v60  ;;  %v5707_v60 = vld [vmem:[#allocation14 + $0x60] sm:$0xff]  }
0x11ee   :  { %2071 = vrot.lane.b32.xlu0 %v7205_v44, %s6566_s21 }
0x1203   :  { %v2000_v31 = vpop.f32.mrb[44].mxu0 }
0x1204   :  { %v2006_v3 = vadd.f32 %v2000_v31, %v7262_v14  ;;  %v5364_v61 = vpop.f32.mrb[45].mxu0  ;;  %v5708_v31 = vld [vmem:[#allocation14 + $0x20] sm:$0xff]  }
0x1205   :  { %v2003_v2 = vpop.f32.mrb[46].mxu0 }
0x1206   :  { %v5365_v4 = vpop.f32.mrb[47].mxu0 }
0x1265   :  { %v2067_v5 = vpop.xlane.xlu0 %2066 }
0x1266   :  { %5825 = vrcp.f32 %v2067_v5 }
0x1269   :  { %v2072_v47 = vpop.permute.xlu0 %2071 }
0x126a   :  { %v2077_v10 = vsel %vm910_vm1, %v2072_v47, 0 }
0x126b   :  { %5373 = vmatpush3.bf16.msra.mxu0 %v2077_v10 }
0x126c   :  { %2325 = vmatprep.subr.bf16.mxu0 %v5677_v34 }
0x1270   :  { %v5826_v11 = vpop.eup %5825 }
0x1271   :  { %v2069_v15 = vmul.f32 %v5826_v11, %v5824_v57  ;;  %v5706_v57 = vld [vmem:[#allocation14 + $0x18] sm:$0xff]  }
0x1273   :  { %v2070_v19 = vpack.c.bf16 %v2069_v15, %v2069_v15 }
0x1275   :  { %5375 = vmatmul.mubr.msk.bf16.vlgmr.msra.gmra.mrb[48].mxu0 %vm894_vm4, %v2070_v19  ;;  %v4885_v19 = vld [vmem:[%s7659_s5] ss:$0 sm:$0xff] }
0x1276   :  { %2357 = vmatprep.mubr.bf16.mxu0 %v6562_v0  ;;  %2326 = vmatpush1.bf16.msra.mxu0 %v5675_v33 }
0x1277   :  { %2327 = vmatprep.subr.bf16.mxu0 %v5680_v23 }
0x127a   :  { %2328 = vmatpush1.bf16.msra.mxu0 %v5678_v36 }
0x127b   :  { %2329 = vmatprep.subr.bf16.mxu0 %v5683_v13 }
0x127e   :  { %2330 = vmatpush1.bf16.msra.mxu0 %v5681_v38 }
0x127f   :  { %2331 = vmatprep.subr.bf16.mxu0 %v5686_v40 }
0x1282   :  { %2332 = vmatpush1.bf16.msra.mxu0 %v5684_v41 }
0x1283   :  { %2333 = vmatprep.subr.bf16.mxu0 %v5689_v42 }
0x1286   :  { %2334 = vmatpush1.bf16.msra.mxu0 %v5687_v32 }
0x1348   :  { %v2113_v44 = vpop.f32.mrb[48].mxu0 }
0x1349   :  { %v2119_v16 = vpack.c.bf16 %v2113_v44, %v2113_v44  ;;  %v5376_v46 = vpop.f32.mrb[49].mxu0 }
0x134a   :  { %v2116_v14 = vpop.f32.mrb[50].mxu0 }
0x134b   :  { %v5377_v17 = vpop.f32.mrb[51].mxu0  ;;  %5383 = vmatmul.mubr.msk.bf16.vlgmr.msra.gmra.mrb[48].mxu1 %vm845_vm2, %v2119_v16  ;;  %v4886_v14 = vld [vmem:[%s7660_s0] ss:$0 sm:$0xff] }
0x134c   :  { %5098 = vmatpush3.bf16.msra.mxu1 %v5700_v37 }
0x134d   :  { %5099 = vmatprep.subr.bf16.mxu1 %v5701_v58 }
0x1350   :  { %5100 = vmatpush3.bf16.msra.mxu1 %v5702_v63 }
0x1351   :  { %5101 = vmatprep.subr.bf16.mxu1 %v5703_v59 }
0x1354   :  { %5102 = vmatpush3.bf16.msra.mxu1 %v5704_v54  ;;  %v5715_v54 = vld [vmem:[#allocation16] ss:$12 sps:$4 sm:$0xff]  }
0x1355   :  { %5103 = vmatprep.subr.bf16.mxu1 %v5705_v56  ;;  %v5717_v56 = vld [vmem:[#allocation16 + $0x4] ss:$12 sps:$4 sm:$0xff]  }
0x1358   :  { %5104 = vmatpush3.bf16.msra.mxu1 %v5706_v57  ;;  %v5718_v57 = vld [vmem:[#allocation16 + $0x8] ss:$12 sps:$4 sm:$0xff]  }
0x1359   :  { %5105 = vmatprep.subr.bf16.mxu1 %v5707_v60  ;;  %v5721_v60 = vld [vmem:[#allocation16 + $0x1c] ss:$12 sps:$4 sm:$0xff]  }
0x135c   :  { %5106 = vmatpush3.bf16.msra.mxu1 %v5708_v31  ;;  %v5719_v31 = vld [vmem:[#allocation16 + $0x18] ss:$12 sps:$4 sm:$0xff]  }
0x141e   :  { %v2157_v20 = vpop.f32.mrb[48].mxu1 }
0x141f   :  { %v2163_v62 = vadd.f32 %v2157_v20, %v2006_v3  ;;  %v5384_v24 = vpop.f32.mrb[49].mxu1  ;;  %v5709_v3 = vld [vmem:[#allocation14 + $0x68] sm:$0xff]  }
0x1420   :  { %v2160_v25 = vpop.f32.mrb[50].mxu1  ;;  %5107 = vmatprep.subr.bf16.mxu1 %v5709_v3  ;;  %v5711_v24 = vld [vmem:[#allocation14 + $0x70] sm:$0xff]  }
0x1421   :  { %v2172_v26 = vadd.f32 %v4884_v43, %v2163_v62  ;;  %v5385_v27 = vpop.f32.mrb[51].mxu1  ;;  %v5692_v43 = vld [vmem:[#allocation13 + $0x54] ss:$8 sps:$4 sm:$0xff]   ;;  %v5710_v62 = vld [vmem:[#allocation14 + $0x28] sm:$0xff]  }
0x1422   :  { %2335 = vmatprep.subr.bf16.mxu0 %v5692_v43  ;;  %5108 = vmatpush3.bf16.msra.mxu1 %v5710_v62  ;;  %v5712_v25 = vld [vmem:[#allocation14 + $0x30] sm:$0xff]   ;;  %v5714_v27 = vld [vmem:[#allocation14 + $0x38] sm:$0xff]  }
0x1423   :  { %v2174_v29 = vadd.f32 %v2172_v26, %v7011_v48  ;;  %2336 = vmatpush1.bf16.msra.mxu0 %v5690_v45  ;;  %5109 = vmatprep.subr.bf16.mxu1 %v5711_v24  ;;  %v5713_v26 = vld [vmem:[#allocation14 + $0x78] sm:$0xff]   ;;  %v4903_v45 = vld [vmem:[%s7662_s30] ss:$0 sm:$0xff] }
0x1424   :  { %2337 = vmatprep.subr.bf16.mxu0 %v5695_v35  ;;  %v5737_v62 = vld [vmem:[#allocation16 + $0x7c] ss:$12 sps:$4 sm:$0xff]   ;;  %v5735_v24 = vld [vmem:[#allocation16 + $0x78] ss:$12 sps:$4 sm:$0xff]  }
0x1425   :  { %2179 = vadd.xlane.f32.xlu1 %v2174_v29 }
0x1426   :  { %5110 = vmatpush3.bf16.msra.mxu1 %v5712_v25  ;;  %v5738_v25 = vld [vmem:[#allocation16 + $0x80] ss:$12 sps:$4 sm:$0xff]  }
0x1427   :  { %2338 = vmatpush1.bf16.msra.mxu0 %v5693_v12  ;;  %5111 = vmatprep.subr.bf16.mxu1 %v5713_v26  ;;  %v5741_v26 = vld [vmem:[#allocation16 + $0x94] ss:$12 sps:$4 sm:$0xff]  }
0x1428   :  { %2339 = vmatprep.subr.bf16.mxu0 %v5698_v6 }
0x1429   :  { %2188 = vadd.xlane.f32.xlu1 %v2186_v7 }
0x142a   :  { %5112 = vmatpush3.bf16.msra.mxu1 %v5714_v27  ;;  %v5739_v27 = vld [vmem:[#allocation16 + $0x90] ss:$12 sps:$4 sm:$0xff]  }
0x142b   :  { %2340 = vmatpush1.bf16.msra.mxu0 %v5696_v49  ;;  %5386 = vmatprep.subr.bf16.mxu1 %v6563_v1 }
0x142c   :  { %2770 = vmatprep.subr.bf16.mxu0 %v5717_v56 }
0x14b2   :  { %v2180_v30 = vpop.xlane.xlu1 %2179 }
0x14b3   :  { %v2183_v39 = vmul.f32 0.0078125, %v2180_v30 }
0x14b5   :  { %v2185_v48 = vsub.f32 %v2174_v29, %v2183_v39 }
0x14b6   :  { %v2189_v61 = vpop.xlane.xlu1 %2188 }
0x14b7   :  { %v2187_v8 = vmul.f32 %v2185_v48, %v2185_v48  ;;  %v2192_v2 = vmul.f32 0.0078125, %v2189_v61 }
0x14b9   :  { %2190 = vadd.xlane.f32.xlu1 %v2187_v8  ;;  %v2194_v4 = vadd.f32 1e-05, %v2192_v2 }
0x14bb   :  { %5827 = vrsqrt.f32 %v2194_v4 }
0x14c5   :  { %v5828_v11 = vpop.eup %5827 }
0x14c6   :  { %v2198_v15 = vmul.f32 %v5828_v11, %v7304_v28  ;;  %v2233_v28 = vld [vmem:[%s7661_s26] sm:$0x3] }
0x14c7   :  { %v2238_v29 = vrot.slane %v2233_v28, %v7022_v52  ;;  %v2242_v7 = vrot.slane %v2233_v28, %v7027_v55  ;;  %v5742_v28 = vld [vmem:[#allocation16 + $0x98] ss:$12 sps:$4 sm:$0xff]  }
0x14c8   :  { %v2206_v46 = vmul.f32 %v4885_v19, %v2198_v15  ;;  %v5722_v15 = vld [vmem:[#allocation16 + $0x20] ss:$12 sps:$4 sm:$0xff]  }
0x14ca   :  { %v2214_v18 = vadd.f32 %v4886_v14, %v2206_v46  ;;  %v5729_v46 = vld [vmem:[#allocation16 + $0x4c] ss:$12 sps:$4 sm:$0xff]  }
0x1546   :  { %v2191_v5 = vpop.xlane.xlu1 %2190 }
0x1547   :  { %v2193_v47 = vmul.f32 0.0078125, %v2191_v5 }
0x1549   :  { %v2195_v10 = vadd.f32 1e-05, %v2193_v47 }
0x154b   :  { %5829 = vrsqrt.f32 %v2195_v10 }
0x1555   :  { %v5830_v44 = vpop.eup %5829 }
0x1556   :  { %v2199_v16 = vmul.f32 %v5830_v44, %v2185_v48  ;;  %v5723_v44 = vld [vmem:[#allocation16 + $0x30] ss:$12 sps:$4 sm:$0xff]  }
0x1558   :  { %v2207_v17 = vmul.f32 %v4885_v19, %v2199_v16  ;;  %v5725_v19 = vld [vmem:[#allocation16 + $0x34] ss:$12 sps:$4 sm:$0xff]   ;;  %v5726_v16 = vld [vmem:[#allocation16 + $0x38] ss:$12 sps:$4 sm:$0xff]  }
0x155a   :  { %v2215_v20 = vadd.f32 %v4886_v14, %v2207_v17  ;;  %v5727_v14 = vld [vmem:[#allocation16 + $0x48] ss:$12 sps:$4 sm:$0xff]   ;;  %v5730_v17 = vld [vmem:[#allocation16 + $0x50] ss:$12 sps:$4 sm:$0xff]  }
0x155c   :  { %v2216_v21 = vpack.c.bf16 %v2215_v20, %v2214_v18 }
0x155e   :  { %2358 = vmatmul.mubr.bf16.vlgmr.msra.gmra.mrb[52].mxu0 %v2216_v21  ;;  %v5734_v21 = vld [vmem:[#allocation16 + $0x68] ss:$12 sps:$4 sm:$0xff]  }
0x155f   :  { %2802 = vmatprep.mubr.bf16.mxu0 %v6562_v0  ;;  %2771 = vmatpush1.bf16.msra.mxu0 %v5715_v54 }
0x1560   :  { %2772 = vmatprep.subr.bf16.mxu0 %v5721_v60 }
0x1563   :  { %2773 = vmatpush1.bf16.msra.mxu0 %v5719_v31 }
0x1564   :  { %2774 = vmatprep.subr.bf16.mxu0 %v5725_v19 }
0x1567   :  { %2775 = vmatpush1.bf16.msra.mxu0 %v5723_v44 }
0x1568   :  { %2776 = vmatprep.subr.bf16.mxu0 %v5729_v46 }
0x156b   :  { %2777 = vmatpush1.bf16.msra.mxu0 %v5727_v14 }
0x1631   :  { %v2359_v33 = vpop.f32.mrb[52].mxu0 }
0x1632   :  { %v2360_v34 = vadd.f32 %v2359_v33, %v2238_v29  ;;  %v2361_v23 = vpop.f32.mrb[53].mxu0  ;;  %v5746_v33 = vld [vmem:[#allocation16 + $0xb0] ss:$12 sps:$4 sm:$0xff]  }
0x1633   :  { %v2362_v36 = vadd.f32 %v2361_v23, %v2242_v7  ;;  %v2363_v13 = vpop.f32.mrb[54].mxu0 }
0x1634   :  { %v2364_v38 = vadd.f32 %v2363_v13, %v2238_v29  ;;  %v2365_v30 = vpop.f32.mrb[55].mxu0  ;;  %v2368_v48 = vmax.f32 %v2360_v34, 0.0  ;;  %v5745_v29 = vld [vmem:[#allocation16 + $0xac] ss:$12 sps:$4 sm:$0xff]  }
0x1635   :  { %v2366_v39 = vadd.f32 %v2365_v30, %v2242_v7  ;;  %v2369_v40 = vmax.f32 %v2362_v36, 0.0  ;;  %v5743_v7 = vld [vmem:[#allocation16 + $0xa8] ss:$12 sps:$4 sm:$0xff]  }
0x1636   :  { %v2370_v8 = vmax.f32 %v2364_v38, 0.0 }
0x1637   :  { %v2371_v41 = vmax.f32 %v2366_v39, 0.0 }
0x1638   :  { %v2372_v42 = vpack.c.bf16 %v2370_v8, %v2368_v48  ;;  %v4920_v8 = vld [vmem:[%s7663_s2] ss:$0 sm:$0xff] }
0x1639   :  { %v2373_v32 = vpack.c.bf16 %v2371_v41, %v2369_v40 }
0x163b   :  { %2541 = vmatprep.mubr.bf16.mxu1 %v2373_v32  ;;  %v4921_v32 = vld [vmem:[%s7664_s6] ss:$0 sm:$0xff] }
0x163c   :  { %2542 = vmatmul.mubr.bf16.vlgmr.msra.gmra.mrb[52].mxu1 %v2372_v42 }
0x163d   :  { %5402 = vmatprep.mubr.msk.bf16.mxu1 %vm6564_vm0, %v6563_v1  ;;  %5387 = vmatpush3.bf16.msra.mxu1 %v5718_v57 }
0x163e   :  { %5388 = vmatprep.subr.bf16.mxu1 %v6563_v1 }
0x1641   :  { %5389 = vmatpush3.bf16.msra.mxu1 %v5722_v15 }
0x1642   :  { %5390 = vmatprep.subr.bf16.mxu1 %v6563_v1 }
0x1645   :  { %5391 = vmatpush3.bf16.msra.mxu1 %v5726_v16 }
0x1646   :  { %5392 = vmatprep.subr.bf16.mxu1 %v6563_v1 }
0x1649   :  { %5393 = vmatpush3.bf16.msra.mxu1 %v5730_v17 }
0x164a   :  { %5394 = vmatprep.subr.bf16.mxu1 %v6563_v1 }
0x164d   :  { %5395 = vmatpush3.bf16.msra.mxu1 %v5734_v21 }
0x164e   :  { %5396 = vmatprep.subr.bf16.mxu1 %v6563_v1 }
0x1651   :  { %5397 = vmatpush3.bf16.msra.mxu1 %v5738_v25 }
0x1652   :  { %5398 = vmatprep.subr.bf16.mxu1 %v6563_v1 }
0x1655   :  { %5399 = vmatpush3.bf16.msra.mxu1 %v5742_v28 }
0x1656   :  { %5400 = vmatprep.subr.bf16.mxu1 %v6563_v1 }
0x1659   :  { %5401 = vmatpush3.bf16.msra.mxu1 %v5746_v33 }
0x165a   :  { %5412 = vmatprep.subr.bf16.mxu1 %v6563_v1 }
0x170f   :  { %v5113_v43 = vpop.f32.mrb[52].mxu1 }
0x1710   :  { %v5114_v35 = vpop.f32.mrb[53].mxu1 }
0x1711   :  { %v5115_v12 = vadd.f32 %v5114_v35, %v5113_v43  ;;  %v5116_v6 = vpop.f32.mrb[54].mxu1 }
0x1712   :  { %v5117_v49 = vpop.f32.mrb[55].mxu1 }
0x1713   :  { %v2544_v50 = vadd.f32 %v5115_v12, %v4903_v45  ;;  %v5118_v37 = vadd.f32 %v5117_v49, %v5116_v6  ;;  %v2625_v6 = vld [vmem:[%s7665_s24] sm:$0x7] }
0x1714   :  { %v2638_v49 = vrot.slane %v2625_v6, %v622_v53 }
0x1715   :  { %v2547_v58 = vadd.f32 %v5118_v37, %v4903_v45  ;;  %v2550_v63 = vadd.f32 %v2544_v50, %v2214_v18  ;;  %v5733_v18 = vld [vmem:[#allocation16 + $0x64] ss:$12 sps:$4 sm:$0xff]   ;;  %v2634_v50 = vrot.slane %v2625_v6, %v7027_v55  ;;  %v2630_v37 = vrot.slane %v2625_v6, %v7022_v52 }
0x1716   :  { %2778 = vmatprep.subr.bf16.mxu0 %v5733_v18 }
0x1717   :  { %2554 = vadd.xlane.f32.xlu1 %v2550_v63  ;;  %v2551_v59 = vadd.f32 %v2547_v58, %v2215_v20  ;;  %v5731_v20 = vld [vmem:[#allocation16 + $0x60] ss:$12 sps:$4 sm:$0xff]  }
0x1718   :  { %2779 = vmatpush1.bf16.msra.mxu0 %v5731_v20 }
0x1719   :  { %2780 = vmatprep.subr.bf16.mxu0 %v5737_v62 }
0x171b   :  { %2556 = vadd.xlane.f32.xlu1 %v2551_v59 }
0x171c   :  { %2781 = vmatpush1.bf16.msra.mxu0 %v5735_v24 }
0x171d   :  { %2782 = vmatprep.subr.bf16.mxu0 %v5741_v26 }
0x1720   :  { %2783 = vmatpush1.bf16.msra.mxu0 %v5739_v27 }
0x1721   :  { %2784 = vmatprep.subr.bf16.mxu0 %v5745_v29 }
0x1724   :  { %2785 = vmatpush1.bf16.msra.mxu0 %v5743_v7 }
0x1725   :  { %5406 = vmatprep.subr.bf16.mxu0 %v6563_v1 }
0x17a4   :  { %v2555_v3 = vpop.xlane.xlu1 %2554 }
0x17a5   :  { %v2558_v61 = vmul.f32 0.0078125, %v2555_v3 }
0x17a7   :  { %v7321_v2 = vsub.f32 %v2550_v63, %v2558_v61 }
0x17a8   :  { %v2557_v4 = vpop.xlane.xlu1 %2556 }
0x17a9   :  { %v2559_v5 = vmul.f32 0.0078125, %v2557_v4  ;;  %v2562_v47 = vmul.f32 %v7321_v2, %v7321_v2 }
0x17ab   :  { %v2561_v10 = vsub.f32 %v2551_v59, %v2559_v5  ;;  %2564 = vadd.xlane.f32.xlu0 %v2562_v47 }
0x17ad   :  { %v2563_v11 = vmul.f32 %v2561_v10, %v2561_v10 }
0x17af   :  { %2566 = vadd.xlane.f32.xlu1 %v2563_v11 }
0x1838   :  { %v2565_v34 = vpop.xlane.xlu0 %2564 }
0x1839   :  { %v2568_v23 = vmul.f32 0.0078125, %v2565_v34 }
0x183b   :  { %v2570_v36 = vadd.f32 1e-05, %v2568_v23 }
0x183c   :  { %v2567_v13 = vpop.xlane.xlu1 %2566 }
0x183d   :  { %5831 = vrsqrt.f32 %v2570_v36  ;;  %v2569_v38 = vmul.f32 0.0078125, %v2567_v13 }
0x183f   :  { %v2571_v30 = vadd.f32 1e-05, %v2569_v38 }
0x1841   :  { %5833 = vrsqrt.f32 %v2571_v30 }
0x1847   :  { %v5832_v39 = vpop.eup %5831 }
0x1848   :  { %v2574_v48 = vmul.f32 %v5832_v39, %v7321_v2 }
0x184a   :  { %v2582_v42 = vmul.f32 %v4920_v8, %v2574_v48 }
0x184b   :  { %v5834_v40 = vpop.eup %5833 }
0x184c   :  { %v2575_v41 = vmul.f32 %v5834_v40, %v2561_v10  ;;  %v7336_v45 = vadd.f32 %v4921_v32, %v2582_v42 }
0x184e   :  { %v2583_v43 = vmul.f32 %v4920_v8, %v2575_v41 }
0x1850   :  { %v7338_v35 = vadd.f32 %v4921_v32, %v2583_v43  ;;  %v7400_v43 = vld [vmem:[%s7666_s9 + $0x10] sm:$0xff]  }
0x1852   :  { %v2592_v12 = vpack.c.bf16 %v7338_v35, %v7336_v45 }
0x1854   :  { %2803 = vmatmul.mubr.bf16.vlgmr.msra.gmra.mrb[56].mxu0 %v2592_v12  ;;  %5403 = vmatmul.mubr.bf16.vlgmr.msra.gmra.mrb[56].mxu1 %v2592_v12  ;;  %v7404_v12 = vld [vmem:[%s7666_s9 + $0x18] sm:$0xff]  }
0x1855   :  { %5408 = vmatprep.mubr.msk.bf16.mxu0 %vm6564_vm0, %v6563_v1  ;;  %5414 = vmatprep.mubr.msk.bf16.mxu1 %vm6564_vm0, %v6563_v1 }
0x1927   :  { %v2804_v58 = vpop.f32.mrb[56].mxu0  ;;  %v2847_v63 = vpop.f32.mrb[56].mxu1 }
0x1928   :  { %v2848_v59 = vadd.f32 %v2847_v63, %v2638_v49  ;;  %v2806_v54 = vpop.f32.mrb[57].mxu0  ;;  %v5404_v56 = vpop.f32.mrb[57].mxu1  ;;  %v2805_v4 = vadd.f32 %v2804_v58, %v2630_v37  ;;  %v7412_v63 = vld [vmem:[%s7666_s9] sm:$0xff]  }
0x1929   :  { %v2807_v57 = vadd.f32 %v2806_v54, %v2634_v50  ;;  %v2808_v60 = vpop.f32.mrb[58].mxu0  ;;  %v2850_v31 = vpop.f32.mrb[58].mxu1  ;;  %v7417_v54 = vld [vmem:[%s7666_s9 + $0x8] sm:$0xff]  }
0x192a   :  { %v7351_v3 = vpack.c.bf16 %v2848_v59, %v2848_v59  ;;  %v7353_v61 = vadd.f32 %v2808_v60, %v2630_v37  ;;  %v7355_v2 = vadd.f32 %v2850_v31, %v2638_v49  ;;  %v2810_v51 = vpop.f32.mrb[59].mxu0  ;;  %v5405_v53 = vpop.f32.mrb[59].mxu1  ;;  %v7368_v15 = vpack.c.bf16 %v2805_v4, %v2805_v4 }
0x192b   :  { %v7357_v5 = vpack.c.bf16 %v2807_v57, %v2807_v57  ;;  %v7359_v47 = vadd.f32 %v2810_v51, %v2634_v50 }
0x192c   :  { %v2921_v10 = vsel %vm910_vm1, %v7351_v3, 0 }
0x192d   :  { %5413 = vmatpush3.bf16.msra.mxu1 %v2921_v10  ;;  %2972 = vrot.lane.b32.xlu1 %v7357_v5, %s6565_s13  ;;  %v2861_v11 = vsel %vm845_vm2, %v7357_v5, 0 }
0x192e   :  { %5407 = vmatpush3.bf16.xpose.msra.mxu0 %v2861_v11  ;;  %5424 = vmatprep.subr.bf16.mxu1 %v6563_v1 }
0x192f   :  { %5418 = vmatprep.subr.bf16.mxu0 %v6563_v1 }
0x1931   :  { %2969 = vrot.lane.b32.xlu1 %v7368_v15, %s6565_s13 }
0x1935   :  { %5409 = vmatmul.mubr.msk.bf16.vlgmr.msra.gmra.mrb[60].mxu0 %vm845_vm2, %v7368_v15 }
0x1936   :  { %5420 = vmatprep.mubr.msk.bf16.mxu0 %vm6564_vm0, %v6563_v1 }
0x199f   :  { %v2973_v19 = vpop.permute.xlu1 %2972 }
0x19a0   :  { %v2978_v44 = vsel %vm845_vm2, %v2973_v19, 0 }
0x19a1   :  { %5419 = vmatpush3.bf16.xpose.msra.mxu0 %v2978_v44 }
0x19a2   :  { %5430 = vmatprep.subr.bf16.mxu0 %v6563_v1 }
0x19a3   :  { %v2970_v16 = vpop.permute.xlu1 %2969 }
0x19a8   :  { %5421 = vmatmul.mubr.msk.bf16.vlgmr.msra.gmra.mrb[64].mxu0 %vm845_vm2, %v2970_v16 }
0x19a9   :  { %5434 = vmatprep.mubr.msk.bf16.mxu0 %vm6564_vm0, %v6563_v1  ;;  %5431 = vmatpush3.bf16.msra.mxu0 %v7400_v43 }
0x19aa   :  { %5432 = vmatprep.subr.bf16.mxu0 %v6563_v1 }
0x19ad   :  { %5433 = vmatpush3.bf16.msra.mxu0 %v7404_v12 }
0x19ae   :  { %5446 = vmatprep.subr.bf16.mxu0 %v6563_v1 }
0x1a08   :  { %v2897_v46 = vpop.f32.mrb[60].mxu0 }
0x1a09   :  { %v2903_v14 = vmul.f32 0.17677669, %v2897_v46  ;;  %v5410_v17 = vpop.f32.mrb[61].mxu0 }
0x1a0a   :  { %v2900_v18 = vpop.f32.mrb[62].mxu0 }
0x1a0b   :  { %v5411_v20 = vpop.f32.mrb[63].mxu0  ;;  %v2904_v21 = vsel %vm7067_vm3, %v2903_v14, -1000000.0 }
0x1a0c   :  { %v2905_v62 = vsel %vm894_vm4, %v2904_v21, -inf }
0x1a0d   :  { %2906 = vmax.xlane.f32.xlu1 %v2905_v62 }
0x1a1e   :  { %3200 = vrot.lane.b32.xlu1 %v7357_v5, %s6532_s22 }
0x1a7b   :  { %v3014_v24 = vpop.f32.mrb[64].mxu0 }
0x1a7c   :  { %v3020_v25 = vmul.f32 0.17677669, %v3014_v24  ;;  %v5422_v26 = vpop.f32.mrb[65].mxu0 }
0x1a7d   :  { %v3017_v27 = vpop.f32.mrb[66].mxu0 }
0x1a7e   :  { %v5423_v28 = vpop.f32.mrb[67].mxu0  ;;  %v3021_v29 = vsel %vm7067_vm3, %v3020_v25, -1000000.0 }
0x1a7f   :  { %v3022_v7 = vsel %vm894_vm4, %v3021_v29, -inf }
0x1a80   :  { %3023 = vmax.xlane.f32.xlu0 %v3022_v7 }
0x1a9a   :  { %v2907_v33 = vpop.xlane.xlu1 %2906 }
0x1a9b   :  { %v2908_v34 = vsub.f32 %v2904_v21, %v2907_v33 }
0x1a9d   :  { %v2909_v23 = vmul.f32 1.442695, %v2908_v34 }
0x1a9e   :  { %v3201_v53 = vpop.permute.xlu1 %3200 }
0x1a9f   :  { %5835 = vpow2.f32 %v2909_v23  ;;  %v3206_v44 = vsel %vm845_vm2, %v3201_v53, 0 }
0x1aa9   :  { %v5836_v36 = vpop.eup %5835 }
0x1aaa   :  { %v2911_v13 = vsel %vm894_vm4, %v5836_v36, 0.0 }
0x1aab   :  { %2912 = vadd.xlane.f32.xlu0 %v2911_v13 }
0x1b0d   :  { %v3024_v38 = vpop.xlane.xlu0 %3023 }
0x1b0e   :  { %v3025_v30 = vsub.f32 %v3021_v29, %v3024_v38 }
0x1b10   :  { %v3026_v39 = vmul.f32 1.442695, %v3025_v30 }
0x1b12   :  { %5837 = vpow2.f32 %v3026_v39 }
0x1b1c   :  { %v5838_v48 = vpop.eup %5837 }
0x1b1d   :  { %v3028_v8 = vsel %vm894_vm4, %v5838_v48, 0.0 }
0x1b1e   :  { %3029 = vadd.xlane.f32.xlu0 %v3028_v8 }
0x1b34   :  { %3035 = vrot.lane.b32.xlu0 %v7351_v3, %s6565_s13 }
0x1b38   :  { %3198 = vrot.lane.b32.xlu0 %v7368_v15, %s6532_s22  ;;  %v2913_v40 = vpop.xlane.xlu0 %2912 }
0x1b39   :  { %5839 = vrcp.f32 %v2913_v40  ;;  %v7450_v40 = vld [vmem:[%s7666_s9 + $0x20] sm:$0xff]  }
0x1b43   :  { %v5840_v41 = vpop.eup %5839 }
0x1b44   :  { %v2915_v42 = vmul.f32 %v5840_v41, %v5836_v36 }
0x1b46   :  { %v2916_v32 = vpack.c.bf16 %v2915_v42, %v2915_v42 }
0x1b48   :  { %5415 = vmatmul.mubr.msk.bf16.vlgmr.msra.gmra.mrb[60].mxu1 %vm894_vm4, %v2916_v32 }
0x1b49   :  { %5426 = vmatprep.mubr.msk.bf16.mxu1 %vm6564_vm0, %v6563_v1 }
0x1bab   :  { %v3030_v6 = vpop.xlane.xlu0 %3029 }
0x1bac   :  { %5841 = vrcp.f32 %v3030_v6 }
0x1baf   :  { %v3036_v49 = vpop.permute.xlu0 %3035 }
0x1bb0   :  { %v3041_v50 = vsel %vm910_vm1, %v3036_v49, 0 }
0x1bb1   :  { %5425 = vmatpush3.bf16.msra.mxu1 %v3041_v50  ;;  %v7463_v50 = vld [vmem:[%s7666_s9 + $0x28] sm:$0xff]  }
0x1bb2   :  { %5438 = vmatprep.subr.bf16.mxu1 %v6563_v1 }
0x1bb3   :  { %v3199_v46 = vpop.permute.xlu0 %3198 }
0x1bb6   :  { %v5842_v37 = vpop.eup %5841 }
0x1bb7   :  { %v3032_v58 = vmul.f32 %v5842_v37, %v5838_v48 }
0x1bb9   :  { %v3033_v59 = vpack.c.bf16 %v3032_v58, %v3032_v58 }
0x1bbb   :  { %5427 = vmatmul.mubr.msk.bf16.vlgmr.msra.gmra.mrb[64].mxu1 %vm894_vm4, %v3033_v59 }
0x1bbc   :  { %5439 = vmatpush3.bf16.msra.mxu1 %v7412_v63  ;;  %5442 = vmatprep.mubr.msk.bf16.mxu1 %vm6564_vm0, %v6563_v1 }
0x1bbd   :  { %5440 = vmatprep.subr.bf16.mxu1 %v6563_v1 }
0x1bc0   :  { %5441 = vmatpush3.bf16.msra.mxu1 %v7417_v54 }
0x1bc1   :  { %5452 = vmatprep.subr.bf16.mxu1 %v6563_v1 }
0x1c1b   :  { %v2957_v56 = vpop.f32.mrb[60].mxu1 }
0x1c1c   :  { %v2963_v57 = vpack.c.bf16 %v2957_v56, %v2957_v56  ;;  %v5416_v60 = vpop.f32.mrb[61].mxu1 }
0x1c1d   :  { %v2960_v31 = vpop.f32.mrb[62].mxu1 }
0x1c1e   :  { %v5417_v51 = vpop.f32.mrb[63].mxu1  ;;  %5443 = vmatmul.mubr.msk.bf16.vlgmr.msra.gmra.mrb[68].mxu1 %vm845_vm2, %v2963_v57 }
0x1c1f   :  { %5454 = vmatprep.mubr.msk.bf16.mxu1 %vm6564_vm0, %v6563_v1 }
0x1c8e   :  { %v3077_v4 = vpop.f32.mrb[64].mxu1 }
0x1c8f   :  { %v3083_v10 = vpack.c.bf16 %v3077_v4, %v3077_v4  ;;  %v5428_v11 = vpop.f32.mrb[65].mxu1 }
0x1c90   :  { %v3080_v19 = vpop.f32.mrb[66].mxu1 }
0x1c91   :  { %v5429_v16 = vpop.f32.mrb[67].mxu1  ;;  %5435 = vmatmul.mubr.msk.bf16.vlgmr.msra.gmra.mrb[68].mxu0 %vm845_vm2, %v3083_v10  ;;  %v7477_v19 = vpack.c.bf16 %v7353_v61, %v7353_v61  ;;  %v7486_v61 = vpack.c.bf16 %v7359_v47, %v7359_v47 }
0x1c92   :  { %5447 = vmatpush3.bf16.xpose.msra.mxu0 %v3206_v44  ;;  %5448 = vmatprep.mubr.msk.bf16.mxu0 %vm6564_vm0, %v6563_v1 }
0x1c93   :  { %5458 = vmatprep.subr.bf16.mxu0 %v6563_v1 }
0x1c99   :  { %5449 = vmatmul.mubr.msk.bf16.vlgmr.msra.gmra.mrb[72].mxu0 %vm845_vm2, %v3199_v46 }
0x1c9a   :  { %5462 = vmatprep.mubr.msk.bf16.mxu0 %vm6564_vm0, %v6563_v1  ;;  %5459 = vmatpush3.bf16.msra.mxu0 %v7450_v40 }
0x1c9b   :  { %5460 = vmatprep.subr.bf16.mxu0 %v6563_v1 }
0x1c9e   :  { %5461 = vmatpush3.bf16.msra.mxu0 %v7463_v50 }
0x1c9f   :  { %5472 = vmatprep.subr.bf16.mxu0 %v6563_v1 }
0x1cf1   :  { %v3192_v14 = vpop.f32.mrb[68].mxu1 }
0x1cf2   :  { %v5444_v17 = vpop.f32.mrb[69].mxu1 }
0x1cf3   :  { %v3195_v18 = vpop.f32.mrb[70].mxu1 }
0x1cf4   :  { %v5445_v20 = vpop.f32.mrb[71].mxu1 }
0x1d64   :  { %v3137_v21 = vpop.f32.mrb[68].mxu0 }
0x1d65   :  { %v7435_v62 = vadd.f32 %v3192_v14, %v3137_v21  ;;  %v5436_v24 = vpop.f32.mrb[69].mxu0 }
0x1d66   :  { %v3140_v25 = vpop.f32.mrb[70].mxu0 }
0x1d67   :  { %v5437_v26 = vpop.f32.mrb[71].mxu0  ;;  %v7494_v25 = vld [vmem:[%s7666_s9 + $0x30] sm:$0xff]  }
0x1d6c   :  { %v3242_v27 = vpop.f32.mrb[72].mxu0 }
0x1d6d   :  { %v3248_v28 = vmul.f32 0.17677669, %v3242_v27  ;;  %v5450_v29 = vpop.f32.mrb[73].mxu0  ;;  %v7498_v27 = vld [vmem:[%s7666_s9 + $0x38] sm:$0xff]  }
0x1d6e   :  { %v3245_v7 = vpop.f32.mrb[74].mxu0 }
0x1d6f   :  { %v5451_v33 = vpop.f32.mrb[75].mxu0  ;;  %v3249_v34 = vsel %vm7067_vm3, %v3248_v28, -1000000.0  ;;  %v3551_v7 = vsel %vm845_vm2, %v7486_v61, 0 }
0x1d70   :  { %v3250_v23 = vsel %vm894_vm4, %v3249_v34, -inf }
0x1d71   :  { %3251 = vmax.xlane.f32.xlu0 %v3250_v23 }
0x1d87   :  { %3262 = vrot.lane.b32.xlu0 %v7351_v3, %s6532_s22 }
0x1d8b   :  { %3371 = vrot.lane.b32.xlu0 %v7368_v15, %s6566_s21 }
0x1dfe   :  { %v3252_v36 = vpop.xlane.xlu0 %3251 }
0x1dff   :  { %v3253_v13 = vsub.f32 %v3249_v34, %v3252_v36  ;;  %v7524_v36 = vpack.c.bf16 %v7355_v2, %v7355_v2 }
0x1e01   :  { %v3254_v38 = vmul.f32 1.442695, %v3253_v13 }
0x1e02   :  { %v3263_v30 = vpop.permute.xlu0 %3262 }
0x1e03   :  { %5843 = vpow2.f32 %v3254_v38  ;;  %v3268_v39 = vsel %vm910_vm1, %v3263_v30, 0 }
0x1e04   :  { %5453 = vmatpush3.bf16.msra.mxu1 %v3268_v39 }
0x1e05   :  { %5466 = vmatprep.subr.bf16.mxu1 %v6563_v1 }
0x1e0d   :  { %v5844_v48 = vpop.eup %5843 }
0x1e0e   :  { %v3256_v8 = vsel %vm894_vm4, %v5844_v48, 0.0 }
0x1e0f   :  { %3257 = vadd.xlane.f32.xlu1 %v3256_v8 }
0x1e20   :  { %3373 = vrot.lane.b32.xlu1 %v7357_v5, %s6566_s21  ;;  %v3372_v5 = vpop.permute.xlu0 %3371 }
0x1e9c   :  { %v3258_v15 = vpop.xlane.xlu1 %3257 }
0x1e9d   :  { %5845 = vrcp.f32 %v3258_v15 }
0x1ea0   :  { %v3374_v32 = vpop.permute.xlu1 %3373 }
0x1ea1   :  { %v3379_v49 = vsel %vm845_vm2, %v3374_v32, 0 }
0x1ea7   :  { %v5846_v41 = vpop.eup %5845 }
0x1ea8   :  { %v3260_v42 = vmul.f32 %v5846_v41, %v5844_v48 }
0x1eaa   :  { %v3261_v6 = vpack.c.bf16 %v3260_v42, %v3260_v42 }
0x1eac   :  { %5455 = vmatmul.mubr.msk.bf16.vlgmr.msra.gmra.mrb[72].mxu1 %vm894_vm4, %v3261_v6 }
0x1ead   :  { %5467 = vmatpush3.bf16.xpose.msra.mxu1 %v3379_v49  ;;  %5468 = vmatprep.mubr.msk.bf16.mxu1 %vm6564_vm0, %v6563_v1 }
0x1eae   :  { %5478 = vmatprep.subr.bf16.mxu1 %v6563_v1 }
0x1eb4   :  { %5469 = vmatmul.mubr.msk.bf16.vlgmr.msra.gmra.mrb[76].mxu1 %vm845_vm2, %v3372_v5 }
0x1eb5   :  { %5482 = vmatprep.mubr.msk.bf16.mxu1 %vm6564_vm0, %v6563_v1  ;;  %5479 = vmatpush3.bf16.msra.mxu1 %v7494_v25 }
0x1eb6   :  { %5480 = vmatprep.subr.bf16.mxu1 %v6563_v1 }
0x1eb9   :  { %5481 = vmatpush3.bf16.msra.mxu1 %v7498_v27 }
0x1eba   :  { %5492 = vmatprep.subr.bf16.mxu1 %v6563_v1 }
0x1f7f   :  { %v3304_v37 = vpop.f32.mrb[72].mxu1 }
0x1f80   :  { %v3310_v58 = vpack.c.bf16 %v3304_v37, %v3304_v37  ;;  %v5456_v59 = vpop.f32.mrb[73].mxu1 }
0x1f81   :  { %v3307_v56 = vpop.f32.mrb[74].mxu1 }
0x1f82   :  { %v5457_v57 = vpop.f32.mrb[75].mxu1  ;;  %5463 = vmatmul.mubr.msk.bf16.vlgmr.msra.gmra.mrb[76].mxu0 %vm845_vm2, %v3310_v58 }
0x1f83   :  { %5474 = vmatprep.mubr.msk.bf16.mxu0 %vm6564_vm0, %v6563_v1 }
0x1f87   :  { %v3415_v60 = vpop.f32.mrb[76].mxu1 }
0x1f88   :  { %v3421_v31 = vmul.f32 0.17677669, %v3415_v60  ;;  %v5470_v51 = vpop.f32.mrb[77].mxu1 }
0x1f89   :  { %v3418_v53 = vpop.f32.mrb[78].mxu1 }
0x1f8a   :  { %v5471_v4 = vpop.f32.mrb[79].mxu1  ;;  %v3422_v10 = vsel %vm7067_vm3, %v3421_v31, -1000000.0 }
0x1f8b   :  { %v3423_v11 = vsel %vm894_vm4, %v3422_v10, -inf }
0x1f8c   :  { %3424 = vmax.xlane.f32.xlu0 %v3423_v11 }
0x1fa2   :  { %3435 = vrot.lane.b32.xlu0 %v7351_v3, %s6566_s21 }
0x1fa6   :  { %3655 = vrot.lane.b32.xlu0 %v7477_v19, %s6565_s13 }
0x2019   :  { %v3425_v44 = vpop.xlane.xlu0 %3424 }
0x201a   :  { %v3426_v16 = vsub.f32 %v3422_v10, %v3425_v44 }
0x201c   :  { %v3427_v46 = vmul.f32 1.442695, %v3426_v16 }
0x201d   :  { %v3436_v14 = vpop.permute.xlu0 %3435 }
0x201e   :  { %5847 = vpow2.f32 %v3427_v46  ;;  %v3441_v22 = vsel %vm910_vm1, %v3436_v14, 0 }
0x201f   :  { %5473 = vmatpush3.bf16.msra.mxu0 %v3441_v22 }
0x2020   :  { %5486 = vmatprep.subr.bf16.mxu0 %v6563_v1 }
0x2021   :  { %v3656_v23 = vpop.permute.xlu0 %3655 }
0x2028   :  { %v5848_v3 = vpop.eup %5847 }
0x2029   :  { %v3429_v17 = vsel %vm894_vm4, %v5848_v3, 0.0 }
0x202a   :  { %3430 = vadd.xlane.f32.xlu1 %v3429_v17 }
0x203b   :  { %3658 = vrot.lane.b32.xlu1 %v7486_v61, %s6565_s13 }
0x2055   :  { %v3364_v18 = vpop.f32.mrb[76].mxu0 }
0x2056   :  { %v7491_v20 = vadd.f32 %v3364_v18, %v7435_v62  ;;  %v5464_v21 = vpop.f32.mrb[77].mxu0 }
0x2057   :  { %v3367_v24 = vpop.f32.mrb[78].mxu0 }
0x2058   :  { %v5465_v26 = vpop.f32.mrb[79].mxu0 }
0x20b7   :  { %v3431_v47 = vpop.xlane.xlu1 %3430 }
0x20b8   :  { %5849 = vrcp.f32 %v3431_v47 }
0x20bb   :  { %v3659_v33 = vpop.permute.xlu1 %3658 }
0x20bc   :  { %v3664_v34 = vsel %vm845_vm2, %v3659_v33, 0 }
0x20c2   :  { %v5850_v28 = vpop.eup %5849 }
0x20c3   :  { %v3433_v62 = vmul.f32 %v5850_v28, %v5848_v3 }
0x20c5   :  { %v3434_v29 = vpack.c.bf16 %v3433_v62, %v3433_v62 }
0x20c7   :  { %5475 = vmatmul.mubr.msk.bf16.vlgmr.msra.gmra.mrb[80].mxu0 %vm894_vm4, %v3434_v29 }
0x20c8   :  { %5487 = vmatpush3.bf16.xpose.msra.mxu0 %v3551_v7  ;;  %5488 = vmatprep.mubr.msk.bf16.mxu0 %vm6564_vm0, %v6563_v1 }
0x20c9   :  { %5498 = vmatprep.subr.bf16.mxu0 %v6563_v1 }
0x20cf   :  { %5489 = vmatmul.mubr.msk.bf16.vlgmr.msra.gmra.mrb[84].mxu0 %vm845_vm2, %v7477_v19 }
0x20d0   :  { %5499 = vmatpush3.bf16.xpose.msra.mxu0 %v3664_v34  ;;  %5500 = vmatprep.mubr.msk.bf16.mxu0 %vm6564_vm0, %v6563_v1 }
0x20d1   :  { %5510 = vmatprep.subr.bf16.mxu0 %v6563_v1 }
0x20d7   :  { %5501 = vmatmul.mubr.msk.bf16.vlgmr.msra.gmra.mrb[88].mxu0 %vm845_vm2, %v3656_v23 }
0x20d8   :  { %5511 = vmatpush3.bf16.msra.mxu0 %v7400_v43  ;;  %5514 = vmatprep.mubr.msk.bf16.mxu0 %vm6564_vm0, %v6563_v1  ;;  %v3611_v43 = vsel %vm910_vm1, %v7524_v36, 0 }
0x20d9   :  { %5512 = vmatprep.subr.bf16.mxu0 %v6563_v1 }
0x20dc   :  { %5513 = vmatpush3.bf16.msra.mxu0 %v7404_v12 }
0x20dd   :  { %5526 = vmatprep.subr.bf16.mxu0 %v6563_v1 }
0x219a   :  { %v3477_v13 = vpop.f32.mrb[80].mxu0 }
0x219b   :  { %v3483_v38 = vpack.c.bf16 %v3477_v13, %v3477_v13  ;;  %v5476_v30 = vpop.f32.mrb[81].mxu0 }
0x219c   :  { %v3480_v39 = vpop.f32.mrb[82].mxu0 }
0x219d   :  { %v5477_v48 = vpop.f32.mrb[83].mxu0  ;;  %5483 = vmatmul.mubr.msk.bf16.vlgmr.msra.gmra.mrb[80].mxu1 %vm845_vm2, %v3483_v38 }
0x219e   :  { %5493 = vmatpush3.bf16.msra.mxu1 %v3611_v43  ;;  %5494 = vmatprep.mubr.msk.bf16.mxu1 %vm6564_vm0, %v6563_v1 }
0x219f   :  { %5504 = vmatprep.subr.bf16.mxu1 %v6563_v1 }
0x21a2   :  { %v3587_v12 = vpop.f32.mrb[84].mxu0 }
0x21a3   :  { %v3593_v8 = vmul.f32 0.17677669, %v3587_v12  ;;  %v5490_v2 = vpop.f32.mrb[85].mxu0 }
0x21a4   :  { %v3590_v15 = vpop.f32.mrb[86].mxu0 }
0x21a5   :  { %v5491_v41 = vpop.f32.mrb[87].mxu0  ;;  %v3594_v42 = vsel %vm7214_vm5, %v3593_v8, -1000000.0 }
0x21a6   :  { %v3595_v32 = vsel %vm894_vm4, %v3594_v42, -inf }
0x21a7   :  { %3596 = vmax.xlane.f32.xlu0 %v3595_v32 }
0x21aa   :  { %v3700_v6 = vpop.f32.mrb[88].mxu0 }
0x21ab   :  { %v3706_v49 = vmul.f32 0.17677669, %v3700_v6  ;;  %v5502_v5 = vpop.f32.mrb[89].mxu0 }
0x21ac   :  { %v3703_v37 = vpop.f32.mrb[90].mxu0 }
0x21ad   :  { %v5503_v58 = vpop.f32.mrb[91].mxu0  ;;  %v3707_v59 = vsel %vm7214_vm5, %v3706_v49, -1000000.0 }
0x21ae   :  { %v3708_v56 = vsel %vm894_vm4, %v3707_v59, -inf }
0x21af   :  { %3709 = vmax.xlane.f32.xlu1 %v3708_v56 }
0x21c0   :  { %3858 = vrot.lane.b32.xlu1 %v7486_v61, %s6532_s22 }
0x21c4   :  { %3856 = vrot.lane.b32.xlu1 %v7477_v19, %s6532_s22 }
0x2234   :  { %v3597_v57 = vpop.xlane.xlu0 %3596 }
0x2235   :  { %v3598_v60 = vsub.f32 %v3594_v42, %v3597_v57 }
0x2237   :  { %v3599_v31 = vmul.f32 1.442695, %v3598_v60 }
0x2239   :  { %5851 = vpow2.f32 %v3599_v31 }
0x223c   :  { %v3710_v51 = vpop.xlane.xlu1 %3709 }
0x223d   :  { %v3711_v53 = vsub.f32 %v3707_v59, %v3710_v51 }
0x223f   :  { %v3712_v4 = vmul.f32 1.442695, %v3711_v53 }
0x2241   :  { %5853 = vpow2.f32 %v3712_v4 }
0x2243   :  { %v5852_v10 = vpop.eup %5851 }
0x2244   :  { %v3601_v11 = vsel %vm894_vm4, %v5852_v10, 0.0 }
0x2245   :  { %3602 = vadd.xlane.f32.xlu0 %v3601_v11 }
0x224b   :  { %v5854_v44 = vpop.eup %5853 }
0x224c   :  { %v3714_v16 = vsel %vm894_vm4, %v5854_v44, 0.0 }
0x224d   :  { %3715 = vadd.xlane.f32.xlu0 %v3714_v16 }
0x2263   :  { %3721 = vrot.lane.b32.xlu0 %v7524_v36, %s6565_s13 }
0x2270   :  { %v3537_v46 = vpop.f32.mrb[80].mxu1 }
0x2271   :  { %v7547_v14 = vadd.f32 %v3537_v46, %v7491_v20  ;;  %v5484_v22 = vpop.f32.mrb[81].mxu1 }
0x2272   :  { %v3540_v3 = vpop.f32.mrb[82].mxu1 }
0x2273   :  { %v5485_v17 = vpop.f32.mrb[83].mxu1 }
0x22d2   :  { %v3603_v18 = vpop.xlane.xlu0 %3602 }
0x22d3   :  { %5855 = vrcp.f32 %v3603_v18 }
0x22da   :  { %v3716_v21 = vpop.xlane.xlu0 %3715 }
0x22db   :  { %5857 = vrcp.f32 %v3716_v21 }
0x22dd   :  { %v5856_v24 = vpop.eup %5855 }
0x22de   :  { %v3605_v26 = vmul.f32 %v5856_v24, %v5852_v10  ;;  %v3722_v47 = vpop.permute.xlu0 %3721 }
0x22df   :  { %v3727_v62 = vsel %vm910_vm1, %v3722_v47, 0 }
0x22e0   :  { %v3606_v28 = vpack.c.bf16 %v3605_v26, %v3605_v26 }
0x22e2   :  { %5495 = vmatmul.mubr.msk.bf16.vlgmr.msra.gmra.mrb[84].mxu1 %vm894_vm4, %v3606_v28 }
0x22e3   :  { %5505 = vmatpush3.bf16.msra.mxu1 %v3727_v62  ;;  %5506 = vmatprep.mubr.msk.bf16.mxu1 %vm6564_vm0, %v6563_v1 }
0x22e4   :  { %5518 = vmatprep.subr.bf16.mxu1 %v6563_v1 }
0x22e5   :  { %v5858_v20 = vpop.eup %5857 }
0x22e6   :  { %v3718_v29 = vmul.f32 %v5858_v20, %v5854_v44 }
0x22e8   :  { %v3719_v7 = vpack.c.bf16 %v3718_v29, %v3718_v29 }
0x22ea   :  { %5507 = vmatmul.mubr.msk.bf16.vlgmr.msra.gmra.mrb[88].mxu1 %vm894_vm4, %v3719_v7 }
0x22eb   :  { %5519 = vmatpush3.bf16.msra.mxu1 %v7412_v63  ;;  %5522 = vmatprep.mubr.msk.bf16.mxu1 %vm6564_vm0, %v6563_v1  ;;  %v3859_v63 = vpop.permute.xlu1 %3858 }
0x22ec   :  { %5520 = vmatprep.subr.bf16.mxu1 %v6563_v1  ;;  %v3864_v12 = vsel %vm845_vm2, %v3859_v63, 0 }
0x22ef   :  { %5521 = vmatpush3.bf16.msra.mxu1 %v7417_v54  ;;  %v3857_v8 = vpop.permute.xlu1 %3856 }
0x22f0   :  { %5532 = vmatprep.subr.bf16.mxu1 %v6563_v1 }
0x23b5   :  { %v3647_v33 = vpop.f32.mrb[84].mxu1 }
0x23b6   :  { %v3653_v34 = vpack.c.bf16 %v3647_v33, %v3647_v33  ;;  %v5496_v23 = vpop.f32.mrb[85].mxu1 }
0x23b7   :  { %v3650_v13 = vpop.f32.mrb[86].mxu1 }
0x23b8   :  { %v5497_v38 = vpop.f32.mrb[87].mxu1  ;;  %5523 = vmatmul.mubr.msk.bf16.vlgmr.msra.gmra.mrb[92].mxu1 %vm845_vm2, %v3653_v34 }
0x23b9   :  { %5534 = vmatprep.mubr.msk.bf16.mxu1 %vm6564_vm0, %v6563_v1 }
0x23bd   :  { %v3763_v30 = vpop.f32.mrb[88].mxu1 }
0x23be   :  { %v3769_v39 = vpack.c.bf16 %v3763_v30, %v3763_v30  ;;  %v5508_v48 = vpop.f32.mrb[89].mxu1 }
0x23bf   :  { %v3766_v43 = vpop.f32.mrb[90].mxu1 }
0x23c0   :  { %v5509_v54 = vpop.f32.mrb[91].mxu1  ;;  %5515 = vmatmul.mubr.msk.bf16.vlgmr.msra.gmra.mrb[92].mxu0 %vm845_vm2, %v3769_v39 }
0x23c1   :  { %5527 = vmatpush3.bf16.xpose.msra.mxu0 %v3864_v12  ;;  %5528 = vmatprep.mubr.msk.bf16.mxu0 %vm6564_vm0, %v6563_v1 }
0x23c2   :  { %5538 = vmatprep.subr.bf16.mxu0 %v6563_v1 }
0x23c8   :  { %5529 = vmatmul.mubr.msk.bf16.vlgmr.msra.gmra.mrb[96].mxu0 %vm845_vm2, %v3857_v8 }
0x23c9   :  { %5539 = vmatpush3.bf16.msra.mxu0 %v7450_v40  ;;  %5542 = vmatprep.mubr.msk.bf16.mxu0 %vm6564_vm0, %v6563_v1 }
0x23ca   :  { %5540 = vmatprep.subr.bf16.mxu0 %v6563_v1 }
0x23cd   :  { %5541 = vmatpush3.bf16.msra.mxu0 %v7463_v50 }
0x23ce   :  { %5552 = vmatprep.subr.bf16.mxu0 %v6563_v1 }
0x248b   :  { %v3850_v2 = vpop.f32.mrb[92].mxu1 }
0x248c   :  { %v5524_v15 = vpop.f32.mrb[93].mxu1 }
0x248d   :  { %v3853_v41 = vpop.f32.mrb[94].mxu1 }
0x248e   :  { %v5525_v42 = vpop.f32.mrb[95].mxu1 }
0x2493   :  { %v3807_v32 = vpop.f32.mrb[92].mxu0 }
0x2494   :  { %v7576_v6 = vadd.f32 %v3850_v2, %v3807_v32  ;;  %v5516_v49 = vpop.f32.mrb[93].mxu0 }
0x2495   :  { %v3810_v5 = vpop.f32.mrb[94].mxu0 }
0x2496   :  { %v5517_v37 = vpop.f32.mrb[95].mxu0 }
0x249b   :  { %v3900_v40 = vpop.f32.mrb[96].mxu0 }
0x249c   :  { %v3906_v58 = vmul.f32 0.17677669, %v3900_v40  ;;  %v5530_v59 = vpop.f32.mrb[97].mxu0 }
0x249d   :  { %v3903_v56 = vpop.f32.mrb[98].mxu0 }
0x249e   :  { %v5531_v57 = vpop.f32.mrb[99].mxu0  ;;  %v3907_v50 = vsel %vm7214_vm5, %v3906_v58, -1000000.0 }
0x249f   :  { %v3908_v60 = vsel %vm894_vm4, %v3907_v50, -inf }
0x24a0   :  { %3909 = vmax.xlane.f32.xlu0 %v3908_v60 }
0x24b6   :  { %3920 = vrot.lane.b32.xlu0 %v7524_v36, %s6532_s22  ;;  %s7667_s22 = sld [smem:[#allocation87_spill]] }
0x24ba   :  { %4013 = vrot.lane.b32.xlu0 %v7477_v19, %s6566_s21 }
0x24bc   :  { %v4978_v28 = vld [vmem:[%s7667_s22] ss:$0 sm:$0xff] }
0x24bd   :  { %v4177_v7 = vadd.f32 %v4978_v28, %v7547_v14 }
0x24bf   :  { %v4179_v23 = vadd.f32 %v4177_v7, %v7336_v45  ;;  %v5784_v7 = vld [vmem:[#allocation19 + $0x10] sm:$0xff]  }
0x252d   :  { %v3910_v31 = vpop.xlane.xlu0 %3909 }
0x252e   :  { %v3911_v51 = vsub.f32 %v3907_v50, %v3910_v31  ;;  %v5755_v31 = vld [vmem:[#allocation17] ss:$8 sps:$4 sm:$0xff]  }
0x2530   :  { %v3912_v53 = vmul.f32 1.442695, %v3911_v51  ;;  %v5757_v51 = vld [vmem:[#allocation17 + $0x4] ss:$8 sps:$4 sm:$0xff]  }
0x2531   :  { %v3921_v4 = vpop.permute.xlu0 %3920 }
0x2532   :  { %5859 = vpow2.f32 %v3912_v53  ;;  %v3926_v10 = vsel %vm910_vm1, %v3921_v4, 0  ;;  %v5760_v53 = vld [vmem:[#allocation17 + $0x14] ss:$8 sps:$4 sm:$0xff]   ;;  %v5758_v4 = vld [vmem:[#allocation17 + $0x10] ss:$8 sps:$4 sm:$0xff]  }
0x2533   :  { %5533 = vmatpush3.bf16.msra.mxu1 %v3926_v10  ;;  %v5763_v10 = vld [vmem:[#allocation17 + $0x24] ss:$8 sps:$4 sm:$0xff]  }
0x2534   :  { %5546 = vmatprep.subr.bf16.mxu1 %v6563_v1 }
0x2535   :  { %v4014_v18 = vpop.permute.xlu0 %4013 }
0x253c   :  { %v5860_v11 = vpop.eup %5859 }
0x253d   :  { %v3914_v44 = vsel %vm894_vm4, %v5860_v11, 0.0 }
0x253e   :  { %3915 = vadd.xlane.f32.xlu1 %v3914_v44 }
0x254f   :  { %4015 = vrot.lane.b32.xlu1 %v7486_v61, %s6566_s21 }
0x25cb   :  { %v3916_v16 = vpop.xlane.xlu1 %3915 }
0x25cc   :  { %5861 = vrcp.f32 %v3916_v16 }
0x25cf   :  { %v4016_v22 = vpop.permute.xlu1 %4015 }
0x25d0   :  { %v4021_v17 = vsel %vm845_vm2, %v4016_v22, 0  ;;  %v5764_v22 = vld [vmem:[#allocation17 + $0x30] ss:$8 sps:$4 sm:$0xff]  }
0x25d6   :  { %v5862_v19 = vpop.eup %5861 }
0x25d7   :  { %v3918_v46 = vmul.f32 %v5862_v19, %v5860_v11  ;;  %v5761_v11 = vld [vmem:[#allocation17 + $0x20] ss:$8 sps:$4 sm:$0xff]  }
0x25d9   :  { %v3919_v3 = vpack.c.bf16 %v3918_v46, %v3918_v46  ;;  %v5766_v46 = vld [vmem:[#allocation17 + $0x34] ss:$8 sps:$4 sm:$0xff]  }
0x25db   :  { %5535 = vmatmul.mubr.msk.bf16.vlgmr.msra.gmra.mrb[96].mxu1 %vm894_vm4, %v3919_v3  ;;  %v5769_v3 = vld [vmem:[#allocation17 + $0x44] ss:$8 sps:$4 sm:$0xff]  }
0x25dc   :  { %5547 = vmatpush3.bf16.xpose.msra.mxu1 %v4021_v17  ;;  %5548 = vmatprep.mubr.msk.bf16.mxu1 %vm6564_vm0, %v6563_v1  ;;  %v5767_v17 = vld [vmem:[#allocation17 + $0x40] ss:$8 sps:$4 sm:$0xff]  }
0x25dd   :  { %5558 = vmatprep.subr.bf16.mxu1 %v6563_v1 }
0x25e3   :  { %5549 = vmatmul.mubr.msk.bf16.vlgmr.msra.gmra.mrb[100].mxu1 %vm845_vm2, %v4014_v18  ;;  %v5772_v18 = vld [vmem:[#allocation17 + $0x54] ss:$8 sps:$4 sm:$0xff]  }
0x25e4   :  { %5559 = vmatpush3.bf16.msra.mxu1 %v7494_v25  ;;  %5562 = vmatprep.mubr.msk.bf16.mxu1 %vm6564_vm0, %v6563_v1 }
0x25e5   :  { %5560 = vmatprep.subr.bf16.mxu1 %v6563_v1 }
0x25e8   :  { %5561 = vmatpush3.bf16.msra.mxu1 %v7498_v27 }
0x26ae   :  { %v3962_v61 = vpop.f32.mrb[96].mxu1 }
0x26af   :  { %v3968_v21 = vpack.c.bf16 %v3962_v61, %v3962_v61  ;;  %v5536_v24 = vpop.f32.mrb[97].mxu1  ;;  %v5770_v61 = vld [vmem:[#allocation17 + $0x50] ss:$8 sps:$4 sm:$0xff]  }
0x26b0   :  { %v3965_v26 = vpop.f32.mrb[98].mxu1  ;;  %v5773_v24 = vld [vmem:[#allocation17 + $0x60] ss:$8 sps:$4 sm:$0xff]  }
0x26b1   :  { %v5537_v47 = vpop.f32.mrb[99].mxu1  ;;  %5543 = vmatmul.mubr.msk.bf16.vlgmr.msra.gmra.mrb[100].mxu0 %vm845_vm2, %v3968_v21  ;;  %v5775_v21 = vld [vmem:[#allocation17 + $0x64] ss:$8 sps:$4 sm:$0xff]   ;;  %v5778_v26 = vld [vmem:[#allocation17 + $0x74] ss:$8 sps:$4 sm:$0xff]  }
0x26b2   :  { %5554 = vmatprep.mubr.msk.bf16.mxu0 %vm6564_vm0, %v6563_v1  ;;  %v5776_v47 = vld [vmem:[#allocation17 + $0x70] ss:$8 sps:$4 sm:$0xff]  }
0x26b6   :  { %v4057_v62 = vpop.f32.mrb[100].mxu1 }
0x26b7   :  { %v4063_v25 = vmul.f32 0.17677669, %v4057_v62  ;;  %v5550_v20 = vpop.f32.mrb[101].mxu1  ;;  %v5780_v62 = vld [vmem:[#allocation19] sm:$0xff]  }
0x26b8   :  { %v4060_v29 = vpop.f32.mrb[102].mxu1  ;;  %v5782_v20 = vld [vmem:[#allocation19 + $0x8] sm:$0xff]  }
0x26b9   :  { %v5551_v33 = vpop.f32.mrb[103].mxu1  ;;  %v4064_v27 = vsel %vm7214_vm5, %v4063_v25, -1000000.0  ;;  %v5781_v25 = vld [vmem:[#allocation19 + $0x48] sm:$0xff]   ;;  %v5783_v29 = vld [vmem:[#allocation19 + $0x50] sm:$0xff]  }
0x26ba   :  { %v4065_v34 = vsel %vm894_vm4, %v4064_v27, -inf  ;;  %v5785_v33 = vld [vmem:[#allocation19 + $0x58] sm:$0xff]  }
0x26bb   :  { %4066 = vmax.xlane.f32.xlu1 %v4065_v34  ;;  %v5787_v34 = vld [vmem:[#allocation19 + $0x60] sm:$0xff]  }
0x26bf   :  { %4183 = vadd.xlane.f32.xlu1 %v4179_v23 }
0x2748   :  { %v4067_v13 = vpop.xlane.xlu1 %4066 }
0x2749   :  { %v4068_v38 = vsub.f32 %v4064_v27, %v4067_v13  ;;  %v5786_v27 = vld [vmem:[#allocation19 + $0x18] sm:$0xff]   ;;  %v5789_v13 = vld [vmem:[#allocation19 + $0x68] sm:$0xff]  }
0x274b   :  { %v4069_v1 = vmul.f32 1.442695, %v4068_v38 }
0x274c   :  { %v4184_v49 = vpop.xlane.xlu1 %4183 }
0x274d   :  { %5863 = vpow2.f32 %v4069_v1  ;;  %v4187_v37 = vmul.f32 0.0078125, %v4184_v49  ;;  %v5793_v49 = vld [vmem:[#allocation19 + $0x78] sm:$0xff]  }
0x274f   :  { %v7618_v50 = vsub.f32 %v4179_v23, %v4187_v37  ;;  %v5788_v23 = vld [vmem:[#allocation19 + $0x20] sm:$0xff]   ;;  %v4238_v37 = vld [vmem:[%s7670_s8] sm:$0x3] }
0x2757   :  { %v5864_v63 = vpop.eup %5863 }
0x2758   :  { %v4071_v30 = vsel %vm894_vm4, %v5864_v63, 0.0 }
0x2759   :  { %4072 = vadd.xlane.f32.xlu0 %v4071_v30 }
0x276f   :  { %4077 = vrot.lane.b32.xlu0 %v7524_v36, %s6566_s21 }
0x2784   :  { %v4006_v14 = vpop.f32.mrb[100].mxu0 }
0x2785   :  { %v4012_v9 = vadd.f32 %v4006_v14, %v7576_v6  ;;  %v5544_v39 = vpop.f32.mrb[101].mxu0 }
0x2786   :  { %v4009_v48 = vpop.f32.mrb[102].mxu0 }
0x2787   :  { %v5545_v43 = vpop.f32.mrb[103].mxu0 }
0x2788   :  { %v4979_v43 = vld [vmem:[%s7668_s1] ss:$0 sm:$0xff] }
0x27e6   :  { %v4073_v12 = vpop.xlane.xlu0 %4072 }
0x27e7   :  { %5865 = vrcp.f32 %v4073_v12 }
0x27ea   :  { %v4078_v45 = vpop.permute.xlu0 %4077 }
0x27eb   :  { %v4083_v54 = vsel %vm910_vm1, %v4078_v45, 0 }
0x27ec   :  { %5553 = vmatpush3.bf16.msra.mxu0 %v4083_v54 }
0x27ed   :  { %4330 = vmatprep.subr.bf16.mxu0 %v5757_v51 }
0x27f1   :  { %v5866_v8 = vpop.eup %5865 }
0x27f2   :  { %v4075_v2 = vmul.f32 %v5866_v8, %v5864_v63  ;;  %v4980_v8 = vld [vmem:[%s7669_s10] ss:$0 sm:$0xff] }
0x27f4   :  { %v4076_v15 = vpack.c.bf16 %v4075_v2, %v4075_v2 }
0x27f6   :  { %5555 = vmatmul.mubr.msk.bf16.vlgmr.msra.gmra.mrb[104].mxu0 %vm894_vm4, %v4076_v15 }
0x27f7   :  { %4362 = vmatprep.mubr.bf16.mxu0 %v6562_v0  ;;  %v4191_v0 = vmul.f32 %v7618_v50, %v7618_v50  ;;  %4331 = vmatpush1.bf16.msra.mxu0 %v5755_v31 }
0x27f8   :  { %4332 = vmatprep.subr.bf16.mxu0 %v5760_v53 }
0x27fb   :  { %4333 = vmatpush1.bf16.msra.mxu0 %v5758_v4 }
0x27fc   :  { %4334 = vmatprep.subr.bf16.mxu0 %v5763_v10 }
0x27ff   :  { %4335 = vmatpush1.bf16.msra.mxu0 %v5761_v11 }
0x2800   :  { %4336 = vmatprep.subr.bf16.mxu0 %v5766_v46 }
0x2803   :  { %4337 = vmatpush1.bf16.msra.mxu0 %v5764_v22 }
0x2804   :  { %4338 = vmatprep.subr.bf16.mxu0 %v5769_v3 }
0x2807   :  { %4339 = vmatpush1.bf16.msra.mxu0 %v5767_v17 }
0x2808   :  { %4340 = vmatprep.subr.bf16.mxu0 %v5772_v18 }
0x280b   :  { %4341 = vmatpush1.bf16.msra.mxu0 %v5770_v61 }
0x280c   :  { %4342 = vmatprep.subr.bf16.mxu0 %v5775_v21 }
0x280f   :  { %4343 = vmatpush1.bf16.msra.mxu0 %v5773_v24 }
0x2810   :  { %4344 = vmatprep.subr.bf16.mxu0 %v5778_v26 }
0x2813   :  { %4345 = vmatpush1.bf16.msra.mxu0 %v5776_v47 }
0x28c9   :  { %v4119_v36 = vpop.f32.mrb[104].mxu0 }
0x28ca   :  { %v4125_v41 = vpack.c.bf16 %v4119_v36, %v4119_v36  ;;  %v5556_v42 = vpop.f32.mrb[105].mxu0 }
0x28cb   :  { %v4122_v32 = vpop.f32.mrb[106].mxu0  ;;  %v5790_v42 = vld [vmem:[#allocation19 + $0x28] sm:$0xff]  }
0x28cc   :  { %v5557_v6 = vpop.f32.mrb[107].mxu0  ;;  %5563 = vmatmul.mubr.msk.bf16.vlgmr.msra.gmra.mrb[104].mxu1 %vm845_vm2, %v4125_v41  ;;  %v5791_v32 = vld [vmem:[#allocation19 + $0x70] sm:$0xff]  }
0x28cd   :  { %v5792_v6 = vld [vmem:[#allocation19 + $0x30] sm:$0xff]  }
0x299f   :  { %v4163_v5 = vpop.f32.mrb[104].mxu1 }
0x29a0   :  { %v4169_v40 = vadd.f32 %v4163_v5, %v4012_v9  ;;  %v5564_v58 = vpop.f32.mrb[105].mxu1  ;;  %v5794_v5 = vld [vmem:[#allocation19 + $0x38] sm:$0xff]  }
0x29a1   :  { %v4166_v59 = vpop.f32.mrb[106].mxu1  ;;  %v4247_v58 = vrot.slane %v4238_v37, %v7027_v55 }
0x29a2   :  { %v4178_v56 = vadd.f32 %v4978_v28, %v4169_v40  ;;  %v5565_v57 = vpop.f32.mrb[107].mxu1  ;;  %v5779_v28 = vld [vmem:[#allocation19 + $0x40] sm:$0xff]   ;;  %v4243_v40 = vrot.slane %v4238_v37, %v7022_v52 }
0x29a3   :  { %5184 = vmatprep.subr.bf16.mxu1 %v5779_v28 }
0x29a4   :  { %v4180_v60 = vadd.f32 %v4178_v56, %v7338_v35  ;;  %5185 = vmatpush3.bf16.msra.mxu1 %v5780_v62 }
0x29a5   :  { %5186 = vmatprep.subr.bf16.mxu1 %v5781_v25 }
0x29a6   :  { %4185 = vadd.xlane.f32.xlu1 %v4180_v60 }
0x29a8   :  { %5187 = vmatpush3.bf16.msra.mxu1 %v5782_v20 }
0x29a9   :  { %5188 = vmatprep.subr.bf16.mxu1 %v5783_v29 }
0x29aa   :  { %4193 = vadd.xlane.f32.xlu1 %v4191_v0 }
0x29ac   :  { %5189 = vmatpush3.bf16.msra.mxu1 %v5784_v7 }
0x29ad   :  { %5190 = vmatprep.subr.bf16.mxu1 %v5785_v33 }
0x29b0   :  { %5191 = vmatpush3.bf16.msra.mxu1 %v5786_v27 }
0x29b1   :  { %5192 = vmatprep.subr.bf16.mxu1 %v5787_v34 }
0x29b4   :  { %5193 = vmatpush3.bf16.msra.mxu1 %v5788_v23 }
0x29b5   :  { %5194 = vmatprep.subr.bf16.mxu1 %v5789_v13 }
0x29b8   :  { %5195 = vmatpush3.bf16.msra.mxu1 %v5790_v42 }
0x29b9   :  { %5196 = vmatprep.subr.bf16.mxu1 %v5791_v32 }
0x29bc   :  { %5197 = vmatpush3.bf16.msra.mxu1 %v5792_v6 }
0x29bd   :  { %5198 = vmatprep.subr.bf16.mxu1 %v5793_v49 }
0x29c0   :  { %5199 = vmatpush3.bf16.msra.mxu1 %v5794_v5 }
0x2a33   :  { %v4186_v44 = vpop.xlane.xlu1 %4185 }
0x2a34   :  { %v4188_v16 = vmul.f32 0.0078125, %v4186_v44 }
0x2a36   :  { %v4190_v35 = vsub.f32 %v4180_v60, %v4188_v16 }
0x2a37   :  { %v4194_v38 = vpop.xlane.xlu1 %4193 }
0x2a38   :  { %v4192_v19 = vmul.f32 %v4190_v35, %v4190_v35  ;;  %v4197_v1 = vmul.f32 0.0078125, %v4194_v38 }
0x2a3a   :  { %4195 = vadd.xlane.f32.xlu1 %v4192_v19  ;;  %v4199_v63 = vadd.f32 1e-05, %v4197_v1  ;;  %v5014_v1 = vld [vmem:[%s6716_s19] ss:$0 sm:$0xff] }
0x2a3c   :  { %5867 = vrsqrt.f32 %v4199_v63 }
0x2a46   :  { %v5868_v39 = vpop.eup %5867 }
0x2a47   :  { %v4203_v48 = vmul.f32 %v5868_v39, %v7618_v50 }
0x2a49   :  { %v4211_v54 = vmul.f32 %v4979_v43, %v4203_v48 }
0x2a4b   :  { %v4219_v15 = vadd.f32 %v4980_v8, %v4211_v54 }
0x2ac7   :  { %v4196_v30 = vpop.xlane.xlu1 %4195 }
0x2ac8   :  { %v4198_v14 = vmul.f32 0.0078125, %v4196_v30  ;;  %v5015_v30 = vld [vmem:[%s6721_s4] ss:$0 sm:$0xff] }
0x2aca   :  { %v4200_v9 = vadd.f32 1e-05, %v4198_v14 }
0x2acc   :  { %5869 = vrsqrt.f32 %v4200_v9 }
0x2ad6   :  { %v5870_v12 = vpop.eup %5869 }
0x2ad7   :  { %v4204_v45 = vmul.f32 %v5870_v12, %v4190_v35  ;;  %v4997_v35 = vld [vmem:[%s6711_s20] ss:$0 sm:$0xff]  ;;  %s6567_s20 = smov [#allocation20]  }
0x2ad8   :  { %s4604_s23 = sshll.u32 %s6567_s20, 4  ;;  %s4605_s23 = int_to_ptr.vmem [resolvable:$true] %s4604_s23 }
0x2ad9   :  { %v4212_v2 = vmul.f32 %v4979_v43, %v4204_v45  ;;  %s6433_s16 = scalar_lea.vmem %s4605_s23, 256  ;;  %p6438_p3 = scmp.lt.s32.totalorder %s4605_s23, %s4605_s23 }
0x2ada   :  { %p6434_p2 = scmp.ne.s32.totalorder %s4605_s23, %s6433_s16  ;;  %p6439_p4 = scmp.lt.s32.totalorder %s6433_s16, %s6433_s16 }
0x2adb   :  { %v4220_v36 = vadd.f32 %v4980_v8, %v4212_v2 }
0x2adc   :  { %p6440_p5 = por %p6439_p4, %p6438_p3 }
0x2add   :  { %v4221_v41 = vpack.c.bf16 %v4220_v36, %v4219_v15 }
0x2ade   :  { %p6441_p6 = pnand %p6440_p5, %p6434_p2 }
0x2adf   :  { %4363 = vmatmul.mubr.bf16.vlgmr.msra.gmra.mrb[108].mxu0 %v4221_v41 }
0x2bb2   :  { %v4364_v59 = vpop.f32.mrb[108].mxu0 }
0x2bb3   :  { %v4365_v56 = vadd.f32 %v4364_v59, %v4243_v40  ;;  %v4366_v57 = vpop.f32.mrb[109].mxu0 }
0x2bb4   :  { %v4367_v50 = vadd.f32 %v4366_v57, %v4247_v58  ;;  %v4368_v60 = vpop.f32.mrb[110].mxu0 }
0x2bb5   :  { %v4369_v0 = vadd.f32 %v4368_v60, %v4243_v40  ;;  %v4370_v31 = vpop.f32.mrb[111].mxu0  ;;  %v4373_v53 = vmax.f32 %v4365_v56, 0.0 }
0x2bb6   :  { %v4371_v51 = vadd.f32 %v4370_v31, %v4247_v58  ;;  %v4374_v10 = vmax.f32 %v4367_v50, 0.0 }
0x2bb7   :  { %v4375_v4 = vmax.f32 %v4369_v0, 0.0 }
0x2bb8   :  { %v4376_v11 = vmax.f32 %v4371_v51, 0.0 }
0x2bb9   :  { %v4377_v44 = vpack.c.bf16 %v4375_v4, %v4373_v53 }
0x2bba   :  { %v4378_v16 = vpack.c.bf16 %v4376_v11, %v4374_v10 }
0x2bbc   :  { %4546 = vmatprep.mubr.bf16.mxu1 %v4378_v16 }
0x2bbd   :  { %4547 = vmatmul.mubr.bf16.vlgmr.msra.gmra.mrb[108].mxu1 %v4377_v44 }
0x2c90   :  { %v5200_v52 = vpop.f32.mrb[108].mxu1 }
0x2c91   :  { %v5201_v55 = vpop.f32.mrb[109].mxu1 }
0x2c92   :  { %v5202_v19 = vadd.f32 %v5201_v55, %v5200_v52  ;;  %v5203_v46 = vpop.f32.mrb[110].mxu1 }
0x2c93   :  { %v5204_v22 = vpop.f32.mrb[111].mxu1 }
0x2c94   :  { %v4549_v3 = vadd.f32 %v5202_v19, %v4997_v35  ;;  %v5205_v17 = vadd.f32 %v5204_v22, %v5203_v46 }
0x2c96   :  { %v4552_v18 = vadd.f32 %v5205_v17, %v4997_v35  ;;  %v4555_v61 = vadd.f32 %v4549_v3, %v4219_v15 }
0x2c98   :  { %4559 = vadd.xlane.f32.xlu1 %v4555_v61  ;;  %v4556_v21 = vadd.f32 %v4552_v18, %v4220_v36 }
0x2c9c   :  { %4561 = vadd.xlane.f32.xlu1 %v4556_v21 }
0x2d25   :  { %v4560_v24 = vpop.xlane.xlu1 %4559 }
0x2d26   :  { %v4563_v26 = vmul.f32 0.0078125, %v4560_v24 }
0x2d28   :  { %v4565_v47 = vsub.f32 %v4555_v61, %v4563_v26 }
0x2d29   :  { %v4562_v28 = vpop.xlane.xlu1 %4561 }
0x2d2a   :  { %v4564_v62 = vmul.f32 0.0078125, %v4562_v28  ;;  %v4567_v25 = vmul.f32 %v4565_v47, %v4565_v47 }
0x2d2c   :  { %v4566_v20 = vsub.f32 %v4556_v21, %v4564_v62  ;;  %4569 = vadd.xlane.f32.xlu0 %v4567_v25 }
0x2d2e   :  { %v4568_v29 = vmul.f32 %v4566_v20, %v4566_v20 }
0x2d30   :  { %4571 = vadd.xlane.f32.xlu1 %v4568_v29 }
0x2db9   :  { %v4570_v7 = vpop.xlane.xlu0 %4569 }
0x2dba   :  { %v4573_v33 = vmul.f32 0.0078125, %v4570_v7 }
0x2dbc   :  { %v4575_v27 = vadd.f32 1e-05, %v4573_v33 }
0x2dbd   :  { %v4572_v34 = vpop.xlane.xlu1 %4571 }
0x2dbe   :  { %5871 = vrsqrt.f32 %v4575_v27  ;;  %v4574_v23 = vmul.f32 0.0078125, %v4572_v34 }
0x2dc0   :  { %v4576_v13 = vadd.f32 1e-05, %v4574_v23 }
0x2dc2   :  { %5873 = vrsqrt.f32 %v4576_v13 }
0x2dc8   :  { %v5872_v38 = vpop.eup %5871 }
0x2dc9   :  { %v4579_v63 = vmul.f32 %v5872_v38, %v4565_v47 }
0x2dcb   :  { %v4587_v14 = vmul.f32 %v5014_v1, %v4579_v63 }
0x2dcc   :  { %v5874_v9 = vpop.eup %5873 }
0x2dcd   :  { %v4580_v39 = vmul.f32 %v5874_v9, %v4566_v20  ;;  %v4595_v48 = vadd.f32 %v5015_v30, %v4587_v14 }
0x2dcf   :  { %v4588_v43 = vmul.f32 %v5014_v1, %v4580_v39  ;;  %4597 = vst [vmem:[#allocation20] sm:$0xff] %v4595_v48 }
0x2dd1   :  { %v4596_v12 = vadd.f32 %v5015_v30, %v4588_v43 }
0x2dd3   :  { %4598 = vst [vmem:[#allocation20 + $0x8] sm:$0xff] %v4596_v12 }
0x2dd4   :  { %6444 = shalt.err (!%p6441_p6)
}
0x2dd5   :  { %s6445_s19 = scalar_lea.hbm %s6726_s14, 256 }
0x2dd6   :  { %p6446_p7 = scmp.ne.s32.totalorder %s6726_s14, %s6445_s19  ;;  %p6449_p8 = scmp.lt.u32.totalorder %s6445_s19, %s6726_s14 }
0x2dd8   :  { %p6451_p9 = pnand %p6449_p8, %p6446_p7 }
0x2dda   :  { %6454 = shalt.err (!%p6451_p9)
}
0x2ddb   :  { %4610 = dma.vmem_to_hbm [thread:$0]  %s4605_s23, 256, %s6726_s14, [#allocation6], %s6536_s15, %s6536_s15, %s6537_s12  }
0x2ddc   :  { %6499 = dma.done.wait [#allocation6], 256  }
0x2ddd   :  { %6500 = vsyncadd [#allocation6], 4294967040 }
0x2dde   :  { %4614 = vsyncpa [#allocation5], 1 }
0x2ddf   :  { %4615 = vsyncpa [#allocation12], 1 }
0x2de0   :  { %4616 = vsyncpa [#allocation15], 1 }
0x2de1   :  { %4617 = vsyncpa [#allocation18], 1 }
0x2de2   :  { %4618 = vsyncpa [#allocation6], 1 }
0x2de3   :  { %4619 = vsyncpa [#allocation7], 1 }
0x2de4   :  { %4620 = vsyncpa [#allocation9], 1 }
0x2de5   :  { %4621 = vsyncmov [#allocation3] }
0x2de8   :  { %s4622_s4 = vpop.sfrf %4621 }
0x2de9   :  { %p5016_p10 = scmp.ne.s32.totalorder %s4622_s4, 0 }
0x2deb   :  { %4626 = shalt.err (%p5016_p10)  }
0x2dec   :  { %4628 = vsyncmov [#allocation3 + $0x1] }
0x2def   :  { %s4629_s18 = vpop.sfrf %4628 }
0x2df0   :  { %p5017_p11 = scmp.ne.s32.totalorder %s4629_s18, 0 }
0x2df2   :  { %4633 = shalt.err (%p5017_p11)  }
0x2df3   :  { %4635 = vsyncmov [#allocation3 + $0x2] }
0x2df6   :  { %s4636_s7 = vpop.sfrf %4635 }
0x2df7   :  { %p5018_p12 = scmp.ne.s32.totalorder %s4636_s7, 0 }
0x2df9   :  { %4640 = shalt.err (%p5018_p12)  }
0x2dfa   :  { %4642 = vsyncmov [#allocation3 + $0x3] }
0x2dfd   :  { %s4643_s14 = vpop.sfrf %4642 }
0x2dfe   :  { %p5019_p13 = scmp.ne.s32.totalorder %s4643_s14, 0 }
0x2e00   :  { %4647 = shalt.err (%p5019_p13)  }
0x2e01   :  { %4649 = vsyncmov [#allocation3 + $0x4] }
0x2e04   :  { %s4650_s15 = vpop.sfrf %4649 }
0x2e05   :  { %p5020_p0 = scmp.ne.s32.totalorder %s4650_s15, 0 }
0x2e07   :  { %4654 = shalt.err (%p5020_p0)  }
0x2e08   :  { %4656 = vsyncmov [#allocation3 + $0x5] }
0x2e0b   :  { %s4657_s12 = vpop.sfrf %4656 }
0x2e0c   :  { %p5021_p1 = scmp.ne.s32.totalorder %s4657_s12, 0 }
0x2e0e   :  { %4661 = shalt.err (%p5021_p1)  }
0x2e0f   :  { %4663 = vsyncmov [#allocation3 + $0x6] }
0x2e12   :  { %s4664_s11 = vpop.sfrf %4663 }
0x2e13   :  { %p5022_p2 = scmp.ne.s32.totalorder %s4664_s11, 0 }
0x2e15   :  { %4668 = shalt.err (%p5022_p2)  }
0x2e16   :  { %4670 = vsyncmov [#allocation3 + $0x7] }
0x2e19   :  { %s4671_s29 = vpop.sfrf %4670 }
0x2e1a   :  { %p5023_p3 = scmp.ne.s32.totalorder %s4671_s29, 0 }
0x2e1c   :  { %4675 = shalt.err (%p5023_p3)  }
0x2e1d   :  { %4677 = vsyncmov [#allocation3 + $0x8] }
0x2e20   :  { %s4678_s27 = vpop.sfrf %4677 }
0x2e21   :  { %p5024_p4 = scmp.ne.s32.totalorder %s4678_s27, 0 }
0x2e23   :  { %4682 = shalt.err (%p5024_p4)  }
0x2e24   :  { %4684 = vsyncmov [#allocation3 + $0x9] }
0x2e27   :  { %s4685_s28 = vpop.sfrf %4684 }
0x2e28   :  { %p5025_p5 = scmp.ne.s32.totalorder %s4685_s28, 0 }
0x2e2a   :  { %4689 = shalt.err (%p5025_p5)  }
0x2e2b   :  { %4691 = vsyncmov [#allocation3 + $0xa] }
0x2e2e   :  { %s4692_s13 = vpop.sfrf %4691 }
0x2e2f   :  { %p5026_p6 = scmp.ne.s32.totalorder %s4692_s13, 0 }
0x2e31   :  { %4696 = shalt.err (%p5026_p6)  }
0x2e32   :  { %4698 = vsyncmov [#allocation3 + $0xb] }
0x2e35   :  { %s4699_s17 = vpop.sfrf %4698 }
0x2e36   :  { %p5027_p7 = scmp.ne.s32.totalorder %s4699_s17, 0 }
0x2e38   :  { %4703 = shalt.err (%p5027_p7)  }
0x2e39   :  { %4705 = vsyncmov [#allocation3 + $0xc] }
0x2e3c   :  { %s4706_s21 = vpop.sfrf %4705 }
0x2e3d   :  { %p5028_p8 = scmp.ne.s32.totalorder %s4706_s21, 0 }
0x2e3f   :  { %4710 = shalt.err (%p5028_p8)  }
0x2e40   :  { %4712 = vsyncmov [#allocation3 + $0xd] }
0x2e43   :  { %s4713_s25 = vpop.sfrf %4712 }
0x2e44   :  { %p5029_p9 = scmp.ne.s32.totalorder %s4713_s25, 0 }
0x2e46   :  { %4717 = shalt.err (%p5029_p9)  }
0x2e47   :  { %4719 = vsyncmov [#allocation3 + $0xe] }
0x2e4a   :  { %s4720_s3 = vpop.sfrf %4719 }
0x2e4b   :  { %p5030_p10 = scmp.ne.s32.totalorder %s4720_s3, 0 }
0x2e4d   :  { %4724 = shalt.err (%p5030_p10)  }
0x2e4e   :  { %4726 = vsyncmov [#allocation3 + $0xf] }
0x2e51   :  { %s4727_s5 = vpop.sfrf %4726 }
0x2e52   :  { %p5031_p11 = scmp.ne.s32.totalorder %s4727_s5, 0 }
0x2e54   :  { %4731 = shalt.err (%p5031_p11)  }

</bundles_post_ra>
